<compile_context>
chip_gen: v5e
topology: v5e:2x2
jax: 0.10.0
libtpu: 0.0.40
codegen_flags: <defaults>
</compile_context>

<pallas_src>
import math
from functools import partial

import jax
import jax.numpy as jnp
from jax import lax
from jax.experimental import pallas as pl
from jax.experimental.pallas import tpu as pltpu


_TILE_N = 2048          # target lane tile for the projection kernels
_TILE_CHW = 4096        # target lane tile for the attention kernels
_VMEM_LIMIT = 48 * 1024 * 1024   # < v7x 64 MiB physical, > v5e 16 MiB default


def _pick_tile(dim, target):
    """Largest multiple-of-128 divisor of `dim` that is <= target, else dim."""
    if dim <= target:
        return dim
    t = (target // 128) * 128
    while t >= 128:
        if dim % t == 0:
            return t
        t -= 128
    return dim


# ----------------------------- Pallas kernels ------------------------------

def _qkv_proj_kernel(w_ref, b_ref, x_ref, q_ref, k_ref, v_ref, *, c):
    # One (batch, N-tile) per grid step: o = Wqkv @ x + bqkv, split into q/k/v.
    x = x_ref[0]                                  # (C, TN)
    o = jnp.dot(w_ref[...], x, preferred_element_type=jnp.float32)
    o = o + b_ref[...]                            # (3c, TN)
    q_ref[0] = o[0:c].astype(q_ref.dtype)
    k_ref[0] = o[c:2 * c].astype(k_ref.dtype)
    v_ref[0] = o[2 * c:3 * c].astype(v_ref.dtype)


def _attn_scores_kernel(q_ref, k_ref, p_ref, acc_ref, *, scale):
    # grid = (B, chw_tiles); accumulate corr over chw tiles, softmax at the end.
    j = pl.program_id(1)

    @pl.when(j == 0)
    def _():
        acc_ref[...] = jnp.zeros_like(acc_ref)

    q = q_ref[0]                                  # (T, CT)  lane-dense
    k = k_ref[0]                                  # (T, CT)
    acc_ref[...] += lax.dot_general(q, k, (((1,), (1,)), ((), ())),
                                    preferred_element_type=jnp.float32)

    @pl.when(j == pl.num_programs(1) - 1)
    def _():
        s = acc_ref[...] * scale                  # tiny (T, T)
        s = s - jnp.max(s, axis=-1, keepdims=True)
        e = jnp.exp(s)
        p_ref[0] = (e / jnp.sum(e, axis=-1, keepdims=True)).astype(p_ref.dtype)


def _attn_apply_kernel(p_ref, v_ref, o_ref):
    # One (batch, chw-tile) per grid step: yt_tile = P @ v_tile  (lane-dense).
    p = p_ref[0]                                  # (T, T)
    v = v_ref[0]                                  # (T, CT)
    o_ref[0] = jnp.dot(p, v, preferred_element_type=jnp.float32).astype(o_ref.dtype)


def _out_proj_kernel(w_ref, b_ref, y_ref, x_ref, o_ref):
    # One (batch, N-tile) per grid step: z = Ww @ yt + bw + x (fused residual).
    y = y_ref[0]                                  # (c, TN)
    o = jnp.dot(w_ref[...], y, preferred_element_type=jnp.float32)
    o = o + b_ref[...] + x_ref[0]
    o_ref[0] = o.astype(o_ref.dtype)


# ----------------------------- pallas_call wrappers -------------------------

def qkv_proj(x, w_qkv, b_qkv, c):
    """x: (B, C, N); w_qkv: (3c, C); b_qkv: (3c, 1) -> 3 arrays (B, c, N)."""
    B, C, N = x.shape
    TN = _pick_tile(N, _TILE_N)
    out = jax.ShapeDtypeStruct((B, c, N), x.dtype)
    return pl.pallas_call(
        partial(_qkv_proj_kernel, c=c),
        out_shape=(out, out, out),
        grid=(B, N // TN),
        in_specs=[pl.BlockSpec((3 * c, C), lambda i, j: (0, 0)),
                  pl.BlockSpec((3 * c, 1), lambda i, j: (0, 0)),
                  pl.BlockSpec((1, C, TN), lambda i, j: (i, 0, j))],
        out_specs=(pl.BlockSpec((1, c, TN), lambda i, j: (i, 0, j)),
                   pl.BlockSpec((1, c, TN), lambda i, j: (i, 0, j)),
                   pl.BlockSpec((1, c, TN), lambda i, j: (i, 0, j))),
        compiler_params=pltpu.CompilerParams(
            dimension_semantics=("parallel", "parallel"),
            vmem_limit_bytes=_VMEM_LIMIT),
    )(w_qkv, b_qkv, x)


def attn_scores(qT, kT, scale):
    """qT/kT: (B, T, chw) lane-dense. Returns P = softmax(Q K^T * scale): (B, T, T)."""
    B, T, chw = qT.shape
    CT = _pick_tile(chw, _TILE_CHW)
    return pl.pallas_call(
        partial(_attn_scores_kernel, scale=scale),
        out_shape=jax.ShapeDtypeStruct((B, T, T), jnp.float32),
        grid=(B, chw // CT),
        in_specs=[pl.BlockSpec((1, T, CT), lambda i, j: (i, 0, j)),
                  pl.BlockSpec((1, T, CT), lambda i, j: (i, 0, j))],
        out_specs=pl.BlockSpec((1, T, T), lambda i, j: (i, 0, 0)),
        scratch_shapes=[pltpu.VMEM((T, T), jnp.float32)],
        compiler_params=pltpu.CompilerParams(
            dimension_semantics=("parallel", "arbitrary"),
            vmem_limit_bytes=_VMEM_LIMIT),
    )(qT, kT)


def attn_apply(p, vT):
    """p: (B, T, T); vT: (B, T, chw) -> yt: (B, T, chw) = P @ V."""
    B, T, chw = vT.shape
    CT = _pick_tile(chw, _TILE_CHW)
    return pl.pallas_call(
        _attn_apply_kernel,
        out_shape=jax.ShapeDtypeStruct((B, T, chw), vT.dtype),
        grid=(B, chw // CT),
        in_specs=[pl.BlockSpec((1, T, T), lambda i, j: (i, 0, 0)),
                  pl.BlockSpec((1, T, CT), lambda i, j: (i, 0, j))],
        out_specs=pl.BlockSpec((1, T, CT), lambda i, j: (i, 0, j)),
        compiler_params=pltpu.CompilerParams(
            dimension_semantics=("parallel", "parallel"),
            vmem_limit_bytes=_VMEM_LIMIT),
    )(p, vT)


def out_proj(yt, w, b, x):
    """yt: (B, c, N); w: (C, c); b: (C, 1); x: (B, C, N) -> Ww@yt + bw + x."""
    B, c, N = yt.shape
    C = w.shape[0]
    TN = _pick_tile(N, _TILE_N)
    return pl.pallas_call(
        _out_proj_kernel,
        out_shape=jax.ShapeDtypeStruct((B, C, N), x.dtype),
        grid=(B, N // TN),
        in_specs=[pl.BlockSpec((C, c), lambda i, j: (0, 0)),
                  pl.BlockSpec((C, 1), lambda i, j: (0, 0)),
                  pl.BlockSpec((1, c, TN), lambda i, j: (i, 0, j)),
                  pl.BlockSpec((1, C, TN), lambda i, j: (i, 0, j))],
        out_specs=pl.BlockSpec((1, C, TN), lambda i, j: (i, 0, j)),
        compiler_params=pltpu.CompilerParams(
            dimension_semantics=("parallel", "parallel"),
            vmem_limit_bytes=_VMEM_LIMIT),
    )(w, b, yt, x)


# ------------------------------- TABlock ------------------------------------

def init_ta_block_params(key, in_channels, inter_channels=None,
                         dtype=jnp.float32, zero_qk=True):
    if inter_channels is None:
        inter_channels = in_channels // 2
        if inter_channels == 0:
            inter_channels = 1
    kq, kqb, kk, kkb, kv, kvb, kw, kwb = jax.random.split(key, 8)

    def rnd(k, shape):
        return 0.1 * jax.random.normal(k, shape, dtype)

    if zero_qk:   # PyTorch __init__ zero-inits Q and K (weight and bias).
        Wq = jnp.zeros((inter_channels, in_channels), dtype)
        bq = jnp.zeros((inter_channels, 1), dtype)
        Wk = jnp.zeros((inter_channels, in_channels), dtype)
        bk = jnp.zeros((inter_channels, 1), dtype)
    else:
        Wq, bq = rnd(kq, (inter_channels, in_channels)), rnd(kqb, (inter_channels, 1))
        Wk, bk = rnd(kk, (inter_channels, in_channels)), rnd(kkb, (inter_channels, 1))

    params = {
        "Wq": Wq, "bq": bq, "Wk": Wk, "bk": bk,
        "Wv": rnd(kv, (inter_channels, in_channels)),
        "bv": rnd(kvb, (inter_channels, 1)),
        "Ww": rnd(kw, (in_channels, inter_channels)),
        "bw": rnd(kwb, (in_channels, 1)),
    }
    return params, inter_channels


def ta_block_forward(x, params):
    """x: (B, C, T, H, W) float32 -> (B, C, T, H, W)."""
    B, C, T, H, W = x.shape
    c = params["Wq"].shape[0]                    # inter_channels
    N = T * H * W
    chw = c * H * W

    x_flat = x.reshape(B, C, N)

    # Fused Q/K/V projection (one Pallas kernel, x read once).
    w_qkv = jnp.concatenate([params["Wq"], params["Wk"], params["Wv"]], axis=0)
    b_qkv = jnp.concatenate([params["bq"], params["bk"], params["bv"]], axis=0)
    q, k, v = qkv_proj(x_flat, w_qkv, b_qkv, c)  # each (B, c, N)

    # Exact replica of torch .view(b, c*h*w, -1) (raw C-order regroup), then
    # transpose so the big chw axis sits on the 128-lane dimension.
    qT = jnp.transpose(q.reshape(B, chw, T), (0, 2, 1))   # (B, T, chw)
    kT = jnp.transpose(k.reshape(B, chw, T), (0, 2, 1))
    vT = jnp.transpose(v.reshape(B, chw, T), (0, 2, 1))

    scale = 1.0 / math.sqrt(H * W * c)
    p = attn_scores(qT, kT, scale)               # (B, T, T)
    ytT = attn_apply(p, vT)                      # (B, T, chw)

    # torch: yt.permute(0, 2, 1).contiguous().view(b, c, t, h, w)
    yt_flat = jnp.transpose(ytT, (0, 2, 1)).reshape(B, c, N)

    # W conv + residual add (fused Pallas kernel).
    z = out_proj(yt_flat, params["Ww"], params["bw"], x_flat)
    return z.reshape(B, C, T, H, W)


# ------------------------------ pure-JAX reference ---------------------------

def ta_block_reference(x, params):
    B, C, T, H, W = x.shape
    c = params["Wq"].shape[0]
    N = T * H * W
    chw = c * H * W
    hp = lax.Precision.HIGHEST
    xf = x.reshape(B, C, N)
    qx = jnp.einsum("oc,bcn->bon", params["Wq"], xf, precision=hp) + params["bq"][None]
    kx = jnp.einsum("oc,bcn->bon", params["Wk"], xf, precision=hp) + params["bk"][None]
    vx = jnp.einsum("oc,bcn->bon", params["Wv"], xf, precision=hp) + params["bv"][None]
    Q = jnp.transpose(qx.reshape(B, chw, T), (0, 2, 1))     # (B, T, chw)
    K = kx.reshape(B, chw, T)                                # (B, chw, T)
    V = jnp.transpose(vx.reshape(B, chw, T), (0, 2, 1))     # (B, T, chw)
    corr = jnp.matmul(Q, K, precision=hp) / math.sqrt(H * W * c)
    p = jax.nn.softmax(corr, axis=-1)
    yt = jnp.matmul(p, V, precision=hp)                      # (B, T, chw)
    yt = jnp.transpose(yt, (0, 2, 1)).reshape(B, c, N)
    z = jnp.einsum("oc,bcn->bon", params["Ww"], yt, precision=hp) + params["bw"][None] + xf
    return z.reshape(B, C, T, H, W)


# ----------------------------------- main ------------------------------------

if __name__ == "__main__":
    key = jax.random.PRNGKey(0)
    kx_key, kp_key = jax.random.split(key)

    # Small but tiling-exercising shapes: N = 4096 -> 2 N-tiles, chw = 8192 ->
    # 2 chw-tiles, so the accumulator / multi-tile grid paths actually run.
    B, C, T, H, W = 2, 32, 8, 16, 32
    x = jax.random.normal(kx_key, (B, C, T, H, W), jnp.float32)

    # PyTorch zero-inits Q/K; use small random weights here so the attention
    # path is exercised numerically (forward semantics are unchanged).
    params, inter = init_ta_block_params(kp_key, in_channels=C, zero_qk=False)

    fwd = jax.jit(ta_block_forward)
    out = jax.block_until_ready(fwd(x, params))

    ref = ta_block_reference(x, params)
    assert out.shape == (B, C, T, H, W)
    max_err = float(jnp.max(jnp.abs(out - ref)))
    assert jnp.allclose(out, ref, atol=1e-4, rtol=1e-4), \
        f"mismatch vs reference (max abs err {max_err})"

    print("KERNEL_OK")
</pallas_src>

<mosaic_0001>
module attributes {stable_mosaic.version = 11 : i64} {
  func.func @_qkv_proj_kernel(%arg0: i32, %arg1: i32, %arg2: memref<48x32xf32, #tpu.memory_space<vmem>>, %arg3: memref<48x1xf32, #tpu.memory_space<vmem>>, %arg4: memref<1x32x2048xf32, #tpu.memory_space<vmem>>, %arg5: memref<1x16x2048xf32, #tpu.memory_space<vmem>>, %arg6: memref<1x16x2048xf32, #tpu.memory_space<vmem>>, %arg7: memref<1x16x2048xf32, #tpu.memory_space<vmem>>) attributes {dimension_semantics = [#tpu.dimension_semantics<parallel>, #tpu.dimension_semantics<parallel>], iteration_bounds = array<i64: 2, 2>, scalar_prefetch = 0 : i64, scratch_operands = 0 : i64, tpu.core_type = #tpu.core_type<tc>, window_params = [{pipeline_mode = #tpu.pipeline_mode<synchronous>, transform_indices = @transform_0, window_bounds = array<i64: 48, 32>}, {pipeline_mode = #tpu.pipeline_mode<synchronous>, transform_indices = @transform_1, window_bounds = array<i64: 48, 1>}, {transform_indices = @transform_2, window_bounds = array<i64: 1, 32, 2048>}, {transform_indices = @transform_3, window_bounds = array<i64: 1, 16, 2048>}, {transform_indices = @transform_4, window_bounds = array<i64: 1, 16, 2048>}, {transform_indices = @transform_5, window_bounds = array<i64: 1, 16, 2048>}]} {
    %c0 = arith.constant 0 : index
    %c0_0 = arith.constant 0 : index
    %c0_1 = arith.constant 0 : index
    %0 = vector.load %arg4[%c0, %c0_0, %c0_1] : memref<1x32x2048xf32, #tpu.memory_space<vmem>>, vector<1x32x2048xf32>
    %1 = vector.shape_cast %0 : vector<1x32x2048xf32> to vector<32x2048xf32>
    %c0_2 = arith.constant 0 : index
    %c0_3 = arith.constant 0 : index
    %2 = vector.load %arg2[%c0_2, %c0_3] : memref<48x32xf32, #tpu.memory_space<vmem>>, vector<48x32xf32>
    %cst = arith.constant dense<0.000000e+00> : vector<48x2048xf32>
    %3 = tpu.matmul %2, %1, %cst {dimension_numbers = #tpu.dot_dimension_numbers<[1], [0], [0], [1], [0, 0, 1, 1], [], []>} : vector<48x32xf32>, vector<32x2048xf32>, vector<48x2048xf32> -> vector<48x2048xf32>
    %c0_4 = arith.constant 0 : index
    %c0_5 = arith.constant 0 : index
    %4 = vector.load %arg3[%c0_4, %c0_5] : memref<48x1xf32, #tpu.memory_space<vmem>>, vector<48x1xf32>
    %5 = vector.broadcast %4 : vector<48x1xf32> to vector<48x2048xf32>
    %6 = arith.addf %3, %5 : vector<48x2048xf32>
    %7 = vector.extract_strided_slice %6 {offsets = [0, 0], sizes = [16, 2048], strides = [1, 1]} : vector<48x2048xf32> to vector<16x2048xf32>
    %c0_6 = arith.constant 0 : index
    %c0_7 = arith.constant 0 : index
    %c0_8 = arith.constant 0 : index
    %8 = vector.load %arg5[%c0_6, %c0_7, %c0_8] : memref<1x16x2048xf32, #tpu.memory_space<vmem>>, vector<1x16x2048xf32>
    %9 = vector.shape_cast %8 : vector<1x16x2048xf32> to vector<16x2048xf32>
    %10 = vector.shape_cast %7 : vector<16x2048xf32> to vector<1x16x2048xf32>
    tpu.vector_store %arg5[%c0_6, %c0_7, %c0_8], %10 {strides = array<i32>} : memref<1x16x2048xf32, #tpu.memory_space<vmem>>, vector<1x16x2048xf32>,
    %11 = vector.extract_strided_slice %6 {offsets = [16, 0], sizes = [16, 2048], strides = [1, 1]} : vector<48x2048xf32> to vector<16x2048xf32>
    %c0_9 = arith.constant 0 : index
    %c0_10 = arith.constant 0 : index
    %c0_11 = arith.constant 0 : index
    %12 = vector.load %arg6[%c0_9, %c0_10, %c0_11] : memref<1x16x2048xf32, #tpu.memory_space<vmem>>, vector<1x16x2048xf32>
    %13 = vector.shape_cast %12 : vector<1x16x2048xf32> to vector<16x2048xf32>
    %14 = vector.shape_cast %11 : vector<16x2048xf32> to vector<1x16x2048xf32>
    tpu.vector_store %arg6[%c0_9, %c0_10, %c0_11], %14 {strides = array<i32>} : memref<1x16x2048xf32, #tpu.memory_space<vmem>>, vector<1x16x2048xf32>,
    %15 = vector.extract_strided_slice %6 {offsets = [32, 0], sizes = [16, 2048], strides = [1, 1]} : vector<48x2048xf32> to vector<16x2048xf32>
    %c0_12 = arith.constant 0 : index
    %c0_13 = arith.constant 0 : index
    %c0_14 = arith.constant 0 : index
    %16 = vector.load %arg7[%c0_12, %c0_13, %c0_14] : memref<1x16x2048xf32, #tpu.memory_space<vmem>>, vector<1x16x2048xf32>
    %17 = vector.shape_cast %16 : vector<1x16x2048xf32> to vector<16x2048xf32>
    %18 = vector.shape_cast %15 : vector<16x2048xf32> to vector<1x16x2048xf32>
    tpu.vector_store %arg7[%c0_12, %c0_13, %c0_14], %18 {strides = array<i32>} : memref<1x16x2048xf32, #tpu.memory_space<vmem>>, vector<1x16x2048xf32>,
    return
  }
  func.func @transform_0(%arg0: i32, %arg1: i32) -> (i32, i32) {
    %c0_i32 = arith.constant 0 : i32
    %c0_i32_0 = arith.constant 0 : i32
    %c0_i32_1 = arith.constant 0 : i32
    return %c0_i32, %c0_i32_0 : i32, i32
  }
  func.func @transform_1(%arg0: i32, %arg1: i32) -> (i32, i32) {
    %c0_i32 = arith.constant 0 : i32
    %c0_i32_0 = arith.constant 0 : i32
    %c0_i32_1 = arith.constant 0 : i32
    return %c0_i32, %c0_i32_0 : i32, i32
  }
  func.func @transform_2(%arg0: i32, %arg1: i32) -> (i32, i32, i32) {
    %c0_i32 = arith.constant 0 : i32
    %c0_i32_0 = arith.constant 0 : i32
    return %arg0, %c0_i32, %arg1 : i32, i32, i32
  }
  func.func @transform_3(%arg0: i32, %arg1: i32) -> (i32, i32, i32) {
    %c0_i32 = arith.constant 0 : i32
    %c0_i32_0 = arith.constant 0 : i32
    return %arg0, %c0_i32, %arg1 : i32, i32, i32
  }
  func.func @transform_4(%arg0: i32, %arg1: i32) -> (i32, i32, i32) {
    %c0_i32 = arith.constant 0 : i32
    %c0_i32_0 = arith.constant 0 : i32
    return %arg0, %c0_i32, %arg1 : i32, i32, i32
  }
  func.func @transform_5(%arg0: i32, %arg1: i32) -> (i32, i32, i32) {
    %c0_i32 = arith.constant 0 : i32
    %c0_i32_0 = arith.constant 0 : i32
    return %arg0, %c0_i32, %arg1 : i32, i32, i32
  }
}

module attributes {stable_mosaic.version = 11 : i64} {
  func.func @_attn_scores_kernel(%arg0: i32, %arg1: i32, %arg2: memref<1x8x4096xf32, #tpu.memory_space<vmem>>, %arg3: memref<1x8x4096xf32, #tpu.memory_space<vmem>>, %arg4: memref<1x8x8xf32, #tpu.memory_space<vmem>>, %arg5: memref<8x8xf32, #tpu.memory_space<vmem>>) attributes {dimension_semantics = [#tpu.dimension_semantics<parallel>, #tpu.dimension_semantics<arbitrary>], iteration_bounds = array<i64: 2, 2>, scalar_prefetch = 0 : i64, scratch_operands = 1 : i64, tpu.core_type = #tpu.core_type<tc>, window_params = [{transform_indices = @transform_0, window_bounds = array<i64: 1, 8, 4096>}, {transform_indices = @transform_1, window_bounds = array<i64: 1, 8, 4096>}, {transform_indices = @transform_2, window_bounds = array<i64: 1, 8, 8>}]} {
    %c0_i32 = arith.constant 0 : i32
    %0 = arith.cmpi eq, %arg1, %c0_i32 : i32
    %1 = arith.extui %0 : i1 to i32
    %c0_i32_0 = arith.constant 0 : i32
    %2 = arith.cmpi ne, %1, %c0_i32_0 : i32
    scf.if %2 {
      %cst_11 = arith.constant 0.000000e+00 : f32
      %14 = vector.broadcast %cst_11 : f32 to vector<8x8xf32>
      %c0_12 = arith.constant 0 : index
      %c0_13 = arith.constant 0 : index
      %15 = vector.load %arg5[%c0_12, %c0_13] : memref<8x8xf32, #tpu.memory_space<vmem>>, vector<8x8xf32>
      tpu.vector_store %arg5[%c0_12, %c0_13], %14 {strides = array<i32>} : memref<8x8xf32, #tpu.memory_space<vmem>>, vector<8x8xf32>,
    } else {
    }
    %c0 = arith.constant 0 : index
    %c0_1 = arith.constant 0 : index
    %c0_2 = arith.constant 0 : index
    %3 = vector.load %arg2[%c0, %c0_1, %c0_2] : memref<1x8x4096xf32, #tpu.memory_space<vmem>>, vector<1x8x4096xf32>
    %4 = vector.shape_cast %3 : vector<1x8x4096xf32> to vector<8x4096xf32>
    %c0_3 = arith.constant 0 : index
    %c0_4 = arith.constant 0 : index
    %c0_5 = arith.constant 0 : index
    %5 = vector.load %arg3[%c0_3, %c0_4, %c0_5] : memref<1x8x4096xf32, #tpu.memory_space<vmem>>, vector<1x8x4096xf32>
    %6 = vector.shape_cast %5 : vector<1x8x4096xf32> to vector<8x4096xf32>
    %c0_6 = arith.constant 0 : index
    %c0_7 = arith.constant 0 : index
    %7 = vector.load %arg5[%c0_6, %c0_7] : memref<8x8xf32, #tpu.memory_space<vmem>>, vector<8x8xf32>
    %cst = arith.constant dense<0.000000e+00> : vector<8x8xf32>
    %8 = tpu.matmul %4, %6, %cst {dimension_numbers = #tpu.dot_dimension_numbers<[1], [1], [0], [0], [0, 0, 1, 0], [], []>} : vector<8x4096xf32>, vector<8x4096xf32>, vector<8x8xf32> -> vector<8x8xf32>
    %9 = arith.addf %7, %8 : vector<8x8xf32>
    %c0_8 = arith.constant 0 : index
    %c0_9 = arith.constant 0 : index
    %10 = vector.load %arg5[%c0_8, %c0_9] : memref<8x8xf32, #tpu.memory_space<vmem>>, vector<8x8xf32>
    tpu.vector_store %arg5[%c0_8, %c0_9], %9 {strides = array<i32>} : memref<8x8xf32, #tpu.memory_space<vmem>>, vector<8x8xf32>,
    %c1_i32 = arith.constant 1 : i32
    %11 = arith.cmpi eq, %arg1, %c1_i32 : i32
    %12 = arith.extui %11 : i1 to i32
    %c0_i32_10 = arith.constant 0 : i32
    %13 = arith.cmpi ne, %12, %c0_i32_10 : i32
    scf.if %13 {
      %c0_11 = arith.constant 0 : index
      %c0_12 = arith.constant 0 : index
      %14 = vector.load %arg5[%c0_11, %c0_12] : memref<8x8xf32, #tpu.memory_space<vmem>>, vector<8x8xf32>
      %cst_13 = arith.constant 0.0110485433 : f32
      %15 = vector.broadcast %cst_13 : f32 to vector<8x8xf32>
      %16 = arith.mulf %14, %15 : vector<8x8xf32>
      %cst_14 = arith.constant dense<0xFF800000> : vector<8xf32>
      %17 = vector.multi_reduction <maximumf>, %16, %cst_14 [1] : vector<8x8xf32> to vector<8xf32>
      %18 = vector.shape_cast %17 : vector<8xf32> to vector<8x1xf32>
      %19 = vector.broadcast %18 : vector<8x1xf32> to vector<8x8xf32>
      %20 = arith.subf %16, %19 : vector<8x8xf32>
      %21 = math.exp %20 : vector<8x8xf32>
      %cst_15 = arith.constant dense<0.000000e+00> : vector<8xf32>
      %22 = vector.multi_reduction <add>, %21, %cst_15 [1] : vector<8x8xf32> to vector<8xf32>
      %23 = vector.shape_cast %22 : vector<8xf32> to vector<8x1xf32>
      %24 = vector.broadcast %23 : vector<8x1xf32> to vector<8x8xf32>
      %25 = arith.divf %21, %24 : vector<8x8xf32>
      %c0_16 = arith.constant 0 : index
      %c0_17 = arith.constant 0 : index
      %c0_18 = arith.constant 0 : index
      %26 = vector.load %arg4[%c0_16, %c0_17, %c0_18] : memref<1x8x8xf32, #tpu.memory_space<vmem>>, vector<1x8x8xf32>
      %27 = vector.shape_cast %26 : vector<1x8x8xf32> to vector<8x8xf32>
      %28 = vector.shape_cast %25 : vector<8x8xf32> to vector<1x8x8xf32>
      tpu.vector_store %arg4[%c0_16, %c0_17, %c0_18], %28 {strides = array<i32>} : memref<1x8x8xf32, #tpu.memory_space<vmem>>, vector<1x8x8xf32>,
    } else {
    }
    return
  }
  func.func @transform_0(%arg0: i32, %arg1: i32) -> (i32, i32, i32) {
    %c0_i32 = arith.constant 0 : i32
    %c0_i32_0 = arith.constant 0 : i32
    return %arg0, %c0_i32, %arg1 : i32, i32, i32
  }
  func.func @transform_1(%arg0: i32, %arg1: i32) -> (i32, i32, i32) {
    %c0_i32 = arith.constant 0 : i32
    %c0_i32_0 = arith.constant 0 : i32
    return %arg0, %c0_i32, %arg1 : i32, i32, i32
  }
  func.func @transform_2(%arg0: i32, %arg1: i32) -> (i32, i32, i32) {
    %c0_i32 = arith.constant 0 : i32
    %c0_i32_0 = arith.constant 0 : i32
    %c0_i32_1 = arith.constant 0 : i32
    return %arg0, %c0_i32, %c0_i32_0 : i32, i32, i32
  }
}

module attributes {stable_mosaic.version = 11 : i64} {
  func.func @_attn_apply_kernel(%arg0: i32, %arg1: i32, %arg2: memref<1x8x8xf32, #tpu.memory_space<vmem>>, %arg3: memref<1x8x4096xf32, #tpu.memory_space<vmem>>, %arg4: memref<1x8x4096xf32, #tpu.memory_space<vmem>>) attributes {dimension_semantics = [#tpu.dimension_semantics<parallel>, #tpu.dimension_semantics<parallel>], iteration_bounds = array<i64: 2, 2>, scalar_prefetch = 0 : i64, scratch_operands = 0 : i64, tpu.core_type = #tpu.core_type<tc>, window_params = [{transform_indices = @transform_0, window_bounds = array<i64: 1, 8, 8>}, {transform_indices = @transform_1, window_bounds = array<i64: 1, 8, 4096>}, {transform_indices = @transform_2, window_bounds = array<i64: 1, 8, 4096>}]} {
    %c0 = arith.constant 0 : index
    %c0_0 = arith.constant 0 : index
    %c0_1 = arith.constant 0 : index
    %0 = vector.load %arg2[%c0, %c0_0, %c0_1] : memref<1x8x8xf32, #tpu.memory_space<vmem>>, vector<1x8x8xf32>
    %1 = vector.shape_cast %0 : vector<1x8x8xf32> to vector<8x8xf32>
    %c0_2 = arith.constant 0 : index
    %c0_3 = arith.constant 0 : index
    %c0_4 = arith.constant 0 : index
    %2 = vector.load %arg3[%c0_2, %c0_3, %c0_4] : memref<1x8x4096xf32, #tpu.memory_space<vmem>>, vector<1x8x4096xf32>
    %3 = vector.shape_cast %2 : vector<1x8x4096xf32> to vector<8x4096xf32>
    %cst = arith.constant dense<0.000000e+00> : vector<8x4096xf32>
    %4 = tpu.matmul %1, %3, %cst {dimension_numbers = #tpu.dot_dimension_numbers<[1], [0], [0], [1], [0, 0, 1, 1], [], []>} : vector<8x8xf32>, vector<8x4096xf32>, vector<8x4096xf32> -> vector<8x4096xf32>
    %c0_5 = arith.constant 0 : index
    %c0_6 = arith.constant 0 : index
    %c0_7 = arith.constant 0 : index
    %5 = vector.load %arg4[%c0_5, %c0_6, %c0_7] : memref<1x8x4096xf32, #tpu.memory_space<vmem>>, vector<1x8x4096xf32>
    %6 = vector.shape_cast %5 : vector<1x8x4096xf32> to vector<8x4096xf32>
    %7 = vector.shape_cast %4 : vector<8x4096xf32> to vector<1x8x4096xf32>
    tpu.vector_store %arg4[%c0_5, %c0_6, %c0_7], %7 {strides = array<i32>} : memref<1x8x4096xf32, #tpu.memory_space<vmem>>, vector<1x8x4096xf32>,
    return
  }
  func.func @transform_0(%arg0: i32, %arg1: i32) -> (i32, i32, i32) {
    %c0_i32 = arith.constant 0 : i32
    %c0_i32_0 = arith.constant 0 : i32
    %c0_i32_1 = arith.constant 0 : i32
    return %arg0, %c0_i32, %c0_i32_0 : i32, i32, i32
  }
  func.func @transform_1(%arg0: i32, %arg1: i32) -> (i32, i32, i32) {
    %c0_i32 = arith.constant 0 : i32
    %c0_i32_0 = arith.constant 0 : i32
    return %arg0, %c0_i32, %arg1 : i32, i32, i32
  }
  func.func @transform_2(%arg0: i32, %arg1: i32) -> (i32, i32, i32) {
    %c0_i32 = arith.constant 0 : i32
    %c0_i32_0 = arith.constant 0 : i32
    return %arg0, %c0_i32, %arg1 : i32, i32, i32
  }
}

module attributes {stable_mosaic.version = 11 : i64} {
  func.func @_out_proj_kernel(%arg0: i32, %arg1: i32, %arg2: memref<32x16xf32, #tpu.memory_space<vmem>>, %arg3: memref<32x1xf32, #tpu.memory_space<vmem>>, %arg4: memref<1x16x2048xf32, #tpu.memory_space<vmem>>, %arg5: memref<1x32x2048xf32, #tpu.memory_space<vmem>>, %arg6: memref<1x32x2048xf32, #tpu.memory_space<vmem>>) attributes {dimension_semantics = [#tpu.dimension_semantics<parallel>, #tpu.dimension_semantics<parallel>], iteration_bounds = array<i64: 2, 2>, scalar_prefetch = 0 : i64, scratch_operands = 0 : i64, tpu.core_type = #tpu.core_type<tc>, window_params = [{pipeline_mode = #tpu.pipeline_mode<synchronous>, transform_indices = @transform_0, window_bounds = array<i64: 32, 16>}, {pipeline_mode = #tpu.pipeline_mode<synchronous>, transform_indices = @transform_1, window_bounds = array<i64: 32, 1>}, {transform_indices = @transform_2, window_bounds = array<i64: 1, 16, 2048>}, {transform_indices = @transform_3, window_bounds = array<i64: 1, 32, 2048>}, {transform_indices = @transform_4, window_bounds = array<i64: 1, 32, 2048>}]} {
    %c0 = arith.constant 0 : index
    %c0_0 = arith.constant 0 : index
    %c0_1 = arith.constant 0 : index
    %0 = vector.load %arg4[%c0, %c0_0, %c0_1] : memref<1x16x2048xf32, #tpu.memory_space<vmem>>, vector<1x16x2048xf32>
    %1 = vector.shape_cast %0 : vector<1x16x2048xf32> to vector<16x2048xf32>
    %c0_2 = arith.constant 0 : index
    %c0_3 = arith.constant 0 : index
    %2 = vector.load %arg2[%c0_2, %c0_3] : memref<32x16xf32, #tpu.memory_space<vmem>>, vector<32x16xf32>
    %cst = arith.constant dense<0.000000e+00> : vector<32x2048xf32>
    %3 = tpu.matmul %2, %1, %cst {dimension_numbers = #tpu.dot_dimension_numbers<[1], [0], [0], [1], [0, 0, 1, 1], [], []>} : vector<32x16xf32>, vector<16x2048xf32>, vector<32x2048xf32> -> vector<32x2048xf32>
    %c0_4 = arith.constant 0 : index
    %c0_5 = arith.constant 0 : index
    %4 = vector.load %arg3[%c0_4, %c0_5] : memref<32x1xf32, #tpu.memory_space<vmem>>, vector<32x1xf32>
    %5 = vector.broadcast %4 : vector<32x1xf32> to vector<32x2048xf32>
    %6 = arith.addf %3, %5 : vector<32x2048xf32>
    %c0_6 = arith.constant 0 : index
    %c0_7 = arith.constant 0 : index
    %c0_8 = arith.constant 0 : index
    %7 = vector.load %arg5[%c0_6, %c0_7, %c0_8] : memref<1x32x2048xf32, #tpu.memory_space<vmem>>, vector<1x32x2048xf32>
    %8 = vector.shape_cast %7 : vector<1x32x2048xf32> to vector<32x2048xf32>
    %9 = arith.addf %6, %8 : vector<32x2048xf32>
    %c0_9 = arith.constant 0 : index
    %c0_10 = arith.constant 0 : index
    %c0_11 = arith.constant 0 : index
    %10 = vector.load %arg6[%c0_9, %c0_10, %c0_11] : memref<1x32x2048xf32, #tpu.memory_space<vmem>>, vector<1x32x2048xf32>
    %11 = vector.shape_cast %10 : vector<1x32x2048xf32> to vector<32x2048xf32>
    %12 = vector.shape_cast %9 : vector<32x2048xf32> to vector<1x32x2048xf32>
    tpu.vector_store %arg6[%c0_9, %c0_10, %c0_11], %12 {strides = array<i32>} : memref<1x32x2048xf32, #tpu.memory_space<vmem>>, vector<1x32x2048xf32>,
    return
  }
  func.func @transform_0(%arg0: i32, %arg1: i32) -> (i32, i32) {
    %c0_i32 = arith.constant 0 : i32
    %c0_i32_0 = arith.constant 0 : i32
    %c0_i32_1 = arith.constant 0 : i32
    return %c0_i32, %c0_i32_0 : i32, i32
  }
  func.func @transform_1(%arg0: i32, %arg1: i32) -> (i32, i32) {
    %c0_i32 = arith.constant 0 : i32
    %c0_i32_0 = arith.constant 0 : i32
    %c0_i32_1 = arith.constant 0 : i32
    return %c0_i32, %c0_i32_0 : i32, i32
  }
  func.func @transform_2(%arg0: i32, %arg1: i32) -> (i32, i32, i32) {
    %c0_i32 = arith.constant 0 : i32
    %c0_i32_0 = arith.constant 0 : i32
    return %arg0, %c0_i32, %arg1 : i32, i32, i32
  }
  func.func @transform_3(%arg0: i32, %arg1: i32) -> (i32, i32, i32) {
    %c0_i32 = arith.constant 0 : i32
    %c0_i32_0 = arith.constant 0 : i32
    return %arg0, %c0_i32, %arg1 : i32, i32, i32
  }
  func.func @transform_4(%arg0: i32, %arg1: i32) -> (i32, i32, i32) {
    %c0_i32 = arith.constant 0 : i32
    %c0_i32_0 = arith.constant 0 : i32
    return %arg0, %c0_i32, %arg1 : i32, i32, i32
  }
}

</mosaic_0001>

<bundles_post_ra>
// kernel: ta_block_forward.4
= control target key start
LH: loop header
LB: loop body
LE: loop exit
PB: predicated region body
PF: predicated region fallthrough
CT: control target
= control target key end

     0   :  { %s1864_s18 = smov 0   ;;  %s1866_s19 = smov 0   ;;  %s2829_s0 = inlined_call_operand.vmem [shape: f32[48,32], index: 0, kind: input, shape index: {}]   ;;  %s2830_s1 = inlined_call_operand.vmem [shape: f32[48,1], index: 1, kind: input, shape index: {}]   ;;  %s2831_s2 = inlined_call_operand.vmem [shape: f32[2,32,4096], index: 2, kind: input, shape index: {}]   ;;  %s2832_s3 = inlined_call_operand.vmem [shape: f32[2,16,4096], index: 3, kind: output, shape index: {0}]   ;;  %s2833_s4 = inlined_call_operand.vmem [shape: f32[2,16,4096], index: 4, kind: output, shape index: {1}]   ;;  %s2834_s5 = inlined_call_operand.vmem [shape: f32[2,16,4096], index: 5, kind: output, shape index: {2}]  }
   0x1   :  { %s1868_s20 = smov 0   ;;  %s1870_s21 = smov 0  }
   0x2   :  { %s1872_s22 = smov 0   ;;  %s1874_s23 = smov 0  }
   0x3   :  { %s1876_s24 = smov 0  }
   0x4 LB: > { %s25_s25 = sadd.s32 1, %s1823_s22  ;;  %s28_s26 = sadd.s32 1, %s1827_s23  ;;  %s1831_s24 = sphi %s1876_s24, %s16_s24   ;;  %s1827_s23 = sphi %s1874_s23, %s2841_s23   ;;  %s1823_s22 = sphi %s1872_s22, %s2840_s22   ;;  %s1819_s21 = sphi %s1870_s21, %s2839_s21   ;;  %s1815_s20 = sphi %s1868_s20, %s2838_s20   ;;  %s1811_s19 = sphi %s1866_s19, %s2837_s19   ;;  %s1807_s18 = sphi %s1864_s18, %s2836_s18  }
   0x5   : > { %p26_p0 = scmp.ge.s32.totalorder %s25_s25, 2  ;;  %s1594_s27 = sadd.s32 4294967295, %s1831_s24  }
   0x6   : > { %p86_p1 = scmp.ne.s32.totalorder %s1811_s19, %s1807_s18  ;;  %p87_p2 = scmp.eq.s32.totalorder %s1831_s24, 0 }
   0x7   : > { %s2843_s25 = smov (%p26_p0, %s25_s25), 0  ;;  %s2845_s26 = smov (!%p26_p0, %s28_s26), %s1827_s23 }
   0x8   : > { %p30_p3 = scmp.ge.s32.totalorder %s2845_s26, 2  ;;  %p118_p4 = scmp.eq.s32.totalorder %s1594_s27, 3 }
   0x9   : > { %s75_s28 = ssub.s32 %s1823_s22, %s2843_s25  ;;  %p88_p5 = por %p87_p2, %p86_p1 }
   0xa   : > { %s2847_s26 = smov (%p30_p3, %s2845_s26), 0  ;;  %p1912_p6 = por %p118_p4, %p86_p1 }
   0xb   : > { %s74_s30 = ssub.s32 %s1827_s23, %s2847_s26  ;;  %s79_s7 = sadd.s32 1, %s1811_s19 }
   0xc   : > { %s76_s6 = sor.u32 %s75_s28, %s74_s30  ;;  %p1597_p8 = scmp.ge.s32.totalorder %s1831_s24, 4 }
   0xd   : > { %p77_p7 = scmp.eq.s32.totalorder %s76_s6, 0 }
   0xe   : > { %202 = sbr.rel (%p1597_p8) target bundleno = 90 (0x5a), region = 24 }
   0xf   : > { %s1920_s8 = scalar_select %p77_p7, %s1811_s19, %s79_s7  }
  0x13   : > { %205 = sbr.rel (!%p88_p5) target bundleno = 90 (0x5a), region = 28  ;;  %s207_s9 = sand.u32 (%p88_p5), 1, %s1811_s19  }
  0x14   : > { %s1599_s10 = sshll.u32 (%p88_p5), %s1823_s22, 4  ;;  %s1598_s11 = sshll.u32 (%p88_p5), %s207_s9, 9 }
  0x15   : > { %s1600_s12 = sshll.u32 (%p88_p5), %s1827_s23, 7  ;;  %s1934_s27 = scalar_lea.vmem (%p88_p5), [#allocation2], %s1598_s11 }
  0x16   : > { %s212_s13 = sadd.s32 (%p88_p5), %s1600_s12, %s1599_s10 }
  0x17   : > { %s1601_s14 = sshll.u32 (%p88_p5), %s212_s13, 3 }
  0x18   : > { %s1929_s17 = scalar_lea.vmem %s2831_s2, %s1601_s14 }
  0x19   : > { %v227_v0 = vld [vmem:[%s1929_s17] sm:$0xff]  ;;  %v229_v1 = vld [vmem:[%s1929_s17 + $0x8] sm:$0xff]  ;;  %v231_v2 = vld [vmem:[%s1929_s17 + $0x10] sm:$0xff] }
  0x1a   : > { %228 = vst [vmem:[%s1934_s27] sm:$0xff] %v227_v0  ;;  %v233_v3 = vld [vmem:[%s1929_s17 + $0x18] sm:$0xff]  ;;  %v235_v4 = vld [vmem:[%s1929_s17 + $0x20] sm:$0xff]  ;;  %v237_v5 = vld [vmem:[%s1929_s17 + $0x28] sm:$0xff] }
  0x1b   : > { %230 = vst [vmem:[%s1934_s27 + $0x8] sm:$0xff] %v229_v1  ;;  %v239_v6 = vld [vmem:[%s1929_s17 + $0x30] sm:$0xff]  ;;  %v241_v7 = vld [vmem:[%s1929_s17 + $0x38] sm:$0xff]  ;;  %v243_v8 = vld [vmem:[%s1929_s17 + $0x40] sm:$0xff] }
  0x1c   : > { %232 = vst [vmem:[%s1934_s27 + $0x10] sm:$0xff] %v231_v2  ;;  %v245_v9 = vld [vmem:[%s1929_s17 + $0x48] sm:$0xff]  ;;  %v247_v10 = vld [vmem:[%s1929_s17 + $0x50] sm:$0xff]  ;;  %v249_v11 = vld [vmem:[%s1929_s17 + $0x58] sm:$0xff] }
  0x1d   : > { %234 = vst [vmem:[%s1934_s27 + $0x18] sm:$0xff] %v233_v3  ;;  %v251_v12 = vld [vmem:[%s1929_s17 + $0x60] sm:$0xff]  ;;  %v253_v13 = vld [vmem:[%s1929_s17 + $0x68] sm:$0xff]  ;;  %v255_v14 = vld [vmem:[%s1929_s17 + $0x70] sm:$0xff] }
  0x1e   : > { %236 = vst [vmem:[%s1934_s27 + $0x20] sm:$0xff] %v235_v4  ;;  %v257_v15 = vld [vmem:[%s1929_s17 + $0x78] sm:$0xff]  ;;  %v259_v16 = vld [vmem:[%s1929_s17 + $0x100] sm:$0xff]  ;;  %v261_v17 = vld [vmem:[%s1929_s17 + $0x108] sm:$0xff] }
  0x1f   : > { %238 = vst [vmem:[%s1934_s27 + $0x28] sm:$0xff] %v237_v5  ;;  %v263_v18 = vld [vmem:[%s1929_s17 + $0x110] sm:$0xff]  ;;  %v265_v19 = vld [vmem:[%s1929_s17 + $0x118] sm:$0xff]  ;;  %v267_v20 = vld [vmem:[%s1929_s17 + $0x120] sm:$0xff] }
  0x20   : > { %240 = vst [vmem:[%s1934_s27 + $0x30] sm:$0xff] %v239_v6  ;;  %v269_v21 = vld [vmem:[%s1929_s17 + $0x128] sm:$0xff]  ;;  %v271_v22 = vld [vmem:[%s1929_s17 + $0x130] sm:$0xff]  ;;  %v273_v23 = vld [vmem:[%s1929_s17 + $0x138] sm:$0xff] }
  0x21   : > { %242 = vst [vmem:[%s1934_s27 + $0x38] sm:$0xff] %v241_v7  ;;  %v275_v24 = vld [vmem:[%s1929_s17 + $0x140] sm:$0xff]  ;;  %v277_v25 = vld [vmem:[%s1929_s17 + $0x148] sm:$0xff]  ;;  %v279_v26 = vld [vmem:[%s1929_s17 + $0x150] sm:$0xff] }
  0x22   : > { %244 = vst [vmem:[%s1934_s27 + $0x40] sm:$0xff] %v243_v8  ;;  %v281_v27 = vld [vmem:[%s1929_s17 + $0x158] sm:$0xff]  ;;  %v283_v28 = vld [vmem:[%s1929_s17 + $0x160] sm:$0xff]  ;;  %v285_v29 = vld [vmem:[%s1929_s17 + $0x168] sm:$0xff] }
  0x23   : > { %246 = vst [vmem:[%s1934_s27 + $0x48] sm:$0xff] %v245_v9  ;;  %v287_v30 = vld [vmem:[%s1929_s17 + $0x170] sm:$0xff]  ;;  %v289_v31 = vld [vmem:[%s1929_s17 + $0x178] sm:$0xff]  ;;  %v291_v32 = vld [vmem:[%s1929_s17 + $0x200] sm:$0xff] }
  0x24   : > { %248 = vst [vmem:[%s1934_s27 + $0x50] sm:$0xff] %v247_v10  ;;  %v293_v33 = vld [vmem:[%s1929_s17 + $0x208] sm:$0xff]  ;;  %v295_v34 = vld [vmem:[%s1929_s17 + $0x210] sm:$0xff]  ;;  %v297_v35 = vld [vmem:[%s1929_s17 + $0x218] sm:$0xff] }
  0x25   : > { %250 = vst [vmem:[%s1934_s27 + $0x58] sm:$0xff] %v249_v11  ;;  %v299_v36 = vld [vmem:[%s1929_s17 + $0x220] sm:$0xff]  ;;  %v301_v37 = vld [vmem:[%s1929_s17 + $0x228] sm:$0xff]  ;;  %v303_v38 = vld [vmem:[%s1929_s17 + $0x230] sm:$0xff] }
  0x26   : > { %252 = vst [vmem:[%s1934_s27 + $0x60] sm:$0xff] %v251_v12  ;;  %v305_v39 = vld [vmem:[%s1929_s17 + $0x238] sm:$0xff]  ;;  %v307_v40 = vld [vmem:[%s1929_s17 + $0x240] sm:$0xff]  ;;  %v309_v41 = vld [vmem:[%s1929_s17 + $0x248] sm:$0xff] }
  0x27   : > { %254 = vst [vmem:[%s1934_s27 + $0x68] sm:$0xff] %v253_v13  ;;  %v311_v42 = vld [vmem:[%s1929_s17 + $0x250] sm:$0xff]  ;;  %v313_v43 = vld [vmem:[%s1929_s17 + $0x258] sm:$0xff]  ;;  %v315_v44 = vld [vmem:[%s1929_s17 + $0x260] sm:$0xff] }
  0x28   : > { %256 = vst [vmem:[%s1934_s27 + $0x70] sm:$0xff] %v255_v14  ;;  %v317_v45 = vld [vmem:[%s1929_s17 + $0x268] sm:$0xff]  ;;  %v319_v46 = vld [vmem:[%s1929_s17 + $0x270] sm:$0xff]  ;;  %v321_v47 = vld [vmem:[%s1929_s17 + $0x278] sm:$0xff] }
  0x29   : > { %258 = vst [vmem:[%s1934_s27 + $0x78] sm:$0xff] %v257_v15  ;;  %v323_v48 = vld [vmem:[%s1929_s17 + $0x300] sm:$0xff]  ;;  %v325_v49 = vld [vmem:[%s1929_s17 + $0x308] sm:$0xff]  ;;  %v327_v50 = vld [vmem:[%s1929_s17 + $0x310] sm:$0xff] }
  0x2a   : > { %260 = vst [vmem:[%s1934_s27 + $0x80] sm:$0xff] %v259_v16  ;;  %v329_v51 = vld [vmem:[%s1929_s17 + $0x318] sm:$0xff]  ;;  %v331_v52 = vld [vmem:[%s1929_s17 + $0x320] sm:$0xff]  ;;  %v333_v53 = vld [vmem:[%s1929_s17 + $0x328] sm:$0xff] }
  0x2b   : > { %262 = vst [vmem:[%s1934_s27 + $0x88] sm:$0xff] %v261_v17  ;;  %v335_v54 = vld [vmem:[%s1929_s17 + $0x330] sm:$0xff]  ;;  %v337_v55 = vld [vmem:[%s1929_s17 + $0x338] sm:$0xff]  ;;  %v339_v56 = vld [vmem:[%s1929_s17 + $0x340] sm:$0xff] }
  0x2c   : > { %264 = vst [vmem:[%s1934_s27 + $0x90] sm:$0xff] %v263_v18  ;;  %v341_v57 = vld [vmem:[%s1929_s17 + $0x348] sm:$0xff]  ;;  %v343_v58 = vld [vmem:[%s1929_s17 + $0x350] sm:$0xff]  ;;  %v345_v59 = vld [vmem:[%s1929_s17 + $0x358] sm:$0xff] }
  0x2d   : > { %266 = vst [vmem:[%s1934_s27 + $0x98] sm:$0xff] %v265_v19  ;;  %v347_v60 = vld [vmem:[%s1929_s17 + $0x360] sm:$0xff]  ;;  %v349_v61 = vld [vmem:[%s1929_s17 + $0x368] sm:$0xff]  ;;  %v351_v62 = vld [vmem:[%s1929_s17 + $0x370] sm:$0xff] }
  0x2e   : > { %268 = vst [vmem:[%s1934_s27 + $0xa0] sm:$0xff] %v267_v20  ;;  %v353_v63 = vld [vmem:[%s1929_s17 + $0x378] sm:$0xff] }
  0x2f   : > { %270 = vst [vmem:[%s1934_s27 + $0xa8] sm:$0xff] %v269_v21 }
  0x30   : > { %272 = vst [vmem:[%s1934_s27 + $0xb0] sm:$0xff] %v271_v22 }
  0x31   : > { %274 = vst [vmem:[%s1934_s27 + $0xb8] sm:$0xff] %v273_v23 }
  0x32   : > { %276 = vst [vmem:[%s1934_s27 + $0xc0] sm:$0xff] %v275_v24 }
  0x33   : > { %278 = vst [vmem:[%s1934_s27 + $0xc8] sm:$0xff] %v277_v25 }
  0x34   : > { %280 = vst [vmem:[%s1934_s27 + $0xd0] sm:$0xff] %v279_v26 }
  0x35   : > { %282 = vst [vmem:[%s1934_s27 + $0xd8] sm:$0xff] %v281_v27 }
  0x36   : > { %284 = vst [vmem:[%s1934_s27 + $0xe0] sm:$0xff] %v283_v28 }
  0x37   : > { %286 = vst [vmem:[%s1934_s27 + $0xe8] sm:$0xff] %v285_v29 }
  0x38   : > { %288 = vst [vmem:[%s1934_s27 + $0xf0] sm:$0xff] %v287_v30 }
  0x39   : > { %290 = vst [vmem:[%s1934_s27 + $0xf8] sm:$0xff] %v289_v31 }
  0x3a   : > { %292 = vst [vmem:[%s1934_s27 + $0x100] sm:$0xff] %v291_v32 }
  0x3b   : > { %294 = vst [vmem:[%s1934_s27 + $0x108] sm:$0xff] %v293_v33 }
  0x3c   : > { %296 = vst [vmem:[%s1934_s27 + $0x110] sm:$0xff] %v295_v34 }
  0x3d   : > { %298 = vst [vmem:[%s1934_s27 + $0x118] sm:$0xff] %v297_v35 }
  0x3e   : > { %300 = vst [vmem:[%s1934_s27 + $0x120] sm:$0xff] %v299_v36 }
  0x3f   : > { %302 = vst [vmem:[%s1934_s27 + $0x128] sm:$0xff] %v301_v37 }
  0x40   : > { %304 = vst [vmem:[%s1934_s27 + $0x130] sm:$0xff] %v303_v38 }
  0x41   : > { %306 = vst [vmem:[%s1934_s27 + $0x138] sm:$0xff] %v305_v39 }
  0x42   : > { %308 = vst [vmem:[%s1934_s27 + $0x140] sm:$0xff] %v307_v40 }
  0x43   : > { %310 = vst [vmem:[%s1934_s27 + $0x148] sm:$0xff] %v309_v41 }
  0x44   : > { %312 = vst [vmem:[%s1934_s27 + $0x150] sm:$0xff] %v311_v42 }
  0x45   : > { %314 = vst [vmem:[%s1934_s27 + $0x158] sm:$0xff] %v313_v43 }
  0x46   : > { %316 = vst [vmem:[%s1934_s27 + $0x160] sm:$0xff] %v315_v44 }
  0x47   : > { %318 = vst [vmem:[%s1934_s27 + $0x168] sm:$0xff] %v317_v45 }
  0x48   : > { %320 = vst [vmem:[%s1934_s27 + $0x170] sm:$0xff] %v319_v46 }
  0x49   : > { %322 = vst [vmem:[%s1934_s27 + $0x178] sm:$0xff] %v321_v47 }
  0x4a   : > { %324 = vst [vmem:[%s1934_s27 + $0x180] sm:$0xff] %v323_v48 }
  0x4b   : > { %326 = vst [vmem:[%s1934_s27 + $0x188] sm:$0xff] %v325_v49 }
  0x4c   : > { %328 = vst [vmem:[%s1934_s27 + $0x190] sm:$0xff] %v327_v50 }
  0x4d   : > { %330 = vst [vmem:[%s1934_s27 + $0x198] sm:$0xff] %v329_v51 }
  0x4e   : > { %332 = vst [vmem:[%s1934_s27 + $0x1a0] sm:$0xff] %v331_v52 }
  0x4f   : > { %334 = vst [vmem:[%s1934_s27 + $0x1a8] sm:$0xff] %v333_v53 }
  0x50   : > { %336 = vst [vmem:[%s1934_s27 + $0x1b0] sm:$0xff] %v335_v54 }
  0x51   : > { %338 = vst [vmem:[%s1934_s27 + $0x1b8] sm:$0xff] %v337_v55 }
  0x52   : > { %340 = vst [vmem:[%s1934_s27 + $0x1c0] sm:$0xff] %v339_v56 }
  0x53   : > { %342 = vst [vmem:[%s1934_s27 + $0x1c8] sm:$0xff] %v341_v57 }
  0x54   : > { %344 = vst [vmem:[%s1934_s27 + $0x1d0] sm:$0xff] %v343_v58 }
  0x55   : > { %346 = vst [vmem:[%s1934_s27 + $0x1d8] sm:$0xff] %v345_v59 }
  0x56   : > { %348 = vst [vmem:[%s1934_s27 + $0x1e0] sm:$0xff] %v347_v60 }
  0x57   : > { %350 = vst [vmem:[%s1934_s27 + $0x1e8] sm:$0xff] %v349_v61 }
  0x58   : > { %352 = vst [vmem:[%s1934_s27 + $0x1f0] sm:$0xff] %v351_v62 }
  0x59   : > { %354 = vst [vmem:[%s1934_s27 + $0x1f8] sm:$0xff] %v353_v63 }
  0x5a PF: > { %p1602_p9 = scmp.ge.s32.totalorder %s1831_s24, 1  ;;  %p359_p10 = scmp.lt.s32.totalorder %s1831_s24, 5 }
  0x5c   : > { %p360_p11 = pnand %p1602_p9, %p359_p10 }
  0x5d   : > { %s366_s28 = sand.u32 (!%p360_p11), 1, %s1807_s18  }
  0x5e   : > { %363 = sbr.rel (%p360_p11) target bundleno = 506 (0x1fa), region = 51  ;;  %s1603_s30 = sshll.u32 (!%p360_p11), %s366_s28, 9 }
  0x5f   : > { %s2069_s9 = scalar_lea.vmem (!%p360_p11), [#allocation2], %s1603_s30 }
  0x63   : > { %v1833_v0 = vmov 0   ;;  %v474_v1 = vld [vmem:[%s2830_s1] sm:$0xff]  ;;  %v453_v3 = vld [vmem:[%s2069_s9 + $0x188] sm:$0xff]  ;;  %v454_v4 = vld [vmem:[%s2069_s9 + $0x190] sm:$0xff]  ;;  %vm510_vm0 = vcmask 261120   ;;  %s1706_s7 = sshll.u32 (%p1912_p6), %s1815_s20, 4 }
  0x64   : > { %1774 = vset.pattern.permute.xlu0 %v1833_v0  ;;  %1775 = vset.pattern.permute.xlu1 %v1833_v0  ;;  %v452_v2 = vld [vmem:[%s2069_s9 + $0x180] sm:$0xff]  ;;  %v455_v5 = vld [vmem:[%s2069_s9 + $0x198] sm:$0xff]  ;;  %v437_v7 = vld [vmem:[%s2069_s9 + $0x108] sm:$0xff]  ;;  %s1707_s10 = sshll.u32 (%p1912_p6), %s1819_s21, 6 }
  0x65   : > { %482 = vperm.xlu0 %1774, %v474_v1   ;;  %1776 = vset.pattern.permute.xlu2 %v1833_v0  ;;  %v436_v6 = vld [vmem:[%s2069_s9 + $0x100] sm:$0xff]  ;;  %v438_v8 = vld [vmem:[%s2069_s9 + $0x110] sm:$0xff]  ;;  %v439_v9 = vld [vmem:[%s2069_s9 + $0x118] sm:$0xff]  ;;  %s1202_s11 = sadd.s32 (%p1912_p6), %s1707_s10, %s1706_s7 }
  0x66   : > { %541 = vmatpush.msra.mxu0 %v452_v2  ;;  %576 = vmatpush.msra.mxu1 %v453_v3  ;;  %v420_v10 = vld [vmem:[%s2069_s9 + $0x80] sm:$0xff]  ;;  %v421_v11 = vld [vmem:[%s2069_s9 + $0x88] sm:$0xff]  ;;  %v422_v12 = vld [vmem:[%s2069_s9 + $0x90] sm:$0xff]  ;;  %s1708_s12 = sshll.u32 (%p1912_p6), %s1202_s11, 3 }
  0x67   : > { %611 = vmatpush.msra.mxu2 %v454_v4  ;;  %646 = vmatpush.msra.mxu3 %v455_v5  ;;  %v423_v13 = vld [vmem:[%s2069_s9 + $0x98] sm:$0xff]  ;;  %v404_v14 = vld [vmem:[%s2069_s9] sm:$0xff]  ;;  %v405_v15 = vld [vmem:[%s2069_s9 + $0x8] sm:$0xff]  ;;  %s2598_s15 = scalar_lea.vmem (%p1912_p6), %s2832_s3, %s1708_s12 }
  0x68   : > { %542 = vmatpush.msra.mxu0 %v436_v6  ;;  %577 = vmatpush.msra.mxu1 %v437_v7  ;;  %v406_v16 = vld [vmem:[%s2069_s9 + $0x10] sm:$0xff]  ;;  %v407_v17 = vld [vmem:[%s2069_s9 + $0x18] sm:$0xff]  ;;  %v2090_v18 = vld [vmem:[%s2829_s0] sm:$0xff] }
  0x69   : > { %612 = vmatpush.msra.mxu2 %v438_v8  ;;  %647 = vmatpush.msra.mxu3 %v439_v9  ;;  %v458_v19 = vld [vmem:[%s2069_s9 + $0x1b0] sm:$0xff]  ;;  %v459_v20 = vld [vmem:[%s2069_s9 + $0x1b8] sm:$0xff]  ;;  %v456_v21 = vld [vmem:[%s2069_s9 + $0x1a0] sm:$0xff] }
  0x6a   : > { %543 = vmatpush.msra.mxu0 %v420_v10  ;;  %578 = vmatpush.msra.mxu1 %v421_v11  ;;  %v457_v22 = vld [vmem:[%s2069_s9 + $0x1a8] sm:$0xff]  ;;  %v442_v23 = vld [vmem:[%s2069_s9 + $0x130] sm:$0xff]  ;;  %v443_v24 = vld [vmem:[%s2069_s9 + $0x138] sm:$0xff] }
  0x6b   : > { %613 = vmatpush.msra.mxu2 %v422_v12  ;;  %648 = vmatpush.msra.mxu3 %v423_v13  ;;  %v440_v25 = vld [vmem:[%s2069_s9 + $0x120] sm:$0xff]  ;;  %v441_v26 = vld [vmem:[%s2069_s9 + $0x128] sm:$0xff]  ;;  %v426_v27 = vld [vmem:[%s2069_s9 + $0xb0] sm:$0xff] }
  0x6c   : > { %544 = vmatpush.msra.mxu0 %v404_v14  ;;  %579 = vmatpush.msra.mxu1 %v405_v15  ;;  %v427_v28 = vld [vmem:[%s2069_s9 + $0xb8] sm:$0xff]  ;;  %v475_v29 = vld [vmem:[%s2830_s1 + $0x8] sm:$0xff]  ;;  %v424_v30 = vld [vmem:[%s2069_s9 + $0xa0] sm:$0xff] }
  0x6d   : > { %614 = vmatpush.msra.mxu2 %v406_v16  ;;  %649 = vmatpush.msra.mxu3 %v407_v17  ;;  %v2117_v31 = vld [vmem:[%s2829_s0 + $0x8] sm:$0xff]  ;;  %v476_v33 = vld [vmem:[%s2830_s1 + $0x10] sm:$0xff]  ;;  %v411_v35 = vld [vmem:[%s2069_s9 + $0x38] sm:$0xff] }
  0x6e   : > { %1607 = vmatmul.msk.f32.vlgmr.msra.gmra.mxu0 %vm510_vm0, %v2090_v18  ;;  %1613 = vmatmul.msk.f32.vlgmr.msra.gmra.mxu1 %vm510_vm0, %v2090_v18  ;;  %v425_v32 = vld [vmem:[%s2069_s9 + $0xa8] sm:$0xff]  ;;  %v410_v34 = vld [vmem:[%s2069_s9 + $0x30] sm:$0xff]  ;;  %v408_v36 = vld [vmem:[%s2069_s9 + $0x20] sm:$0xff] }
  0x6f   : > { %1619 = vmatmul.msk.f32.vlgmr.msra.gmra.mxu2 %vm510_vm0, %v2090_v18  ;;  %1625 = vmatmul.msk.f32.vlgmr.msra.gmra.mxu3 %vm510_vm0, %v2090_v18  ;;  %v409_v37 = vld [vmem:[%s2069_s9 + $0x28] sm:$0xff]  ;;  %v2138_v38 = vld [vmem:[%s2829_s0 + $0x10] sm:$0xff]  ;;  %v477_v39 = vld [vmem:[%s2830_s1 + $0x18] sm:$0xff] }
  0x70   : > { %751 = vmatpush.msrb.mxu2 %v458_v19  ;;  %786 = vmatpush.msrb.mxu3 %v459_v20  ;;  %v462_v40 = vld [vmem:[%s2069_s9 + $0x1d0] sm:$0xff]  ;;  %v463_v41 = vld [vmem:[%s2069_s9 + $0x1d8] sm:$0xff]  ;;  %v460_v42 = vld [vmem:[%s2069_s9 + $0x1c0] sm:$0xff] }
  0x71   : > { %681 = vmatpush.msrb.mxu0 %v456_v21  ;;  %716 = vmatpush.msrb.mxu1 %v457_v22  ;;  %v461_v43 = vld [vmem:[%s2069_s9 + $0x1c8] sm:$0xff]  ;;  %v2158_v44 = vld [vmem:[%s2829_s0 + $0x18] sm:$0xff]  ;;  %v446_v45 = vld [vmem:[%s2069_s9 + $0x150] sm:$0xff] }
  0x72   : > { %752 = vmatpush.msrb.mxu2 %v442_v23  ;;  %787 = vmatpush.msrb.mxu3 %v443_v24  ;;  %v447_v46 = vld [vmem:[%s2069_s9 + $0x158] sm:$0xff]  ;;  %v2173_v47 = vld [vmem:[%s2829_s0 + $0x20] sm:$0xff]  ;;  %v445_v49 = vld [vmem:[%s2069_s9 + $0x148] sm:$0xff] }
  0x73   : > { %682 = vmatpush.msrb.mxu0 %v440_v25  ;;  %717 = vmatpush.msrb.mxu1 %v441_v26  ;;  %v444_v48 = vld [vmem:[%s2069_s9 + $0x140] sm:$0xff]  ;;  %v2188_v50 = vld [vmem:[%s2829_s0 + $0x28] sm:$0xff]  ;;  %v430_v51 = vld [vmem:[%s2069_s9 + $0xd0] sm:$0xff] }
  0x74   : > { %753 = vmatpush.msrb.mxu2 %v426_v27  ;;  %788 = vmatpush.msrb.mxu3 %v427_v28  ;;  %v431_v52 = vld [vmem:[%s2069_s9 + $0xd8] sm:$0xff]  ;;  %v478_v53 = vld [vmem:[%s2830_s1 + $0x20] sm:$0xff]  ;;  %v429_v55 = vld [vmem:[%s2069_s9 + $0xc8] sm:$0xff] }
  0x75   : > { %487 = vperm.xlu0 %1774, %v475_v29   ;;  %683 = vmatpush.msrb.mxu0 %v424_v30  ;;  %v428_v54 = vld [vmem:[%s2069_s9 + $0xc0] sm:$0xff]  ;;  %v479_v56 = vld [vmem:[%s2830_s1 + $0x28] sm:$0xff]  ;;  %v414_v57 = vld [vmem:[%s2069_s9 + $0x50] sm:$0xff] }
  0x76   : > { %1608 = vmatmul.msk.f32.gmra.mxu0 %vm510_vm0, %v2117_v31  ;;  %1614 = vmatmul.msk.f32.gmra.mxu1 %vm510_vm0, %v2117_v31  ;;  %v415_v58 = vld [vmem:[%s2069_s9 + $0x58] sm:$0xff]  ;;  %v412_v59 = vld [vmem:[%s2069_s9 + $0x40] sm:$0xff]  ;;  %v413_v60 = vld [vmem:[%s2069_s9 + $0x48] sm:$0xff] }
  0x77   : > { %1620 = vmatmul.msk.f32.gmra.mxu2 %vm510_vm0, %v2117_v31  ;;  %1626 = vmatmul.msk.f32.gmra.mxu3 %vm510_vm0, %v2117_v31  ;;  %v466_v61 = vld [vmem:[%s2069_s9 + $0x1f0] sm:$0xff]  ;;  %v467_v62 = vld [vmem:[%s2069_s9 + $0x1f8] sm:$0xff]  ;;  %v464_v63 = vld [vmem:[%s2069_s9 + $0x1e0] sm:$0xff] }
  0x78   : > { %718 = vmatpush.msrb.mxu1 %v425_v32  ;;  %492 = vperm.xlu1 %1775, %v476_v33   ;;  %v465_v0 = vld [vmem:[%s2069_s9 + $0x1e8] sm:$0xff]  ;;  %v450_v1 = vld [vmem:[%s2069_s9 + $0x170] sm:$0xff]  ;;  %v451_v2 = vld [vmem:[%s2069_s9 + $0x178] sm:$0xff] }
  0x79   : > { %754 = vmatpush.msrb.mxu2 %v410_v34  ;;  %789 = vmatpush.msrb.mxu3 %v411_v35  ;;  %v448_v3 = vld [vmem:[%s2069_s9 + $0x160] sm:$0xff]  ;;  %v449_v4 = vld [vmem:[%s2069_s9 + $0x168] sm:$0xff]  ;;  %v434_v5 = vld [vmem:[%s2069_s9 + $0xf0] sm:$0xff] }
  0x7a   : > { %684 = vmatpush.msrb.mxu0 %v408_v36  ;;  %719 = vmatpush.msrb.mxu1 %v409_v37  ;;  %v435_v6 = vld [vmem:[%s2069_s9 + $0xf8] sm:$0xff]  ;;  %v432_v7 = vld [vmem:[%s2069_s9 + $0xe0] sm:$0xff]  ;;  %v433_v8 = vld [vmem:[%s2069_s9 + $0xe8] sm:$0xff] }
  0x7b   : > { %891 = vmatpush.msra.mxu2 %v462_v40  ;;  %926 = vmatpush.msra.mxu3 %v463_v41  ;;  %v418_v9 = vld [vmem:[%s2069_s9 + $0x70] sm:$0xff]  ;;  %v419_v10 = vld [vmem:[%s2069_s9 + $0x78] sm:$0xff]  ;;  %v416_v11 = vld [vmem:[%s2069_s9 + $0x60] sm:$0xff] }
  0x7c   : > { %821 = vmatpush.msra.mxu0 %v460_v42  ;;  %856 = vmatpush.msra.mxu1 %v461_v43  ;;  %v417_v12 = vld [vmem:[%s2069_s9 + $0x68] sm:$0xff]  ;;  %s2312_s9 = sshll.u32 %s366_s28, 8 }
  0x7d   : > { %892 = vmatpush.msra.mxu2 %v446_v45  ;;  %927 = vmatpush.msra.mxu3 %v447_v46  ;;  %s2321_s6 = scalar_lea.vmem [#allocation3], %s2312_s9  ;;  %s2364_s18 = scalar_lea.vmem [#allocation4], %s2312_s9 }
  0x7e   : > { %1609 = vmatmul.msk.f32.gmra.mxu0 %vm510_vm0, %v2138_v38  ;;  %1615 = vmatmul.msk.f32.gmra.mxu1 %vm510_vm0, %v2138_v38  ;;  %s2403_s28 = scalar_lea.vmem [#allocation5], %s2312_s9 }
  0x7f   : > { %1621 = vmatmul.msk.f32.gmra.mxu2 %vm510_vm0, %v2138_v38  ;;  %1627 = vmatmul.msk.f32.gmra.mxu3 %vm510_vm0, %v2138_v38 }
  0x80   : > { %497 = vperm.xlu1 %1775, %v477_v39   ;;  %822 = vmatpush.msra.mxu0 %v444_v48 }
  0x81   : > { %857 = vmatpush.msra.mxu1 %v445_v49  ;;  %893 = vmatpush.msra.mxu2 %v430_v51 }
  0x82   : > { %928 = vmatpush.msra.mxu3 %v431_v52  ;;  %502 = vperm.xlu2 %1776, %v478_v53  }
  0x83   : > { %823 = vmatpush.msra.mxu0 %v428_v54  ;;  %858 = vmatpush.msra.mxu1 %v429_v55 }
  0x84   : > { %894 = vmatpush.msra.mxu2 %v414_v57  ;;  %929 = vmatpush.msra.mxu3 %v415_v58 }
  0x85   : > { %824 = vmatpush.msra.mxu0 %v412_v59  ;;  %859 = vmatpush.msra.mxu1 %v413_v60 }
  0x86   : > { %1610 = vmatmul.msk.f32.gmra.mxu0 %vm510_vm0, %v2158_v44  ;;  %1616 = vmatmul.msk.f32.gmra.mxu1 %vm510_vm0, %v2158_v44 }
  0x87   : > { %1622 = vmatmul.msk.f32.gmra.mxu2 %vm510_vm0, %v2158_v44  ;;  %1628 = vmatmul.msk.f32.gmra.mxu3 %vm510_vm0, %v2158_v44 }
  0x8a   : > { %507 = vperm.xlu2 %1776, %v479_v56  }
  0x8e   : > { %1611 = vmatmul.msk.f32.gmra.mxu0 %vm510_vm0, %v2173_v47  ;;  %1617 = vmatmul.msk.f32.gmra.mxu1 %vm510_vm0, %v2173_v47 }
  0x8f   : > { %1623 = vmatmul.msk.f32.gmra.mxu2 %vm510_vm0, %v2173_v47  ;;  %1629 = vmatmul.msk.f32.gmra.mxu3 %vm510_vm0, %v2173_v47 }
  0x96   : > { %1612 = vmatmul.msk.f32.gmra.mxu0 %vm510_vm0, %v2188_v50  ;;  %1618 = vmatmul.msk.f32.gmra.mxu1 %vm510_vm0, %v2188_v50 }
  0x97   : > { %1624 = vmatmul.msk.f32.gmra.mxu2 %vm510_vm0, %v2188_v50  ;;  %1630 = vmatmul.msk.f32.gmra.mxu3 %vm510_vm0, %v2188_v50 }
  0x9e   : > { %1631 = vmatmul.msk.f32.vlgmr.msrb.gmra.mxu0 %vm510_vm0, %v2090_v18  ;;  %1637 = vmatmul.msk.f32.vlgmr.msrb.gmra.mxu1 %vm510_vm0, %v2090_v18 }
  0x9f   : > { %1643 = vmatmul.msk.f32.vlgmr.msrb.gmra.mxu2 %vm510_vm0, %v2090_v18  ;;  %1649 = vmatmul.msk.f32.vlgmr.msrb.gmra.mxu3 %vm510_vm0, %v2090_v18 }
  0xa0   : > { %1031 = vmatpush.msrb.mxu2 %v466_v61  ;;  %1066 = vmatpush.msrb.mxu3 %v467_v62 }
  0xa1   : > { %961 = vmatpush.msrb.mxu0 %v464_v63  ;;  %996 = vmatpush.msrb.mxu1 %v465_v0 }
  0xa2   : > { %1032 = vmatpush.msrb.mxu2 %v450_v1  ;;  %1067 = vmatpush.msrb.mxu3 %v451_v2 }
  0xa3   : > { %962 = vmatpush.msrb.mxu0 %v448_v3  ;;  %997 = vmatpush.msrb.mxu1 %v449_v4 }
  0xa4   : > { %1033 = vmatpush.msrb.mxu2 %v434_v5  ;;  %1068 = vmatpush.msrb.mxu3 %v435_v6 }
  0xa5   : > { %963 = vmatpush.msrb.mxu0 %v432_v7  ;;  %998 = vmatpush.msrb.mxu1 %v433_v8 }
  0xa6   : > { %1632 = vmatmul.msk.f32.gmra.mxu0 %vm510_vm0, %v2117_v31  ;;  %1638 = vmatmul.msk.f32.gmra.mxu1 %vm510_vm0, %v2117_v31 }
  0xa7   : > { %1644 = vmatmul.msk.f32.gmra.mxu2 %vm510_vm0, %v2117_v31  ;;  %1650 = vmatmul.msk.f32.gmra.mxu3 %vm510_vm0, %v2117_v31 }
  0xa8   : > { %1034 = vmatpush.msrb.mxu2 %v418_v9  ;;  %1069 = vmatpush.msrb.mxu3 %v419_v10 }
  0xa9   : > { %964 = vmatpush.msrb.mxu0 %v416_v11  ;;  %999 = vmatpush.msrb.mxu1 %v417_v12 }
  0xae   : > { %1633 = vmatmul.msk.f32.gmra.mxu0 %vm510_vm0, %v2138_v38  ;;  %1639 = vmatmul.msk.f32.gmra.mxu1 %vm510_vm0, %v2138_v38 }
  0xaf   : > { %1645 = vmatmul.msk.f32.gmra.mxu2 %vm510_vm0, %v2138_v38  ;;  %1651 = vmatmul.msk.f32.gmra.mxu3 %vm510_vm0, %v2138_v38 }
  0xb6   : > { %1634 = vmatmul.msk.f32.gmra.mxu0 %vm510_vm0, %v2158_v44  ;;  %1640 = vmatmul.msk.f32.gmra.mxu1 %vm510_vm0, %v2158_v44 }
  0xb7   : > { %1646 = vmatmul.msk.f32.gmra.mxu2 %vm510_vm0, %v2158_v44  ;;  %1652 = vmatmul.msk.f32.gmra.mxu3 %vm510_vm0, %v2158_v44 }
  0xbe   : > { %1635 = vmatmul.msk.f32.gmra.mxu0 %vm510_vm0, %v2173_v47  ;;  %1641 = vmatmul.msk.f32.gmra.mxu1 %vm510_vm0, %v2173_v47 }
  0xbf   : > { %1647 = vmatmul.msk.f32.gmra.mxu2 %vm510_vm0, %v2173_v47  ;;  %1653 = vmatmul.msk.f32.gmra.mxu3 %vm510_vm0, %v2173_v47 }
  0xc6   : > { %1636 = vmatmul.msk.f32.gmra.mxu0 %vm510_vm0, %v2188_v50  ;;  %1642 = vmatmul.msk.f32.gmra.mxu1 %vm510_vm0, %v2188_v50 }
  0xc7   : > { %1648 = vmatmul.msk.f32.gmra.mxu2 %vm510_vm0, %v2188_v50  ;;  %1654 = vmatmul.msk.f32.gmra.mxu3 %vm510_vm0, %v2188_v50 }
  0xce   : > { %1655 = vmatmul.msk.f32.vlgmr.msra.gmra.mxu0 %vm510_vm0, %v2090_v18  ;;  %1661 = vmatmul.msk.f32.vlgmr.msra.gmra.mxu1 %vm510_vm0, %v2090_v18 }
  0xcf   : > { %1667 = vmatmul.msk.f32.vlgmr.msra.gmra.mxu2 %vm510_vm0, %v2090_v18  ;;  %1673 = vmatmul.msk.f32.vlgmr.msra.gmra.mxu3 %vm510_vm0, %v2090_v18 }
  0xd6   : > { %1656 = vmatmul.msk.f32.gmra.mxu0 %vm510_vm0, %v2117_v31  ;;  %1662 = vmatmul.msk.f32.gmra.mxu1 %vm510_vm0, %v2117_v31 }
  0xd7   : > { %1668 = vmatmul.msk.f32.gmra.mxu2 %vm510_vm0, %v2117_v31  ;;  %1674 = vmatmul.msk.f32.gmra.mxu3 %vm510_vm0, %v2117_v31  ;;  %v2308_v13 = vpop.permute.xlu0 %482 }
  0xdc   : > { %v2385_v49 = vpop.permute.xlu2 %502 }
  0xde   : > { %1657 = vmatmul.msk.f32.gmra.mxu0 %vm510_vm0, %v2138_v38  ;;  %1663 = vmatmul.msk.f32.gmra.mxu1 %vm510_vm0, %v2138_v38 }
  0xdf   : > { %1669 = vmatmul.msk.f32.gmra.mxu2 %vm510_vm0, %v2138_v38  ;;  %1675 = vmatmul.msk.f32.gmra.mxu3 %vm510_vm0, %v2138_v38 }
  0xe6   : > { %1658 = vmatmul.msk.f32.gmra.mxu0 %vm510_vm0, %v2158_v44  ;;  %1664 = vmatmul.msk.f32.gmra.mxu1 %vm510_vm0, %v2158_v44 }
  0xe7   : > { %1670 = vmatmul.msk.f32.gmra.mxu2 %vm510_vm0, %v2158_v44  ;;  %1676 = vmatmul.msk.f32.gmra.mxu3 %vm510_vm0, %v2158_v44  ;;  %v2329_v19 = vpop.permute.xlu0 %487 }
  0xea   : > { %v2346_v28 = vpop.permute.xlu1 %492 }
  0xeb   : > { %v546_v14 = vpop.f32.mrf.mxu0  ;;  %v581_v15 = vpop.f32.mrf.mxu1 }
  0xec   : > { %v547_v16 = vadd.f32 %v546_v14, %v2308_v13  ;;  %v582_v17 = vadd.f32 %v581_v15, %v2308_v13 }
  0xee   : > { %1659 = vmatmul.msk.f32.gmra.mxu0 %vm510_vm0, %v2173_v47  ;;  %1665 = vmatmul.msk.f32.gmra.mxu1 %vm510_vm0, %v2173_v47  ;;  %1089 = vst [vmem:[%s2321_s6] sm:$0xff] %v547_v16 }
  0xef   : > { %1671 = vmatmul.msk.f32.gmra.mxu2 %vm510_vm0, %v2173_v47  ;;  %1677 = vmatmul.msk.f32.gmra.mxu3 %vm510_vm0, %v2173_v47  ;;  %1090 = vst [vmem:[%s2321_s6 + $0x8] sm:$0xff] %v582_v17 }
  0xf2   : > { %v616_v20 = vpop.f32.mrf.mxu2  ;;  %v651_v21 = vpop.f32.mrf.mxu3 }
  0xf3   : > { %v617_v22 = vadd.f32 %v616_v20, %v2308_v13  ;;  %v652_v23 = vadd.f32 %v651_v21, %v2308_v13  ;;  %v549_v24 = vpop.f32.mrf.mxu0  ;;  %v584_v25 = vpop.f32.mrf.mxu1 }
  0xf4   : > { %v550_v26 = vadd.f32 %v549_v24, %v2329_v19  ;;  %v585_v27 = vadd.f32 %v584_v25, %v2329_v19  ;;  %v2368_v39 = vpop.permute.xlu1 %497 }
  0xf5   : > { %1091 = vst [vmem:[%s2321_s6 + $0x10] sm:$0xff] %v617_v22 }
  0xf6   : > { %1092 = vst [vmem:[%s2321_s6 + $0x18] sm:$0xff] %v652_v23  ;;  %1660 = vmatmul.msk.f32.gmra.mxu0 %vm510_vm0, %v2188_v50  ;;  %1666 = vmatmul.msk.f32.gmra.mxu1 %vm510_vm0, %v2188_v50 }
  0xf7   : > { %1672 = vmatmul.msk.f32.gmra.mxu2 %vm510_vm0, %v2188_v50  ;;  %1678 = vmatmul.msk.f32.gmra.mxu3 %vm510_vm0, %v2188_v50  ;;  %1105 = vst [vmem:[%s2321_s6 + $0x80] sm:$0xff] %v550_v26 }
  0xf8   : > { %1106 = vst [vmem:[%s2321_s6 + $0x88] sm:$0xff] %v585_v27 }
  0xfa   : > { %v619_v29 = vpop.f32.mrf.mxu2  ;;  %v654_v30 = vpop.f32.mrf.mxu3 }
  0xfb   : > { %v620_v32 = vadd.f32 %v619_v29, %v2329_v19  ;;  %v655_v33 = vadd.f32 %v654_v30, %v2329_v19  ;;  %v552_v34 = vpop.f32.mrf.mxu0  ;;  %v587_v35 = vpop.f32.mrf.mxu1 }
  0xfc   : > { %v553_v36 = vadd.f32 %v552_v34, %v2346_v28  ;;  %v588_v37 = vadd.f32 %v587_v35, %v2346_v28 }
  0xfd   : > { %1107 = vst [vmem:[%s2321_s6 + $0x90] sm:$0xff] %v620_v32 }
  0xfe   : > { %1108 = vst [vmem:[%s2321_s6 + $0x98] sm:$0xff] %v655_v33  ;;  %1679 = vmatmul.msk.f32.vlgmr.msrb.gmra.mxu0 %vm510_vm0, %v2090_v18  ;;  %1685 = vmatmul.msk.f32.vlgmr.msrb.gmra.mxu1 %vm510_vm0, %v2090_v18 }
  0xff   : > { %1691 = vmatmul.msk.f32.vlgmr.msrb.gmra.mxu2 %vm510_vm0, %v2090_v18  ;;  %1697 = vmatmul.msk.f32.vlgmr.msrb.gmra.mxu3 %vm510_vm0, %v2090_v18  ;;  %1121 = vst [vmem:[%s2364_s18] sm:$0xff] %v553_v36 }
 0x100   : > { %1122 = vst [vmem:[%s2364_s18 + $0x8] sm:$0xff] %v588_v37 }
 0x102   : > { %v622_v40 = vpop.f32.mrf.mxu2  ;;  %v657_v41 = vpop.f32.mrf.mxu3 }
 0x103   : > { %v623_v42 = vadd.f32 %v622_v40, %v2346_v28  ;;  %v658_v43 = vadd.f32 %v657_v41, %v2346_v28  ;;  %v555_v45 = vpop.f32.mrf.mxu0  ;;  %v590_v18 = vpop.f32.mrf.mxu1 }
 0x104   : > { %v556_v46 = vadd.f32 %v555_v45, %v2368_v39  ;;  %v591_v48 = vadd.f32 %v590_v18, %v2368_v39 }
 0x105   : > { %1123 = vst [vmem:[%s2364_s18 + $0x10] sm:$0xff] %v623_v42 }
 0x106   : > { %1124 = vst [vmem:[%s2364_s18 + $0x18] sm:$0xff] %v658_v43  ;;  %1680 = vmatmul.msk.f32.gmra.mxu0 %vm510_vm0, %v2117_v31  ;;  %1686 = vmatmul.msk.f32.gmra.mxu1 %vm510_vm0, %v2117_v31 }
 0x107   : > { %1692 = vmatmul.msk.f32.gmra.mxu2 %vm510_vm0, %v2117_v31  ;;  %1698 = vmatmul.msk.f32.gmra.mxu3 %vm510_vm0, %v2117_v31  ;;  %1137 = vst [vmem:[%s2364_s18 + $0x80] sm:$0xff] %v556_v46  ;;  %v2407_v31 = vpop.permute.xlu2 %507 }
 0x108   : > { %1138 = vst [vmem:[%s2364_s18 + $0x88] sm:$0xff] %v591_v48 }
 0x10a   : > { %v625_v51 = vpop.f32.mrf.mxu2  ;;  %v660_v52 = vpop.f32.mrf.mxu3 }
 0x10b   : > { %v626_v53 = vadd.f32 %v625_v51, %v2368_v39  ;;  %v661_v54 = vadd.f32 %v660_v52, %v2368_v39  ;;  %v558_v55 = vpop.f32.mrf.mxu0  ;;  %v593_v56 = vpop.f32.mrf.mxu1 }
 0x10c   : > { %v559_v57 = vadd.f32 %v558_v55, %v2385_v49  ;;  %v594_v58 = vadd.f32 %v593_v56, %v2385_v49 }
 0x10d   : > { %1139 = vst [vmem:[%s2364_s18 + $0x90] sm:$0xff] %v626_v53 }
 0x10e   : > { %1140 = vst [vmem:[%s2364_s18 + $0x98] sm:$0xff] %v661_v54  ;;  %1681 = vmatmul.msk.f32.gmra.mxu0 %vm510_vm0, %v2138_v38  ;;  %1687 = vmatmul.msk.f32.gmra.mxu1 %vm510_vm0, %v2138_v38 }
 0x10f   : > { %1693 = vmatmul.msk.f32.gmra.mxu2 %vm510_vm0, %v2138_v38  ;;  %1699 = vmatmul.msk.f32.gmra.mxu3 %vm510_vm0, %v2138_v38  ;;  %1153 = vst [vmem:[%s2403_s28] sm:$0xff] %v559_v57 }
 0x110   : > { %1154 = vst [vmem:[%s2403_s28 + $0x8] sm:$0xff] %v594_v58 }
 0x112   : > { %v628_v59 = vpop.f32.mrf.mxu2  ;;  %v663_v60 = vpop.f32.mrf.mxu3 }
 0x113   : > { %v629_v61 = vadd.f32 %v628_v59, %v2385_v49  ;;  %v664_v62 = vadd.f32 %v663_v60, %v2385_v49  ;;  %v561_v63 = vpop.f32.mrf.mxu0  ;;  %v596_v38 = vpop.f32.mrf.mxu1 }
 0x114   : > { %v562_v0 = vadd.f32 %v561_v63, %v2407_v31  ;;  %v597_v1 = vadd.f32 %v596_v38, %v2407_v31 }
 0x115   : > { %1155 = vst [vmem:[%s2403_s28 + $0x10] sm:$0xff] %v629_v61 }
 0x116   : > { %1156 = vst [vmem:[%s2403_s28 + $0x18] sm:$0xff] %v664_v62  ;;  %1682 = vmatmul.msk.f32.gmra.mxu0 %vm510_vm0, %v2158_v44  ;;  %1688 = vmatmul.msk.f32.gmra.mxu1 %vm510_vm0, %v2158_v44 }
 0x117   : > { %1694 = vmatmul.msk.f32.gmra.mxu2 %vm510_vm0, %v2158_v44  ;;  %1700 = vmatmul.msk.f32.gmra.mxu3 %vm510_vm0, %v2158_v44  ;;  %1169 = vst [vmem:[%s2403_s28 + $0x80] sm:$0xff] %v562_v0 }
 0x118   : > { %1170 = vst [vmem:[%s2403_s28 + $0x88] sm:$0xff] %v597_v1 }
 0x11a   : > { %v631_v2 = vpop.f32.mrf.mxu2  ;;  %v666_v3 = vpop.f32.mrf.mxu3 }
 0x11b   : > { %v632_v4 = vadd.f32 %v631_v2, %v2407_v31  ;;  %v667_v5 = vadd.f32 %v666_v3, %v2407_v31  ;;  %v686_v6 = vpop.f32.mrf.mxu0  ;;  %v721_v7 = vpop.f32.mrf.mxu1 }
 0x11c   : > { %v687_v8 = vadd.f32 %v686_v6, %v2308_v13  ;;  %v722_v9 = vadd.f32 %v721_v7, %v2308_v13 }
 0x11d   : > { %1171 = vst [vmem:[%s2403_s28 + $0x90] sm:$0xff] %v632_v4 }
 0x11e   : > { %1172 = vst [vmem:[%s2403_s28 + $0x98] sm:$0xff] %v667_v5  ;;  %1683 = vmatmul.msk.f32.gmra.mxu0 %vm510_vm0, %v2173_v47  ;;  %1689 = vmatmul.msk.f32.gmra.mxu1 %vm510_vm0, %v2173_v47 }
 0x11f   : > { %1093 = vst [vmem:[%s2321_s6 + $0x20] sm:$0xff] %v687_v8  ;;  %1695 = vmatmul.msk.f32.gmra.mxu2 %vm510_vm0, %v2173_v47  ;;  %1701 = vmatmul.msk.f32.gmra.mxu3 %vm510_vm0, %v2173_v47 }
 0x120   : > { %1094 = vst [vmem:[%s2321_s6 + $0x28] sm:$0xff] %v722_v9 }
 0x122   : > { %v756_v44 = vpop.f32.mrf.mxu2  ;;  %v791_v10 = vpop.f32.mrf.mxu3 }
 0x123   : > { %v757_v11 = vadd.f32 %v756_v44, %v2308_v13  ;;  %v792_v12 = vadd.f32 %v791_v10, %v2308_v13  ;;  %v689_v14 = vpop.f32.mrf.mxu0  ;;  %v724_v15 = vpop.f32.mrf.mxu1 }
 0x124   : > { %v690_v16 = vadd.f32 %v689_v14, %v2329_v19  ;;  %v725_v17 = vadd.f32 %v724_v15, %v2329_v19 }
 0x125   : > { %1095 = vst [vmem:[%s2321_s6 + $0x30] sm:$0xff] %v757_v11 }
 0x126   : > { %1096 = vst [vmem:[%s2321_s6 + $0x38] sm:$0xff] %v792_v12  ;;  %1684 = vmatmul.msk.f32.gmra.mxu0 %vm510_vm0, %v2188_v50  ;;  %1690 = vmatmul.msk.f32.gmra.mxu1 %vm510_vm0, %v2188_v50 }
 0x127   : > { %1109 = vst [vmem:[%s2321_s6 + $0xa0] sm:$0xff] %v690_v16  ;;  %1696 = vmatmul.msk.f32.gmra.mxu2 %vm510_vm0, %v2188_v50  ;;  %1702 = vmatmul.msk.f32.gmra.mxu3 %vm510_vm0, %v2188_v50 }
 0x128   : > { %1110 = vst [vmem:[%s2321_s6 + $0xa8] sm:$0xff] %v725_v17 }
 0x12a   : > { %v759_v47 = vpop.f32.mrf.mxu2  ;;  %v794_v20 = vpop.f32.mrf.mxu3 }
 0x12b   : > { %v760_v21 = vadd.f32 %v759_v47, %v2329_v19  ;;  %v795_v22 = vadd.f32 %v794_v20, %v2329_v19  ;;  %v692_v23 = vpop.f32.mrf.mxu0  ;;  %v727_v24 = vpop.f32.mrf.mxu1 }
 0x12c   : > { %v693_v25 = vadd.f32 %v692_v23, %v2346_v28  ;;  %v728_v26 = vadd.f32 %v727_v24, %v2346_v28 }
 0x12d   : > { %1111 = vst [vmem:[%s2321_s6 + $0xb0] sm:$0xff] %v760_v21 }
 0x12e   : > { %1112 = vst [vmem:[%s2321_s6 + $0xb8] sm:$0xff] %v795_v22 }
 0x12f   : > { %1125 = vst [vmem:[%s2364_s18 + $0x20] sm:$0xff] %v693_v25 }
 0x130   : > { %1126 = vst [vmem:[%s2364_s18 + $0x28] sm:$0xff] %v728_v26 }
 0x132   : > { %v762_v50 = vpop.f32.mrf.mxu2  ;;  %v797_v27 = vpop.f32.mrf.mxu3 }
 0x133   : > { %v763_v29 = vadd.f32 %v762_v50, %v2346_v28  ;;  %v798_v30 = vadd.f32 %v797_v27, %v2346_v28  ;;  %v695_v32 = vpop.f32.mrf.mxu0  ;;  %v730_v33 = vpop.f32.mrf.mxu1 }
 0x134   : > { %v696_v34 = vadd.f32 %v695_v32, %v2368_v39  ;;  %v731_v35 = vadd.f32 %v730_v33, %v2368_v39 }
 0x135   : > { %1127 = vst [vmem:[%s2364_s18 + $0x30] sm:$0xff] %v763_v29 }
 0x136   : > { %1128 = vst [vmem:[%s2364_s18 + $0x38] sm:$0xff] %v798_v30 }
 0x137   : > { %1141 = vst [vmem:[%s2364_s18 + $0xa0] sm:$0xff] %v696_v34 }
 0x138   : > { %1142 = vst [vmem:[%s2364_s18 + $0xa8] sm:$0xff] %v731_v35 }
 0x13a   : > { %v765_v36 = vpop.f32.mrf.mxu2  ;;  %v800_v37 = vpop.f32.mrf.mxu3 }
 0x13b   : > { %v766_v40 = vadd.f32 %v765_v36, %v2368_v39  ;;  %v801_v41 = vadd.f32 %v800_v37, %v2368_v39  ;;  %v698_v42 = vpop.f32.mrf.mxu0  ;;  %v733_v43 = vpop.f32.mrf.mxu1 }
 0x13c   : > { %v699_v45 = vadd.f32 %v698_v42, %v2385_v49  ;;  %v734_v18 = vadd.f32 %v733_v43, %v2385_v49 }
 0x13d   : > { %1143 = vst [vmem:[%s2364_s18 + $0xb0] sm:$0xff] %v766_v40 }
 0x13e   : > { %1144 = vst [vmem:[%s2364_s18 + $0xb8] sm:$0xff] %v801_v41 }
 0x13f   : > { %1157 = vst [vmem:[%s2403_s28 + $0x20] sm:$0xff] %v699_v45 }
 0x140   : > { %1158 = vst [vmem:[%s2403_s28 + $0x28] sm:$0xff] %v734_v18 }
 0x142   : > { %v768_v46 = vpop.f32.mrf.mxu2  ;;  %v803_v48 = vpop.f32.mrf.mxu3 }
 0x143   : > { %v769_v51 = vadd.f32 %v768_v46, %v2385_v49  ;;  %v804_v52 = vadd.f32 %v803_v48, %v2385_v49  ;;  %v701_v53 = vpop.f32.mrf.mxu0  ;;  %v736_v54 = vpop.f32.mrf.mxu1 }
 0x144   : > { %v702_v55 = vadd.f32 %v701_v53, %v2407_v31  ;;  %v737_v56 = vadd.f32 %v736_v54, %v2407_v31 }
 0x145   : > { %1159 = vst [vmem:[%s2403_s28 + $0x30] sm:$0xff] %v769_v51 }
 0x146   : > { %1160 = vst [vmem:[%s2403_s28 + $0x38] sm:$0xff] %v804_v52 }
 0x147   : > { %1173 = vst [vmem:[%s2403_s28 + $0xa0] sm:$0xff] %v702_v55 }
 0x148   : > { %1174 = vst [vmem:[%s2403_s28 + $0xa8] sm:$0xff] %v737_v56 }
 0x14a   : > { %v771_v57 = vpop.f32.mrf.mxu2  ;;  %v806_v58 = vpop.f32.mrf.mxu3 }
 0x14b   : > { %v772_v59 = vadd.f32 %v771_v57, %v2407_v31  ;;  %v807_v60 = vadd.f32 %v806_v58, %v2407_v31  ;;  %v826_v61 = vpop.f32.mrf.mxu0  ;;  %v861_v62 = vpop.f32.mrf.mxu1 }
 0x14c   : > { %v827_v63 = vadd.f32 %v826_v61, %v2308_v13  ;;  %v862_v38 = vadd.f32 %v861_v62, %v2308_v13 }
 0x14d   : > { %1175 = vst [vmem:[%s2403_s28 + $0xb0] sm:$0xff] %v772_v59 }
 0x14e   : > { %1176 = vst [vmem:[%s2403_s28 + $0xb8] sm:$0xff] %v807_v60 }
 0x14f   : > { %1097 = vst [vmem:[%s2321_s6 + $0x40] sm:$0xff] %v827_v63 }
 0x150   : > { %1098 = vst [vmem:[%s2321_s6 + $0x48] sm:$0xff] %v862_v38 }
 0x152   : > { %v896_v0 = vpop.f32.mrf.mxu2  ;;  %v931_v1 = vpop.f32.mrf.mxu3 }
 0x153   : > { %v897_v2 = vadd.f32 %v896_v0, %v2308_v13  ;;  %v932_v3 = vadd.f32 %v931_v1, %v2308_v13  ;;  %v829_v4 = vpop.f32.mrf.mxu0  ;;  %v864_v5 = vpop.f32.mrf.mxu1 }
 0x154   : > { %v830_v6 = vadd.f32 %v829_v4, %v2329_v19  ;;  %v865_v7 = vadd.f32 %v864_v5, %v2329_v19 }
 0x155   : > { %1099 = vst [vmem:[%s2321_s6 + $0x50] sm:$0xff] %v897_v2 }
 0x156   : > { %1100 = vst [vmem:[%s2321_s6 + $0x58] sm:$0xff] %v932_v3 }
 0x157   : > { %1113 = vst [vmem:[%s2321_s6 + $0xc0] sm:$0xff] %v830_v6 }
 0x158   : > { %1114 = vst [vmem:[%s2321_s6 + $0xc8] sm:$0xff] %v865_v7 }
 0x15a   : > { %v899_v8 = vpop.f32.mrf.mxu2  ;;  %v934_v9 = vpop.f32.mrf.mxu3 }
 0x15b   : > { %v900_v44 = vadd.f32 %v899_v8, %v2329_v19  ;;  %v935_v10 = vadd.f32 %v934_v9, %v2329_v19  ;;  %v832_v11 = vpop.f32.mrf.mxu0  ;;  %v867_v12 = vpop.f32.mrf.mxu1 }
 0x15c   : > { %v833_v14 = vadd.f32 %v832_v11, %v2346_v28  ;;  %v868_v15 = vadd.f32 %v867_v12, %v2346_v28 }
 0x15d   : > { %1115 = vst [vmem:[%s2321_s6 + $0xd0] sm:$0xff] %v900_v44 }
 0x15e   : > { %1116 = vst [vmem:[%s2321_s6 + $0xd8] sm:$0xff] %v935_v10 }
 0x15f   : > { %1129 = vst [vmem:[%s2364_s18 + $0x40] sm:$0xff] %v833_v14 }
 0x160   : > { %1130 = vst [vmem:[%s2364_s18 + $0x48] sm:$0xff] %v868_v15 }
 0x162   : > { %v902_v16 = vpop.f32.mrf.mxu2  ;;  %v937_v17 = vpop.f32.mrf.mxu3 }
 0x163   : > { %v903_v47 = vadd.f32 %v902_v16, %v2346_v28  ;;  %v938_v20 = vadd.f32 %v937_v17, %v2346_v28  ;;  %v835_v21 = vpop.f32.mrf.mxu0  ;;  %v870_v22 = vpop.f32.mrf.mxu1 }
 0x164   : > { %v836_v23 = vadd.f32 %v835_v21, %v2368_v39  ;;  %v871_v24 = vadd.f32 %v870_v22, %v2368_v39 }
 0x165   : > { %1131 = vst [vmem:[%s2364_s18 + $0x50] sm:$0xff] %v903_v47 }
 0x166   : > { %1132 = vst [vmem:[%s2364_s18 + $0x58] sm:$0xff] %v938_v20 }
 0x167   : > { %1145 = vst [vmem:[%s2364_s18 + $0xc0] sm:$0xff] %v836_v23 }
 0x168   : > { %1146 = vst [vmem:[%s2364_s18 + $0xc8] sm:$0xff] %v871_v24 }
 0x16a   : > { %v905_v25 = vpop.f32.mrf.mxu2  ;;  %v940_v26 = vpop.f32.mrf.mxu3 }
 0x16b   : > { %v906_v50 = vadd.f32 %v905_v25, %v2368_v39  ;;  %v941_v27 = vadd.f32 %v940_v26, %v2368_v39  ;;  %v838_v29 = vpop.f32.mrf.mxu0  ;;  %v873_v30 = vpop.f32.mrf.mxu1 }
 0x16c   : > { %v839_v32 = vadd.f32 %v838_v29, %v2385_v49  ;;  %v874_v33 = vadd.f32 %v873_v30, %v2385_v49 }
 0x16d   : > { %1147 = vst [vmem:[%s2364_s18 + $0xd0] sm:$0xff] %v906_v50 }
 0x16e   : > { %1148 = vst [vmem:[%s2364_s18 + $0xd8] sm:$0xff] %v941_v27 }
 0x16f   : > { %1161 = vst [vmem:[%s2403_s28 + $0x40] sm:$0xff] %v839_v32  ;;  %v1221_v32 = vld [vmem:[%s2321_s6 + $0x10] sm:$0xff] (%p1912_p6) }
 0x170   : > { %1162 = vst [vmem:[%s2403_s28 + $0x48] sm:$0xff] %v874_v33  ;;  %v1223_v33 = vld [vmem:[%s2321_s6 + $0x18] sm:$0xff] (%p1912_p6) }
 0x171   : > { %1222 = vst [vmem:[%s2598_s15 + $0x10] sm:$0xff] (%p1912_p6), %v1221_v32 }
 0x172   : > { %v908_v34 = vpop.f32.mrf.mxu2  ;;  %v943_v35 = vpop.f32.mrf.mxu3  ;;  %1224 = vst [vmem:[%s2598_s15 + $0x18] sm:$0xff] (%p1912_p6), %v1223_v33 }
 0x173   : > { %v909_v36 = vadd.f32 %v908_v34, %v2385_v49  ;;  %v944_v37 = vadd.f32 %v943_v35, %v2385_v49  ;;  %v841_v40 = vpop.f32.mrf.mxu0  ;;  %v876_v41 = vpop.f32.mrf.mxu1  ;;  %v1225_v34 = vld [vmem:[%s2321_s6 + $0x20] sm:$0xff] (%p1912_p6)  ;;  %v1227_v35 = vld [vmem:[%s2321_s6 + $0x28] sm:$0xff] (%p1912_p6) }
 0x174   : > { %v842_v42 = vadd.f32 %v841_v40, %v2407_v31  ;;  %v877_v43 = vadd.f32 %v876_v41, %v2407_v31  ;;  %1226 = vst [vmem:[%s2598_s15 + $0x20] sm:$0xff] (%p1912_p6), %v1225_v34  ;;  %v1233_v40 = vld [vmem:[%s2321_s6 + $0x40] sm:$0xff] (%p1912_p6)  ;;  %v1235_v41 = vld [vmem:[%s2321_s6 + $0x48] sm:$0xff] (%p1912_p6) }
 0x175   : > { %1163 = vst [vmem:[%s2403_s28 + $0x50] sm:$0xff] %v909_v36  ;;  %v1229_v36 = vld [vmem:[%s2321_s6 + $0x30] sm:$0xff] (%p1912_p6) }
 0x176   : > { %1164 = vst [vmem:[%s2403_s28 + $0x58] sm:$0xff] %v944_v37  ;;  %v1231_v37 = vld [vmem:[%s2321_s6 + $0x38] sm:$0xff] (%p1912_p6) }
 0x177   : > { %1177 = vst [vmem:[%s2403_s28 + $0xc0] sm:$0xff] %v842_v42  ;;  %v1237_v42 = vld [vmem:[%s2321_s6 + $0x50] sm:$0xff] (%p1912_p6) }
 0x178   : > { %1178 = vst [vmem:[%s2403_s28 + $0xc8] sm:$0xff] %v877_v43  ;;  %v1239_v43 = vld [vmem:[%s2321_s6 + $0x58] sm:$0xff] (%p1912_p6) }
 0x179   : > { %1228 = vst [vmem:[%s2598_s15 + $0x28] sm:$0xff] (%p1912_p6), %v1227_v35 }
 0x17a   : > { %v911_v45 = vpop.f32.mrf.mxu2  ;;  %v946_v18 = vpop.f32.mrf.mxu3  ;;  %1230 = vst [vmem:[%s2598_s15 + $0x30] sm:$0xff] (%p1912_p6), %v1229_v36 }
 0x17b   : > { %v912_v46 = vadd.f32 %v911_v45, %v2407_v31  ;;  %v947_v48 = vadd.f32 %v946_v18, %v2407_v31  ;;  %v966_v51 = vpop.f32.mrf.mxu0  ;;  %v1001_v52 = vpop.f32.mrf.mxu1  ;;  %1232 = vst [vmem:[%s2598_s15 + $0x38] sm:$0xff] (%p1912_p6), %v1231_v37 }
 0x17c   : > { %v967_v53 = vadd.f32 %v966_v51, %v2308_v13  ;;  %v1002_v54 = vadd.f32 %v1001_v52, %v2308_v13  ;;  %1234 = vst [vmem:[%s2598_s15 + $0x40] sm:$0xff] (%p1912_p6), %v1233_v40  ;;  %v1249_v51 = vld [vmem:[%s2321_s6 + $0x80] sm:$0xff] (%p1912_p6)  ;;  %v1251_v52 = vld [vmem:[%s2321_s6 + $0x88] sm:$0xff] (%p1912_p6) }
 0x17d   : > { %1179 = vst [vmem:[%s2403_s28 + $0xd0] sm:$0xff] %v912_v46 }
 0x17e   : > { %1180 = vst [vmem:[%s2403_s28 + $0xd8] sm:$0xff] %v947_v48 }
 0x17f   : > { %1101 = vst [vmem:[%s2321_s6 + $0x60] sm:$0xff] %v967_v53  ;;  %v1253_v53 = vld [vmem:[%s2321_s6 + $0x90] sm:$0xff] (%p1912_p6) }
 0x180   : > { %1102 = vst [vmem:[%s2321_s6 + $0x68] sm:$0xff] %v1002_v54  ;;  %v1255_v54 = vld [vmem:[%s2321_s6 + $0x98] sm:$0xff] (%p1912_p6) }
 0x181   : > { %1236 = vst [vmem:[%s2598_s15 + $0x48] sm:$0xff] (%p1912_p6), %v1235_v41 }
 0x182   : > { %v1036_v55 = vpop.f32.mrf.mxu2  ;;  %v1071_v56 = vpop.f32.mrf.mxu3  ;;  %1238 = vst [vmem:[%s2598_s15 + $0x50] sm:$0xff] (%p1912_p6), %v1237_v42 }
 0x183   : > { %v1037_v57 = vadd.f32 %v1036_v55, %v2308_v13  ;;  %v1072_v58 = vadd.f32 %v1071_v56, %v2308_v13  ;;  %v969_v59 = vpop.f32.mrf.mxu0  ;;  %v1004_v60 = vpop.f32.mrf.mxu1  ;;  %1240 = vst [vmem:[%s2598_s15 + $0x58] sm:$0xff] (%p1912_p6), %v1239_v43  ;;  %v1257_v55 = vld [vmem:[%s2321_s6 + $0xa0] sm:$0xff] (%p1912_p6)  ;;  %v1259_v56 = vld [vmem:[%s2321_s6 + $0xa8] sm:$0xff] (%p1912_p6) }
 0x184   : > { %v970_v61 = vadd.f32 %v969_v59, %v2329_v19  ;;  %v1005_v62 = vadd.f32 %v1004_v60, %v2329_v19  ;;  %1250 = vst [vmem:[%s2598_s15 + $0x100] sm:$0xff] (%p1912_p6), %v1249_v51  ;;  %v1265_v59 = vld [vmem:[%s2321_s6 + $0xc0] sm:$0xff] (%p1912_p6)  ;;  %v1267_v60 = vld [vmem:[%s2321_s6 + $0xc8] sm:$0xff] (%p1912_p6) }
 0x185   : > { %1103 = vst [vmem:[%s2321_s6 + $0x70] sm:$0xff] %v1037_v57  ;;  %v1261_v57 = vld [vmem:[%s2321_s6 + $0xb0] sm:$0xff] (%p1912_p6) }
 0x186   : > { %1104 = vst [vmem:[%s2321_s6 + $0x78] sm:$0xff] %v1072_v58  ;;  %v1241_v45 = vld [vmem:[%s2321_s6 + $0x60] sm:$0xff] (%p1912_p6)  ;;  %v1263_v58 = vld [vmem:[%s2321_s6 + $0xb8] sm:$0xff] (%p1912_p6) }
 0x187   : > { %1117 = vst [vmem:[%s2321_s6 + $0xe0] sm:$0xff] %v970_v61  ;;  %v1243_v18 = vld [vmem:[%s2321_s6 + $0x68] sm:$0xff] (%p1912_p6)  ;;  %v1269_v61 = vld [vmem:[%s2321_s6 + $0xd0] sm:$0xff] (%p1912_p6) }
 0x188   : > { %1118 = vst [vmem:[%s2321_s6 + $0xe8] sm:$0xff] %v1005_v62  ;;  %v1271_v62 = vld [vmem:[%s2321_s6 + $0xd8] sm:$0xff] (%p1912_p6) }
 0x189   : > { %1242 = vst [vmem:[%s2598_s15 + $0x60] sm:$0xff] (%p1912_p6), %v1241_v45 }
 0x18a   : > { %v1039_v63 = vpop.f32.mrf.mxu2  ;;  %v1074_v38 = vpop.f32.mrf.mxu3  ;;  %1244 = vst [vmem:[%s2598_s15 + $0x68] sm:$0xff] (%p1912_p6), %v1243_v18 }
 0x18b   : > { %v1040_v0 = vadd.f32 %v1039_v63, %v2329_v19  ;;  %v1075_v13 = vadd.f32 %v1074_v38, %v2329_v19  ;;  %v972_v1 = vpop.f32.mrf.mxu0  ;;  %v1007_v2 = vpop.f32.mrf.mxu1  ;;  %1252 = vst [vmem:[%s2598_s15 + $0x108] sm:$0xff] (%p1912_p6), %v1251_v52 }
 0x18c   : > { %v973_v3 = vadd.f32 %v972_v1, %v2346_v28  ;;  %v1008_v4 = vadd.f32 %v1007_v2, %v2346_v28  ;;  %v1245_v46 = vld [vmem:[%s2321_s6 + $0x70] sm:$0xff] (%p1912_p6)  ;;  %1254 = vst [vmem:[%s2598_s15 + $0x110] sm:$0xff] (%p1912_p6), %v1253_v53 }
 0x18d   : > { %1119 = vst [vmem:[%s2321_s6 + $0xf0] sm:$0xff] %v1040_v0  ;;  %v1247_v48 = vld [vmem:[%s2321_s6 + $0x78] sm:$0xff] (%p1912_p6) }
 0x18e   : > { %1120 = vst [vmem:[%s2321_s6 + $0xf8] sm:$0xff] %v1075_v13  ;;  %v1273_v63 = vld [vmem:[%s2321_s6 + $0xe0] sm:$0xff] (%p1912_p6) }
 0x18f   : > { %1133 = vst [vmem:[%s2364_s18 + $0x60] sm:$0xff] %v973_v3  ;;  %v1275_v38 = vld [vmem:[%s2321_s6 + $0xe8] sm:$0xff] (%p1912_p6) }
 0x190   : > { %1134 = vst [vmem:[%s2364_s18 + $0x68] sm:$0xff] %v1008_v4 }
 0x191   : > { %1246 = vst [vmem:[%s2598_s15 + $0x70] sm:$0xff] (%p1912_p6), %v1245_v46 }
 0x192   : > { %v1042_v5 = vpop.f32.mrf.mxu2  ;;  %v1077_v6 = vpop.f32.mrf.mxu3  ;;  %1248 = vst [vmem:[%s2598_s15 + $0x78] sm:$0xff] (%p1912_p6), %v1247_v48 }
 0x193   : > { %v1043_v7 = vadd.f32 %v1042_v5, %v2346_v28  ;;  %v1078_v19 = vadd.f32 %v1077_v6, %v2346_v28  ;;  %v975_v8 = vpop.f32.mrf.mxu0  ;;  %v1010_v9 = vpop.f32.mrf.mxu1  ;;  %1256 = vst [vmem:[%s2598_s15 + $0x118] sm:$0xff] (%p1912_p6), %v1255_v54 }
 0x194   : > { %v976_v44 = vadd.f32 %v975_v8, %v2368_v39  ;;  %v1011_v10 = vadd.f32 %v1010_v9, %v2368_v39  ;;  %1258 = vst [vmem:[%s2598_s15 + $0x120] sm:$0xff] (%p1912_p6), %v1257_v55  ;;  %v1277_v0 = vld [vmem:[%s2321_s6 + $0xf0] sm:$0xff] (%p1912_p6) }
 0x195   : > { %1135 = vst [vmem:[%s2364_s18 + $0x70] sm:$0xff] %v1043_v7  ;;  %v1279_v13 = vld [vmem:[%s2321_s6 + $0xf8] sm:$0xff] (%p1912_p6) }
 0x196   : > { %1136 = vst [vmem:[%s2364_s18 + $0x78] sm:$0xff] %v1078_v19 }
 0x197   : > { %1149 = vst [vmem:[%s2364_s18 + $0xe0] sm:$0xff] %v976_v44 }
 0x198   : > { %1150 = vst [vmem:[%s2364_s18 + $0xe8] sm:$0xff] %v1011_v10 }
 0x199   : > { %1260 = vst [vmem:[%s2598_s15 + $0x128] sm:$0xff] (%p1912_p6), %v1259_v56 }
 0x19a   : > { %v1045_v11 = vpop.f32.mrf.mxu2  ;;  %v1080_v12 = vpop.f32.mrf.mxu3  ;;  %1262 = vst [vmem:[%s2598_s15 + $0x130] sm:$0xff] (%p1912_p6), %v1261_v57 }
 0x19b   : > { %v1046_v14 = vadd.f32 %v1045_v11, %v2368_v39  ;;  %v1081_v28 = vadd.f32 %v1080_v12, %v2368_v39  ;;  %v978_v15 = vpop.f32.mrf.mxu0  ;;  %v1013_v16 = vpop.f32.mrf.mxu1  ;;  %1264 = vst [vmem:[%s2598_s15 + $0x138] sm:$0xff] (%p1912_p6), %v1263_v58 }
 0x19c   : > { %v979_v17 = vadd.f32 %v978_v15, %v2385_v49  ;;  %v1014_v47 = vadd.f32 %v1013_v16, %v2385_v49  ;;  %1266 = vst [vmem:[%s2598_s15 + $0x140] sm:$0xff] (%p1912_p6), %v1265_v59 }
 0x19d   : > { %1151 = vst [vmem:[%s2364_s18 + $0xf0] sm:$0xff] %v1046_v14 }
 0x19e   : > { %1152 = vst [vmem:[%s2364_s18 + $0xf8] sm:$0xff] %v1081_v28 }
 0x19f   : > { %1165 = vst [vmem:[%s2403_s28 + $0x60] sm:$0xff] %v979_v17 }
 0x1a0   : > { %1166 = vst [vmem:[%s2403_s28 + $0x68] sm:$0xff] %v1014_v47 }
 0x1a1   : > { %1268 = vst [vmem:[%s2598_s15 + $0x148] sm:$0xff] (%p1912_p6), %v1267_v60 }
 0x1a2   : > { %v1048_v20 = vpop.f32.mrf.mxu2  ;;  %v1083_v21 = vpop.f32.mrf.mxu3  ;;  %1270 = vst [vmem:[%s2598_s15 + $0x150] sm:$0xff] (%p1912_p6), %v1269_v61 }
 0x1a3   : > { %v1049_v39 = vadd.f32 %v1048_v20, %v2385_v49  ;;  %v1084_v22 = vadd.f32 %v1083_v21, %v2385_v49  ;;  %v981_v23 = vpop.f32.mrf.mxu0  ;;  %v1016_v24 = vpop.f32.mrf.mxu1  ;;  %v1217_v49 = vld [vmem:[%s2321_s6] sm:$0xff] (%p1912_p6)  ;;  %1272 = vst [vmem:[%s2598_s15 + $0x158] sm:$0xff] (%p1912_p6), %v1271_v62 }
 0x1a4   : > { %v982_v25 = vadd.f32 %v981_v23, %v2407_v31  ;;  %v1017_v26 = vadd.f32 %v1016_v24, %v2407_v31  ;;  %1218 = vst [vmem:[%s2598_s15] sm:$0xff] (%p1912_p6), %v1217_v49 }
 0x1a5   : > { %1167 = vst [vmem:[%s2403_s28 + $0x70] sm:$0xff] %v1049_v39 }
 0x1a6   : > { %1168 = vst [vmem:[%s2403_s28 + $0x78] sm:$0xff] %v1084_v22 }
 0x1a7   : > { %1181 = vst [vmem:[%s2403_s28 + $0xe0] sm:$0xff] %v982_v25 }
 0x1a8   : > { %1182 = vst [vmem:[%s2403_s28 + $0xe8] sm:$0xff] %v1017_v26 }
 0x1a9   : > { %1274 = vst [vmem:[%s2598_s15 + $0x160] sm:$0xff] (%p1912_p6), %v1273_v63 }
 0x1aa   : > { %v1051_v50 = vpop.f32.mrf.mxu2  ;;  %v1086_v27 = vpop.f32.mrf.mxu3  ;;  %1199 = sbr.rel (!%p1912_p6) target bundleno = 432 (0x1b0), region = 59  ;;  %1276 = vst [vmem:[%s2598_s15 + $0x168] sm:$0xff] (%p1912_p6), %v1275_v38 }
 0x1ab   : > { %v1052_v29 = vadd.f32 %v1051_v50, %v2407_v31  ;;  %v1087_v30 = vadd.f32 %v1086_v27, %v2407_v31  ;;  %v1219_v31 = vld [vmem:[%s2321_s6 + $0x8] sm:$0xff] (%p1912_p6)  ;;  %1278 = vst [vmem:[%s2598_s15 + $0x170] sm:$0xff] (%p1912_p6), %v1277_v0 }
 0x1ac   : > { %1220 = vst [vmem:[%s2598_s15 + $0x8] sm:$0xff] (%p1912_p6), %v1219_v31 }
 0x1ad   : > { %1183 = vst [vmem:[%s2403_s28 + $0xf0] sm:$0xff] %v1052_v29 }
 0x1ae   : > { %1184 = vst [vmem:[%s2403_s28 + $0xf8] sm:$0xff] %v1087_v30 }
 0x1af   : > { %1280 = vst [vmem:[%s2598_s15 + $0x178] sm:$0xff] %v1279_v13 }
 0x1b0 PF: > { %1286 = sbr.rel (!%p1912_p6) target bundleno = 469 (0x1d5), region = 82  ;;  %s1709_s16 = sshll.u32 (%p1912_p6), %s1815_s20, 4  ;;  %v1304_v1 = vld [vmem:[%s2364_s18] sm:$0xff] (%p1912_p6)  ;;  %v1306_v2 = vld [vmem:[%s2364_s18 + $0x8] sm:$0xff] (%p1912_p6)  ;;  %v1308_v3 = vld [vmem:[%s2364_s18 + $0x10] sm:$0xff] (%p1912_p6) }
 0x1b1   : > { %s1710_s17 = sshll.u32 (%p1912_p6), %s1819_s21, 6  ;;  %v1310_v4 = vld [vmem:[%s2364_s18 + $0x18] sm:$0xff] (%p1912_p6)  ;;  %v1312_v5 = vld [vmem:[%s2364_s18 + $0x20] sm:$0xff] (%p1912_p6)  ;;  %v1314_v6 = vld [vmem:[%s2364_s18 + $0x28] sm:$0xff] (%p1912_p6) }
 0x1b2   : > { %s1289_s27 = sadd.s32 (%p1912_p6), %s1710_s17, %s1709_s16  ;;  %v1316_v7 = vld [vmem:[%s2364_s18 + $0x30] sm:$0xff] (%p1912_p6)  ;;  %v1318_v19 = vld [vmem:[%s2364_s18 + $0x38] sm:$0xff] (%p1912_p6)  ;;  %v1320_v8 = vld [vmem:[%s2364_s18 + $0x40] sm:$0xff] (%p1912_p6) }
 0x1b3   : > { %s1711_s30 = sshll.u32 (%p1912_p6), %s1289_s27, 3  ;;  %v1322_v9 = vld [vmem:[%s2364_s18 + $0x48] sm:$0xff] (%p1912_p6)  ;;  %v1324_v44 = vld [vmem:[%s2364_s18 + $0x50] sm:$0xff] (%p1912_p6)  ;;  %v1326_v10 = vld [vmem:[%s2364_s18 + $0x58] sm:$0xff] (%p1912_p6) }
 0x1b4   : > { %s2671_s7 = scalar_lea.vmem (%p1912_p6), %s2833_s4, %s1711_s30  ;;  %v1328_v11 = vld [vmem:[%s2364_s18 + $0x60] sm:$0xff] (%p1912_p6)  ;;  %v1330_v12 = vld [vmem:[%s2364_s18 + $0x68] sm:$0xff] (%p1912_p6)  ;;  %v1332_v14 = vld [vmem:[%s2364_s18 + $0x70] sm:$0xff] (%p1912_p6) }
 0x1b5   : > { %1305 = vst [vmem:[%s2671_s7] sm:$0xff] %v1304_v1  ;;  %v1334_v28 = vld [vmem:[%s2364_s18 + $0x78] sm:$0xff]  ;;  %v1336_v15 = vld [vmem:[%s2364_s18 + $0x80] sm:$0xff]  ;;  %v1338_v16 = vld [vmem:[%s2364_s18 + $0x88] sm:$0xff] }
 0x1b6   : > { %1307 = vst [vmem:[%s2671_s7 + $0x8] sm:$0xff] %v1306_v2  ;;  %v1340_v17 = vld [vmem:[%s2364_s18 + $0x90] sm:$0xff]  ;;  %v1342_v47 = vld [vmem:[%s2364_s18 + $0x98] sm:$0xff]  ;;  %v1344_v20 = vld [vmem:[%s2364_s18 + $0xa0] sm:$0xff] }
 0x1b7   : > { %1309 = vst [vmem:[%s2671_s7 + $0x10] sm:$0xff] %v1308_v3  ;;  %v1346_v21 = vld [vmem:[%s2364_s18 + $0xa8] sm:$0xff]  ;;  %v1348_v39 = vld [vmem:[%s2364_s18 + $0xb0] sm:$0xff]  ;;  %v1350_v22 = vld [vmem:[%s2364_s18 + $0xb8] sm:$0xff] }
 0x1b8   : > { %1311 = vst [vmem:[%s2671_s7 + $0x18] sm:$0xff] %v1310_v4  ;;  %v1352_v23 = vld [vmem:[%s2364_s18 + $0xc0] sm:$0xff]  ;;  %v1354_v24 = vld [vmem:[%s2364_s18 + $0xc8] sm:$0xff]  ;;  %v1356_v25 = vld [vmem:[%s2364_s18 + $0xd0] sm:$0xff] }
 0x1b9   : > { %1313 = vst [vmem:[%s2671_s7 + $0x20] sm:$0xff] %v1312_v5  ;;  %v1358_v26 = vld [vmem:[%s2364_s18 + $0xd8] sm:$0xff]  ;;  %v1360_v50 = vld [vmem:[%s2364_s18 + $0xe0] sm:$0xff]  ;;  %v1362_v27 = vld [vmem:[%s2364_s18 + $0xe8] sm:$0xff] }
 0x1ba   : > { %1315 = vst [vmem:[%s2671_s7 + $0x28] sm:$0xff] %v1314_v6  ;;  %v1364_v29 = vld [vmem:[%s2364_s18 + $0xf0] sm:$0xff]  ;;  %v1366_v30 = vld [vmem:[%s2364_s18 + $0xf8] sm:$0xff] }
 0x1bb   : > { %1317 = vst [vmem:[%s2671_s7 + $0x30] sm:$0xff] %v1316_v7 }
 0x1bc   : > { %1319 = vst [vmem:[%s2671_s7 + $0x38] sm:$0xff] %v1318_v19 }
 0x1bd   : > { %1321 = vst [vmem:[%s2671_s7 + $0x40] sm:$0xff] %v1320_v8 }
 0x1be   : > { %1323 = vst [vmem:[%s2671_s7 + $0x48] sm:$0xff] %v1322_v9 }
 0x1bf   : > { %1325 = vst [vmem:[%s2671_s7 + $0x50] sm:$0xff] %v1324_v44 }
 0x1c0   : > { %1327 = vst [vmem:[%s2671_s7 + $0x58] sm:$0xff] %v1326_v10 }
 0x1c1   : > { %1329 = vst [vmem:[%s2671_s7 + $0x60] sm:$0xff] %v1328_v11 }
 0x1c2   : > { %1331 = vst [vmem:[%s2671_s7 + $0x68] sm:$0xff] %v1330_v12 }
 0x1c3   : > { %1333 = vst [vmem:[%s2671_s7 + $0x70] sm:$0xff] %v1332_v14 }
 0x1c4   : > { %1335 = vst [vmem:[%s2671_s7 + $0x78] sm:$0xff] %v1334_v28 }
 0x1c5   : > { %1337 = vst [vmem:[%s2671_s7 + $0x100] sm:$0xff] %v1336_v15 }
 0x1c6   : > { %1339 = vst [vmem:[%s2671_s7 + $0x108] sm:$0xff] %v1338_v16 }
 0x1c7   : > { %1341 = vst [vmem:[%s2671_s7 + $0x110] sm:$0xff] %v1340_v17 }
 0x1c8   : > { %1343 = vst [vmem:[%s2671_s7 + $0x118] sm:$0xff] %v1342_v47 }
 0x1c9   : > { %1345 = vst [vmem:[%s2671_s7 + $0x120] sm:$0xff] %v1344_v20 }
 0x1ca   : > { %1347 = vst [vmem:[%s2671_s7 + $0x128] sm:$0xff] %v1346_v21 }
 0x1cb   : > { %1349 = vst [vmem:[%s2671_s7 + $0x130] sm:$0xff] %v1348_v39 }
 0x1cc   : > { %1351 = vst [vmem:[%s2671_s7 + $0x138] sm:$0xff] %v1350_v22 }
 0x1cd   : > { %1353 = vst [vmem:[%s2671_s7 + $0x140] sm:$0xff] %v1352_v23 }
 0x1ce   : > { %1355 = vst [vmem:[%s2671_s7 + $0x148] sm:$0xff] %v1354_v24 }
 0x1cf   : > { %1357 = vst [vmem:[%s2671_s7 + $0x150] sm:$0xff] %v1356_v25 }
 0x1d0   : > { %1359 = vst [vmem:[%s2671_s7 + $0x158] sm:$0xff] %v1358_v26 }
 0x1d1   : > { %1361 = vst [vmem:[%s2671_s7 + $0x160] sm:$0xff] %v1360_v50 }
 0x1d2   : > { %1363 = vst [vmem:[%s2671_s7 + $0x168] sm:$0xff] %v1362_v27 }
 0x1d3   : > { %1365 = vst [vmem:[%s2671_s7 + $0x170] sm:$0xff] %v1364_v29 }
 0x1d4   : > { %1367 = vst [vmem:[%s2671_s7 + $0x178] sm:$0xff] %v1366_v30 }
 0x1d5 PF: > { %1373 = sbr.rel (!%p1912_p6) target bundleno = 506 (0x1fa), region = 105  ;;  %s1712_s10 = sshll.u32 (%p1912_p6), %s1815_s20, 4  ;;  %v1391_v49 = vld [vmem:[%s2403_s28] sm:$0xff] (%p1912_p6)  ;;  %v1393_v31 = vld [vmem:[%s2403_s28 + $0x8] sm:$0xff] (%p1912_p6)  ;;  %v1395_v32 = vld [vmem:[%s2403_s28 + $0x10] sm:$0xff] (%p1912_p6) }
 0x1d6   : > { %s1713_s11 = sshll.u32 (%p1912_p6), %s1819_s21, 6  ;;  %v1397_v33 = vld [vmem:[%s2403_s28 + $0x18] sm:$0xff] (%p1912_p6)  ;;  %v1399_v34 = vld [vmem:[%s2403_s28 + $0x20] sm:$0xff] (%p1912_p6)  ;;  %v1401_v35 = vld [vmem:[%s2403_s28 + $0x28] sm:$0xff] (%p1912_p6) }
 0x1d7   : > { %s1376_s18 = sadd.s32 (%p1912_p6), %s1713_s11, %s1712_s10  ;;  %v1403_v36 = vld [vmem:[%s2403_s28 + $0x30] sm:$0xff] (%p1912_p6)  ;;  %v1405_v37 = vld [vmem:[%s2403_s28 + $0x38] sm:$0xff] (%p1912_p6)  ;;  %v1407_v40 = vld [vmem:[%s2403_s28 + $0x40] sm:$0xff] (%p1912_p6) }
 0x1d8   : > { %s1714_s12 = sshll.u32 (%p1912_p6), %s1376_s18, 3  ;;  %v1409_v41 = vld [vmem:[%s2403_s28 + $0x48] sm:$0xff] (%p1912_p6)  ;;  %v1411_v42 = vld [vmem:[%s2403_s28 + $0x50] sm:$0xff] (%p1912_p6)  ;;  %v1413_v43 = vld [vmem:[%s2403_s28 + $0x58] sm:$0xff] (%p1912_p6) }
 0x1d9   : > { %s2744_s14 = scalar_lea.vmem (%p1912_p6), %s2834_s5, %s1714_s12  ;;  %v1415_v45 = vld [vmem:[%s2403_s28 + $0x60] sm:$0xff] (%p1912_p6)  ;;  %v1417_v18 = vld [vmem:[%s2403_s28 + $0x68] sm:$0xff] (%p1912_p6)  ;;  %v1419_v46 = vld [vmem:[%s2403_s28 + $0x70] sm:$0xff] (%p1912_p6) }
 0x1da   : > { %1392 = vst [vmem:[%s2744_s14] sm:$0xff] %v1391_v49  ;;  %v1421_v48 = vld [vmem:[%s2403_s28 + $0x78] sm:$0xff]  ;;  %v1423_v51 = vld [vmem:[%s2403_s28 + $0x80] sm:$0xff]  ;;  %v1425_v52 = vld [vmem:[%s2403_s28 + $0x88] sm:$0xff] }
 0x1db   : > { %1394 = vst [vmem:[%s2744_s14 + $0x8] sm:$0xff] %v1393_v31  ;;  %v1427_v53 = vld [vmem:[%s2403_s28 + $0x90] sm:$0xff]  ;;  %v1429_v54 = vld [vmem:[%s2403_s28 + $0x98] sm:$0xff]  ;;  %v1431_v55 = vld [vmem:[%s2403_s28 + $0xa0] sm:$0xff] }
 0x1dc   : > { %1396 = vst [vmem:[%s2744_s14 + $0x10] sm:$0xff] %v1395_v32  ;;  %v1433_v56 = vld [vmem:[%s2403_s28 + $0xa8] sm:$0xff]  ;;  %v1435_v57 = vld [vmem:[%s2403_s28 + $0xb0] sm:$0xff]  ;;  %v1437_v58 = vld [vmem:[%s2403_s28 + $0xb8] sm:$0xff] }
 0x1dd   : > { %1398 = vst [vmem:[%s2744_s14 + $0x18] sm:$0xff] %v1397_v33  ;;  %v1439_v59 = vld [vmem:[%s2403_s28 + $0xc0] sm:$0xff]  ;;  %v1441_v60 = vld [vmem:[%s2403_s28 + $0xc8] sm:$0xff]  ;;  %v1443_v61 = vld [vmem:[%s2403_s28 + $0xd0] sm:$0xff] }
 0x1de   : > { %1400 = vst [vmem:[%s2744_s14 + $0x20] sm:$0xff] %v1399_v34  ;;  %v1445_v62 = vld [vmem:[%s2403_s28 + $0xd8] sm:$0xff]  ;;  %v1447_v63 = vld [vmem:[%s2403_s28 + $0xe0] sm:$0xff]  ;;  %v1449_v38 = vld [vmem:[%s2403_s28 + $0xe8] sm:$0xff] }
 0x1df   : > { %1402 = vst [vmem:[%s2744_s14 + $0x28] sm:$0xff] %v1401_v35  ;;  %v1451_v0 = vld [vmem:[%s2403_s28 + $0xf0] sm:$0xff]  ;;  %v1453_v13 = vld [vmem:[%s2403_s28 + $0xf8] sm:$0xff] }
 0x1e0   : > { %1404 = vst [vmem:[%s2744_s14 + $0x30] sm:$0xff] %v1403_v36 }
 0x1e1   : > { %1406 = vst [vmem:[%s2744_s14 + $0x38] sm:$0xff] %v1405_v37 }
 0x1e2   : > { %1408 = vst [vmem:[%s2744_s14 + $0x40] sm:$0xff] %v1407_v40 }
 0x1e3   : > { %1410 = vst [vmem:[%s2744_s14 + $0x48] sm:$0xff] %v1409_v41 }
 0x1e4   : > { %1412 = vst [vmem:[%s2744_s14 + $0x50] sm:$0xff] %v1411_v42 }
 0x1e5   : > { %1414 = vst [vmem:[%s2744_s14 + $0x58] sm:$0xff] %v1413_v43 }
 0x1e6   : > { %1416 = vst [vmem:[%s2744_s14 + $0x60] sm:$0xff] %v1415_v45 }
 0x1e7   : > { %1418 = vst [vmem:[%s2744_s14 + $0x68] sm:$0xff] %v1417_v18 }
 0x1e8   : > { %1420 = vst [vmem:[%s2744_s14 + $0x70] sm:$0xff] %v1419_v46 }
 0x1e9   : > { %1422 = vst [vmem:[%s2744_s14 + $0x78] sm:$0xff] %v1421_v48 }
 0x1ea   : > { %1424 = vst [vmem:[%s2744_s14 + $0x100] sm:$0xff] %v1423_v51 }
 0x1eb   : > { %1426 = vst [vmem:[%s2744_s14 + $0x108] sm:$0xff] %v1425_v52 }
 0x1ec   : > { %1428 = vst [vmem:[%s2744_s14 + $0x110] sm:$0xff] %v1427_v53 }
 0x1ed   : > { %1430 = vst [vmem:[%s2744_s14 + $0x118] sm:$0xff] %v1429_v54 }
 0x1ee   : > { %1432 = vst [vmem:[%s2744_s14 + $0x120] sm:$0xff] %v1431_v55 }
 0x1ef   : > { %1434 = vst [vmem:[%s2744_s14 + $0x128] sm:$0xff] %v1433_v56 }
 0x1f0   : > { %1436 = vst [vmem:[%s2744_s14 + $0x130] sm:$0xff] %v1435_v57 }
 0x1f1   : > { %1438 = vst [vmem:[%s2744_s14 + $0x138] sm:$0xff] %v1437_v58 }
 0x1f2   : > { %1440 = vst [vmem:[%s2744_s14 + $0x140] sm:$0xff] %v1439_v59 }
 0x1f3   : > { %1442 = vst [vmem:[%s2744_s14 + $0x148] sm:$0xff] %v1441_v60 }
 0x1f4   : > { %1444 = vst [vmem:[%s2744_s14 + $0x150] sm:$0xff] %v1443_v61 }
 0x1f5   : > { %1446 = vst [vmem:[%s2744_s14 + $0x158] sm:$0xff] %v1445_v62 }
 0x1f6   : > { %1448 = vst [vmem:[%s2744_s14 + $0x160] sm:$0xff] %v1447_v63 }
 0x1f7   : > { %1450 = vst [vmem:[%s2744_s14 + $0x168] sm:$0xff] %v1449_v38 }
 0x1f8   : > { %1452 = vst [vmem:[%s2744_s14 + $0x170] sm:$0xff] %v1451_v0 }
 0x1f9   : > { %1454 = vst [vmem:[%s2744_s14 + $0x178] sm:$0xff] %v1453_v13 }
 0x1fa PF: > { %s16_s24 = sadd.s32 1, %s1831_s24   ;;  %s2836_s18 = smov %s1811_s19 }
 0x1fb   : > { %p13_p12 = scmp.ge.s32.totalorder %s16_s24, 6   ;;  %s2837_s19 = smov %s1920_s8 }
 0x1fc   : > { %s2838_s20 = smov %s1823_s22  ;;  %s2839_s21 = smov %s1827_s23 }
 0x1fd   : > { %s2840_s22 = smov %s2843_s25  ;;  %s2841_s23 = smov %s2847_s26 }
 0x1fe   :  { %15 = sbr.rel (!%p13_p12) target bundleno = 4 (0x4), region = 183 }

// kernel: ta_block_forward.5
= control target key start
LH: loop header
LB: loop body
LE: loop exit
PB: predicated region body
PF: predicated region fallthrough
CT: control target
= control target key end

     0   :  { %s1156_s9 = smov 0   ;;  %s1158_s10 = smov 0   ;;  %s1290_s0 = inlined_call_operand.vmem [shape: f32[2,8,8192], index: 0, kind: input, shape index: {}]   ;;  %s1291_s1 = inlined_call_operand.vmem [shape: f32[2,8,8192], index: 1, kind: input, shape index: {}]   ;;  %s1292_s2 = inlined_call_operand.vmem [shape: f32[2,8,8], index: 2, kind: output, shape index: {}]  }
   0x1   :  { %s1160_s11 = smov 0   ;;  %s1162_s12 = smov 0  }
   0x2   :  { %s1164_s13 = smov 0  }
   0x3 LB: > { %s21_s14 = sadd.s32 1, %s1130_s11  ;;  %s24_s15 = sadd.s32 1, %s1134_s12  ;;  %s1138_s13 = sphi %s1164_s13, %s12_s13   ;;  %s1134_s12 = sphi %s1162_s12, %s1296_s12   ;;  %s1130_s11 = sphi %s1160_s11, %s1295_s11   ;;  %s1126_s10 = sphi %s1158_s10, %s1294_s10   ;;  %s1122_s9 = sphi %s1156_s9, %s1293_s9  }
   0x4   : > { %p22_p0 = scmp.ge.s32.totalorder %s21_s14, 2  ;;  %p1043_p1 = scmp.ge.s32.totalorder %s1138_s13, 1 }
   0x5   : > { %p148_p2 = scmp.lt.s32.totalorder %s1138_s13, 5 }
   0x6   : > { %s1298_s14 = smov (%p22_p0, %s21_s14), 0  ;;  %s1300_s15 = smov (!%p22_p0, %s24_s15), %s1134_s12 }
   0x7   : > { %p149_p3 = pnand %p1043_p1, %p148_p2  ;;  %p26_p4 = scmp.ge.s32.totalorder %s1300_s15, 2 }
   0x8   : > { %s1044_s16 = sshll.u32 (!%p149_p3), %s1122_s9, 5  ;;  %p183_p5 = scmp.lt.s32.totalorder (!%p149_p3), %s1126_s10, 1 }
   0x9   : > { %s1302_s15 = smov (%p26_p4, %s1300_s15), 0  ;;  %152 = sbr.rel (%p149_p3) target bundleno = 497 (0x1f1), region = 28 }
   0xa   : > { %p185_p6 = scmp.lt.s32.totalorder (!%p149_p3), %s1044_s16, 63  ;;  %p1051_p7 = scmp.ne.s32.totalorder (!%p149_p3), %s1122_s9, 0 }
   0xe   : > { %s1304_s10 = smov (!%p183_p5, %s1126_s10), 1  ;;  %s1306_s16 = smov (!%p185_p6, %s1044_s16), 63 }
   0xf   : > { %s1045_s17 = sshll.u32 %s1304_s10, 6  ;;  %s1050_s18 = sshll.u32 %s1304_s10, 3 }
  0x10   : > { %s188_s19 = sadd.s32 %s1045_s17, %s1306_s16  ;;  %s1192_s22 = scalar_lea.vmem %s1292_s2, %s1050_s18 }
  0x11   : > { %s1046_s23 = sshll.u32 %s188_s19, 3  ;;  %209 = sbr.rel (%p1051_p7) target bundleno = 24 (0x18), region = 32 }
  0x12   : > { %s1197_s26 = scalar_lea.vmem %s1290_s0, %s1046_s23  ;;  %s1202_s29 = scalar_lea.vmem %s1291_s1, %s1046_s23 }
  0x16   : > { %vm210_vm0 = vcmask 64512   ;;  %v1140_v0 = vmov 0.0  }
  0x17   : > { %211 = vst.msk [vmem:[#allocation2] sm:$0xff] %vm210_vm0, %v1140_v0 }
  0x18 PF: > { %v246_v1 = vld [vmem:[%s1202_s29 + $0x10] sm:$0xff]  ;;  %v244_v2 = vld [vmem:[%s1202_s29] sm:$0xff]  ;;  %v245_v3 = vld [vmem:[%s1202_s29 + $0x8] sm:$0xff]  ;;  %vm918_vm1 = vcmask 64512   ;;  %p1052_p8 = scmp.ne.s32.totalorder %s1122_s9, 1 }
  0x19   : > { %332 = vmatpush.xpose.msra.mxu2 %v246_v1  ;;  %292 = vmatpush.xpose.msra.mxu0 %v244_v2  ;;  %v247_v4 = vld [vmem:[%s1202_s29 + $0x18] sm:$0xff]  ;;  %v214_v5 = vld [vmem:[%s1197_s26 + $0x10] sm:$0xff]  ;;  %v212_v7 = vld [vmem:[%s1197_s26] sm:$0xff] }
  0x1a   : > { %v250_v6 = vld [vmem:[%s1202_s29 + $0x30] sm:$0xff]  ;;  %312 = vmatpush.xpose.msra.mxu1 %v245_v3  ;;  %352 = vmatpush.xpose.msra.mxu3 %v247_v4  ;;  %v213_v8 = vld [vmem:[%s1197_s26 + $0x8] sm:$0xff]  ;;  %v215_v9 = vld [vmem:[%s1197_s26 + $0x18] sm:$0xff] }
  0x1b   : > { %v248_v10 = vld [vmem:[%s1202_s29 + $0x20] sm:$0xff]  ;;  %v251_v11 = vld [vmem:[%s1202_s29 + $0x38] sm:$0xff]  ;;  %v249_v12 = vld [vmem:[%s1202_s29 + $0x28] sm:$0xff] }
  0x1c   : > { %333 = vmatmul.f32.vlgmr.msra.gmra.mxu2 %v214_v5  ;;  %293 = vmatmul.f32.vlgmr.msra.gmra.mxu0 %v212_v7  ;;  %v254_v13 = vld [vmem:[%s1202_s29 + $0x50] sm:$0xff]  ;;  %v252_v14 = vld [vmem:[%s1202_s29 + $0x40] sm:$0xff]  ;;  %v255_v15 = vld [vmem:[%s1202_s29 + $0x58] sm:$0xff] }
  0x1d   : > { %412 = vmatpush.xpose.msrb.mxu2 %v250_v6  ;;  %313 = vmatmul.f32.vlgmr.msra.gmra.mxu1 %v213_v8  ;;  %v253_v16 = vld [vmem:[%s1202_s29 + $0x48] sm:$0xff]  ;;  %v218_v17 = vld [vmem:[%s1197_s26 + $0x30] sm:$0xff]  ;;  %v216_v18 = vld [vmem:[%s1197_s26 + $0x20] sm:$0xff] }
  0x1e   : > { %353 = vmatmul.f32.vlgmr.msra.gmra.mxu3 %v215_v9  ;;  %372 = vmatpush.xpose.msrb.mxu0 %v248_v10  ;;  %v219_v19 = vld [vmem:[%s1197_s26 + $0x38] sm:$0xff]  ;;  %v217_v20 = vld [vmem:[%s1197_s26 + $0x28] sm:$0xff]  ;;  %v258_v21 = vld [vmem:[%s1202_s29 + $0x70] sm:$0xff] }
  0x1f   : > { %432 = vmatpush.xpose.msrb.mxu3 %v251_v11  ;;  %392 = vmatpush.xpose.msrb.mxu1 %v249_v12  ;;  %v256_v22 = vld [vmem:[%s1202_s29 + $0x60] sm:$0xff]  ;;  %v259_v23 = vld [vmem:[%s1202_s29 + $0x78] sm:$0xff]  ;;  %v257_v24 = vld [vmem:[%s1202_s29 + $0x68] sm:$0xff] }
  0x20   : > { %v222_v25 = vld [vmem:[%s1197_s26 + $0x50] sm:$0xff]  ;;  %v220_v26 = vld [vmem:[%s1197_s26 + $0x40] sm:$0xff]  ;;  %v223_v27 = vld [vmem:[%s1197_s26 + $0x58] sm:$0xff] }
  0x21   : > { %492 = vmatpush.xpose.msra.mxu2 %v254_v13  ;;  %v221_v28 = vld [vmem:[%s1197_s26 + $0x48] sm:$0xff]  ;;  %v262_v29 = vld [vmem:[%s1202_s29 + $0x90] sm:$0xff]  ;;  %v260_v30 = vld [vmem:[%s1202_s29 + $0x80] sm:$0xff] }
  0x22   : > { %452 = vmatpush.xpose.msra.mxu0 %v252_v14  ;;  %v263_v31 = vld [vmem:[%s1202_s29 + $0x98] sm:$0xff]  ;;  %v261_v32 = vld [vmem:[%s1202_s29 + $0x88] sm:$0xff]  ;;  %v226_v33 = vld [vmem:[%s1197_s26 + $0x70] sm:$0xff] }
  0x23   : > { %512 = vmatpush.xpose.msra.mxu3 %v255_v15  ;;  %472 = vmatpush.xpose.msra.mxu1 %v253_v16  ;;  %v224_v34 = vld [vmem:[%s1197_s26 + $0x60] sm:$0xff]  ;;  %v227_v35 = vld [vmem:[%s1197_s26 + $0x78] sm:$0xff]  ;;  %v225_v36 = vld [vmem:[%s1197_s26 + $0x68] sm:$0xff] }
  0x24   : > { %413 = vmatmul.f32.vlgmr.msrb.gmra.mxu2 %v218_v17  ;;  %373 = vmatmul.f32.vlgmr.msrb.gmra.mxu0 %v216_v18  ;;  %v266_v37 = vld [vmem:[%s1202_s29 + $0xb0] sm:$0xff]  ;;  %v264_v38 = vld [vmem:[%s1202_s29 + $0xa0] sm:$0xff]  ;;  %v267_v39 = vld [vmem:[%s1202_s29 + $0xb8] sm:$0xff] }
  0x25   : > { %393 = vmatmul.f32.vlgmr.msrb.gmra.mxu1 %v217_v20  ;;  %572 = vmatpush.xpose.msrb.mxu2 %v258_v21  ;;  %v265_v40 = vld [vmem:[%s1202_s29 + $0xa8] sm:$0xff]  ;;  %v230_v41 = vld [vmem:[%s1197_s26 + $0x90] sm:$0xff]  ;;  %v228_v42 = vld [vmem:[%s1197_s26 + $0x80] sm:$0xff] }
  0x26   : > { %433 = vmatmul.f32.vlgmr.msrb.gmra.mxu3 %v219_v19  ;;  %532 = vmatpush.xpose.msrb.mxu0 %v256_v22  ;;  %v231_v43 = vld [vmem:[%s1197_s26 + $0x98] sm:$0xff]  ;;  %v229_v44 = vld [vmem:[%s1197_s26 + $0x88] sm:$0xff]  ;;  %v270_v45 = vld [vmem:[%s1202_s29 + $0xd0] sm:$0xff] }
  0x27   : > { %592 = vmatpush.xpose.msrb.mxu3 %v259_v23  ;;  %552 = vmatpush.xpose.msrb.mxu1 %v257_v24  ;;  %v268_v46 = vld [vmem:[%s1202_s29 + $0xc0] sm:$0xff]  ;;  %v271_v47 = vld [vmem:[%s1202_s29 + $0xd8] sm:$0xff]  ;;  %v269_v48 = vld [vmem:[%s1202_s29 + $0xc8] sm:$0xff] }
  0x28   : > { %v234_v49 = vld [vmem:[%s1197_s26 + $0xb0] sm:$0xff]  ;;  %v232_v50 = vld [vmem:[%s1197_s26 + $0xa0] sm:$0xff]  ;;  %v235_v51 = vld [vmem:[%s1197_s26 + $0xb8] sm:$0xff] }
  0x29   : > { %v233_v52 = vld [vmem:[%s1197_s26 + $0xa8] sm:$0xff]  ;;  %v274_v53 = vld [vmem:[%s1202_s29 + $0xf0] sm:$0xff]  ;;  %v272_v54 = vld [vmem:[%s1202_s29 + $0xe0] sm:$0xff] }
  0x2a   : > { %v275_v55 = vld [vmem:[%s1202_s29 + $0xf8] sm:$0xff]  ;;  %v273_v56 = vld [vmem:[%s1202_s29 + $0xe8] sm:$0xff]  ;;  %v238_v57 = vld [vmem:[%s1197_s26 + $0xd0] sm:$0xff] }
  0x2b   : > { %v236_v58 = vld [vmem:[%s1197_s26 + $0xc0] sm:$0xff]  ;;  %v239_v59 = vld [vmem:[%s1197_s26 + $0xd8] sm:$0xff]  ;;  %v237_v60 = vld [vmem:[%s1197_s26 + $0xc8] sm:$0xff] }
  0x2c   : > { %493 = vmatmul.f32.vlgmr.msra.gmra.mxu2 %v222_v25  ;;  %453 = vmatmul.f32.vlgmr.msra.gmra.mxu0 %v220_v26  ;;  %v242_v61 = vld [vmem:[%s1197_s26 + $0xf0] sm:$0xff]  ;;  %v240_v62 = vld [vmem:[%s1197_s26 + $0xe0] sm:$0xff]  ;;  %v243_v63 = vld [vmem:[%s1197_s26 + $0xf8] sm:$0xff] }
  0x2d   : > { %473 = vmatmul.f32.vlgmr.msra.gmra.mxu1 %v221_v28  ;;  %652 = vmatpush.xpose.msra.mxu2 %v262_v29  ;;  %v241_v0 = vld [vmem:[%s1197_s26 + $0xe8] sm:$0xff] }
  0x2e   : > { %513 = vmatmul.f32.vlgmr.msra.gmra.mxu3 %v223_v27  ;;  %612 = vmatpush.xpose.msra.mxu0 %v260_v30 }
  0x2f   : > { %672 = vmatpush.xpose.msra.mxu3 %v263_v31  ;;  %632 = vmatpush.xpose.msra.mxu1 %v261_v32 }
  0x34   : > { %573 = vmatmul.f32.vlgmr.msrb.gmra.mxu2 %v226_v33  ;;  %533 = vmatmul.f32.vlgmr.msrb.gmra.mxu0 %v224_v34 }
  0x35   : > { %553 = vmatmul.f32.vlgmr.msrb.gmra.mxu1 %v225_v36  ;;  %732 = vmatpush.xpose.msrb.mxu2 %v266_v37 }
  0x36   : > { %593 = vmatmul.f32.vlgmr.msrb.gmra.mxu3 %v227_v35  ;;  %692 = vmatpush.xpose.msrb.mxu0 %v264_v38 }
  0x37   : > { %752 = vmatpush.xpose.msrb.mxu3 %v267_v39  ;;  %712 = vmatpush.xpose.msrb.mxu1 %v265_v40 }
  0x3c   : > { %653 = vmatmul.f32.vlgmr.msra.gmra.mxu2 %v230_v41  ;;  %613 = vmatmul.f32.vlgmr.msra.gmra.mxu0 %v228_v42 }
  0x3d   : > { %633 = vmatmul.f32.vlgmr.msra.gmra.mxu1 %v229_v44  ;;  %812 = vmatpush.xpose.msra.mxu2 %v270_v45 }
  0x3e   : > { %673 = vmatmul.f32.vlgmr.msra.gmra.mxu3 %v231_v43  ;;  %772 = vmatpush.xpose.msra.mxu0 %v268_v46 }
  0x3f   : > { %832 = vmatpush.xpose.msra.mxu3 %v271_v47  ;;  %792 = vmatpush.xpose.msra.mxu1 %v269_v48 }
  0x44   : > { %733 = vmatmul.f32.vlgmr.msrb.gmra.mxu2 %v234_v49  ;;  %693 = vmatmul.f32.vlgmr.msrb.gmra.mxu0 %v232_v50 }
  0x45   : > { %713 = vmatmul.f32.vlgmr.msrb.gmra.mxu1 %v233_v52  ;;  %892 = vmatpush.xpose.msrb.mxu2 %v274_v53 }
  0x46   : > { %753 = vmatmul.f32.vlgmr.msrb.gmra.mxu3 %v235_v51  ;;  %852 = vmatpush.xpose.msrb.mxu0 %v272_v54 }
  0x47   : > { %912 = vmatpush.xpose.msrb.mxu3 %v275_v55  ;;  %872 = vmatpush.xpose.msrb.mxu1 %v273_v56 }
  0x4c   : > { %813 = vmatmul.f32.vlgmr.msra.gmra.mxu2 %v238_v57  ;;  %773 = vmatmul.f32.vlgmr.msra.gmra.mxu0 %v236_v58 }
  0x4d   : > { %793 = vmatmul.f32.vlgmr.msra.gmra.mxu1 %v237_v60 }
  0x4e   : > { %833 = vmatmul.f32.vlgmr.msra.gmra.mxu3 %v239_v59 }
  0x54   : > { %893 = vmatmul.f32.vlgmr.msrb.gmra.mxu2 %v242_v61  ;;  %853 = vmatmul.f32.vlgmr.msrb.gmra.mxu0 %v240_v62 }
  0x55   : > { %873 = vmatmul.f32.vlgmr.msrb.gmra.mxu1 %v241_v0 }
  0x56   : > { %913 = vmatmul.f32.vlgmr.msrb.gmra.mxu3 %v243_v63  ;;  %v276_v63 = vld [vmem:[#allocation2] sm:$0xff] }
  0x99   : > { %v294_v1 = vpop.f32.mrf.mxu0 }
  0x9a   : > { %v314_v2 = vpop.f32.mrf.mxu1 }
  0x9b   : > { %v315_v3 = vadd.f32 %v314_v2, %v294_v1 }
  0x9f   : > { %v334_v4 = vpop.f32.mrf.mxu2 }
  0xa0   : > { %v335_v5 = vadd.f32 %v334_v4, %v315_v3 }
  0xa1   : > { %v354_v6 = vpop.f32.mrf.mxu3  ;;  %v374_v7 = vpop.f32.mrf.mxu0 }
  0xa2   : > { %v355_v8 = vadd.f32 %v354_v6, %v335_v5  ;;  %v394_v9 = vpop.f32.mrf.mxu1 }
  0xa4   : > { %v375_v10 = vadd.f32 %v374_v7, %v355_v8 }
  0xa6   : > { %v395_v11 = vadd.f32 %v394_v9, %v375_v10 }
  0xa7   : > { %v414_v12 = vpop.f32.mrf.mxu2 }
  0xa8   : > { %v415_v13 = vadd.f32 %v414_v12, %v395_v11 }
  0xa9   : > { %v434_v14 = vpop.f32.mrf.mxu3  ;;  %v454_v15 = vpop.f32.mrf.mxu0 }
  0xaa   : > { %v435_v16 = vadd.f32 %v434_v14, %v415_v13  ;;  %v474_v17 = vpop.f32.mrf.mxu1 }
  0xac   : > { %v455_v18 = vadd.f32 %v454_v15, %v435_v16 }
  0xae   : > { %v475_v19 = vadd.f32 %v474_v17, %v455_v18 }
  0xaf   : > { %v494_v20 = vpop.f32.mrf.mxu2 }
  0xb0   : > { %v495_v21 = vadd.f32 %v494_v20, %v475_v19 }
  0xb1   : > { %v514_v22 = vpop.f32.mrf.mxu3  ;;  %v534_v23 = vpop.f32.mrf.mxu0 }
  0xb2   : > { %v515_v24 = vadd.f32 %v514_v22, %v495_v21  ;;  %v554_v25 = vpop.f32.mrf.mxu1 }
  0xb4   : > { %v535_v26 = vadd.f32 %v534_v23, %v515_v24 }
  0xb6   : > { %v555_v27 = vadd.f32 %v554_v25, %v535_v26 }
  0xb7   : > { %v574_v28 = vpop.f32.mrf.mxu2 }
  0xb8   : > { %v575_v29 = vadd.f32 %v574_v28, %v555_v27 }
  0xb9   : > { %v594_v30 = vpop.f32.mrf.mxu3  ;;  %v614_v31 = vpop.f32.mrf.mxu0 }
  0xba   : > { %v595_v32 = vadd.f32 %v594_v30, %v575_v29  ;;  %v634_v33 = vpop.f32.mrf.mxu1 }
  0xbc   : > { %v615_v34 = vadd.f32 %v614_v31, %v595_v32 }
  0xbe   : > { %v635_v35 = vadd.f32 %v634_v33, %v615_v34 }
  0xbf   : > { %v654_v36 = vpop.f32.mrf.mxu2 }
  0xc0   : > { %v655_v37 = vadd.f32 %v654_v36, %v635_v35 }
  0xc1   : > { %v674_v38 = vpop.f32.mrf.mxu3  ;;  %v694_v39 = vpop.f32.mrf.mxu0 }
  0xc2   : > { %v675_v40 = vadd.f32 %v674_v38, %v655_v37  ;;  %v714_v41 = vpop.f32.mrf.mxu1 }
  0xc4   : > { %v695_v42 = vadd.f32 %v694_v39, %v675_v40 }
  0xc6   : > { %v715_v43 = vadd.f32 %v714_v41, %v695_v42 }
  0xc7   : > { %v734_v44 = vpop.f32.mrf.mxu2 }
  0xc8   : > { %v735_v45 = vadd.f32 %v734_v44, %v715_v43 }
  0xc9   : > { %v754_v46 = vpop.f32.mrf.mxu3  ;;  %v774_v47 = vpop.f32.mrf.mxu0 }
  0xca   : > { %v755_v48 = vadd.f32 %v754_v46, %v735_v45  ;;  %v794_v49 = vpop.f32.mrf.mxu1 }
  0xcc   : > { %v775_v50 = vadd.f32 %v774_v47, %v755_v48 }
  0xce   : > { %v795_v51 = vadd.f32 %v794_v49, %v775_v50 }
  0xcf   : > { %v814_v52 = vpop.f32.mrf.mxu2 }
  0xd0   : > { %v815_v53 = vadd.f32 %v814_v52, %v795_v51 }
  0xd1   : > { %v834_v54 = vpop.f32.mrf.mxu3  ;;  %v854_v55 = vpop.f32.mrf.mxu0 }
  0xd2   : > { %v835_v56 = vadd.f32 %v834_v54, %v815_v53  ;;  %v874_v57 = vpop.f32.mrf.mxu1 }
  0xd4   : > { %v855_v58 = vadd.f32 %v854_v55, %v835_v56 }
  0xd6   : > { %v875_v59 = vadd.f32 %v874_v57, %v855_v58 }
  0xd7   : > { %v894_v60 = vpop.f32.mrf.mxu2 }
  0xd8   : > { %v895_v61 = vadd.f32 %v894_v60, %v875_v59 }
  0xd9   : > { %v914_v62 = vpop.f32.mrf.mxu3 }
  0xda   : > { %v915_v0 = vadd.f32 %v914_v62, %v895_v61  ;;  %923 = sbr.rel (%p1052_p8) target bundleno = 497 (0x1f1), region = 36 }
  0xdc   : > { %v917_v1 = vadd.f32 %v915_v0, %v276_v63 }
  0xde   : > { %919 = vst.msk [vmem:[#allocation2] sm:$0xff] %vm918_vm1, %v917_v1 }
  0xe5   : > { %v924_v2 = vld [vmem:[#allocation2] sm:$0xff] }
  0xe6   : > { %v925_v3 = vmul.f32 0.011048543, %v924_v2 }
  0xe8   : > { %v926_v4 = vsel %vm918_vm1, %v925_v3, -inf }
  0xe9   : > { %927 = vmax.xlane.f32.xlu0 %v926_v4 }
 0x15c   : > { %v928_v5 = vpop.xlane.xlu0 %927 }
 0x15d   : > { %v929_v6 = vsub.f32 %v925_v3, %v928_v5 }
 0x15f   : > { %v930_v7 = vmul.f32 1.442695, %v929_v6 }
 0x161   : > { %1096 = vpow2.f32 %v930_v7 }
 0x167   : > { %v1097_v8 = vpop.eup %1096 }
 0x168   : > { %v932_v9 = vsel %vm918_vm1, %v1097_v8, 0.0 }
 0x169   : > { %933 = vadd.xlane.f32.xlu0 %v932_v9 }
 0x1dc   : > { %v934_v10 = vpop.xlane.xlu0 %933 }
 0x1dd   : > { %1098 = vrcp.f32 %v934_v10  ;;  %v946_v14 = vand.u32 2147483648, %v934_v10  ;;  %v944_v16 = vand.u32 2147483647, %v934_v10  ;;  %vm940_vm3 = vweird.f32 %v934_v10 }
 0x1df   : > { %v947_v18 = vor.u32 1.1754944e-38, %v946_v14  ;;  %vm945_vm5 = vcmp.eq.f32.partialorder %v944_v16, 8.507059e+37 }
 0x1e3   : > { %v1099_v11 = vpop.eup %1098 }
 0x1e4   : > { %v936_v12 = vmul.f32 %v1099_v11, %v934_v10  ;;  %vm941_vm2 = vweird.f32 %v1099_v11 }
 0x1e5   : > { %vm942_vm4 = vmor %vm940_vm3, %vm941_vm2 }
 0x1e6   : > { %v937_v13 = vsub.f32 1.0, %v936_v12 }
 0x1e8   : > { %v938_v15 = vmul.f32 %v1099_v11, %v937_v13 }
 0x1ea   : > { %v939_v17 = vadd.f32 %v1099_v11, %v938_v15 }
 0x1ec   : > { %v943_v19 = vsel %vm942_vm4, %v1099_v11, %v939_v17 }
 0x1ed   : > { %v948_v20 = vsel %vm945_vm5, %v947_v18, %v943_v19 }
 0x1ee   : > { %v949_v21 = vmul.f32 %v1097_v8, %v948_v20 }
 0x1f0   : > { %950 = vst.msk [vmem:[%s1192_s22] sm:$0xff] %vm918_vm1, %v949_v21 }
 0x1f1 PF: > { %s12_s13 = sadd.s32 1, %s1138_s13   ;;  %s1293_s9 = smov %s1130_s11 }
 0x1f2   : > { %p9_p9 = scmp.ge.s32.totalorder %s12_s13, 6   ;;  %s1294_s10 = smov %s1134_s12 }
 0x1f3   : > { %s1295_s11 = smov %s1298_s14  ;;  %s1296_s12 = smov %s1302_s15 }
 0x1f4   :  { %11 = sbr.rel (!%p9_p9) target bundleno = 3 (0x3), region = 69 }

// kernel: ta_block_forward.6
= control target key start
LH: loop header
LB: loop body
LE: loop exit
PB: predicated region body
PF: predicated region fallthrough
CT: control target
= control target key end

     0   :  { %s1152_s9 = smov 0   ;;  %s1154_s10 = smov 0   ;;  %s1347_s0 = inlined_call_operand.vmem [shape: f32[2,8,8], index: 0, kind: input, shape index: {}]   ;;  %s1348_s1 = inlined_call_operand.vmem [shape: f32[2,8,8192], index: 1, kind: input, shape index: {}]   ;;  %s1349_s2 = inlined_call_operand.vmem [shape: f32[2,8,8192], index: 2, kind: output, shape index: {}]  }
   0x1   :  { %s1156_s11 = smov 0   ;;  %s1158_s12 = smov 0  }
   0x2   :  { %s1160_s13 = smov 0  }
   0x3 LB: > { %s21_s14 = sadd.s32 1, %s1127_s11  ;;  %s24_s15 = sadd.s32 1, %s1131_s12  ;;  %s1135_s13 = sphi %s1160_s13, %s12_s13   ;;  %s1131_s12 = sphi %s1158_s12, %s1353_s12   ;;  %s1127_s11 = sphi %s1156_s11, %s1352_s11   ;;  %s1123_s10 = sphi %s1154_s10, %s1351_s10   ;;  %s1119_s9 = sphi %s1152_s9, %s1350_s9  }
   0x4   : > { %p22_p0 = scmp.ge.s32.totalorder %s21_s14, 2  ;;  %p1015_p1 = scmp.ge.s32.totalorder %s1135_s13, 1 }
   0x5   : > { %p142_p2 = scmp.lt.s32.totalorder %s1135_s13, 5 }
   0x6   : > { %s1355_s14 = smov (%p22_p0, %s21_s14), 0  ;;  %s1357_s15 = smov (!%p22_p0, %s24_s15), %s1131_s12 }
   0x7   : > { %p143_p3 = pnand %p1015_p1, %p142_p2  ;;  %p26_p4 = scmp.ge.s32.totalorder %s1357_s15, 2 }
   0x8   : > { %p176_p5 = scmp.lt.s32.totalorder (!%p143_p3), %s1123_s10, 1  ;;  %s1017_s16 = sshll.u32 (!%p143_p3), %s1119_s9, 5 }
   0x9   : > { %s1359_s15 = smov (%p26_p4, %s1357_s15), 0  ;;  %146 = sbr.rel (%p143_p3) target bundleno = 211 (0xd3), region = 28 }
   0xa   : > { %p183_p6 = scmp.lt.s32.totalorder (!%p143_p3), %s1017_s16, 63 }
   0xe   : > { %s1361_s10 = smov (!%p176_p5, %s1123_s10), 1  ;;  %s1363_s16 = smov (!%p183_p6, %s1017_s16), 63  ;;  %vm233_vm0 = vcmask 64512  }
   0xf   : > { %s1018_s17 = sshll.u32 %s1361_s10, 6  ;;  %s1016_s18 = sshll.u32 %s1361_s10, 3 }
  0x10   : > { %s1182_s19 = sadd.s32 %s1018_s17, %s1363_s16  ;;  %s179_s22 = scalar_lea.vmem %s1347_s0, %s1016_s18 }
  0x11   : > { %s1019_s23 = sshll.u32 %s1182_s19, 3  ;;  %v1195_v0 = vld [vmem:[%s179_s22] sm:$0xff] }
  0x12   : > { %s1193_s26 = scalar_lea.vmem %s1348_s1, %s1019_s23  ;;  %s1298_s29 = scalar_lea.vmem %s1349_s2, %s1019_s23 }
  0x13   : > { %v203_v1 = vld [vmem:[%s1193_s26 + $0x10] sm:$0xff]  ;;  %v204_v2 = vld [vmem:[%s1193_s26 + $0x18] sm:$0xff]  ;;  %v201_v5 = vld [vmem:[%s1193_s26] sm:$0xff] }
  0x14   : > { %v207_v3 = vld [vmem:[%s1193_s26 + $0x30] sm:$0xff]  ;;  %292 = vmatpush.msra.mxu2 %v203_v1  ;;  %312 = vmatpush.msra.mxu3 %v204_v2  ;;  %v208_v4 = vld [vmem:[%s1193_s26 + $0x38] sm:$0xff]  ;;  %v202_v6 = vld [vmem:[%s1193_s26 + $0x8] sm:$0xff] }
  0x15   : > { %1025 = vmatmul.msk.f32.vlgmr.msra.gmra.mxu2 %vm233_vm0, %v1195_v0  ;;  %1026 = vmatmul.msk.f32.vlgmr.msra.gmra.mxu3 %vm233_vm0, %v1195_v0  ;;  %v205_v7 = vld [vmem:[%s1193_s26 + $0x20] sm:$0xff]  ;;  %v206_v8 = vld [vmem:[%s1193_s26 + $0x28] sm:$0xff]  ;;  %v211_v9 = vld [vmem:[%s1193_s26 + $0x50] sm:$0xff] }
  0x16   : > { %372 = vmatpush.msrb.mxu2 %v207_v3  ;;  %392 = vmatpush.msrb.mxu3 %v208_v4  ;;  %v212_v10 = vld [vmem:[%s1193_s26 + $0x58] sm:$0xff]  ;;  %v209_v11 = vld [vmem:[%s1193_s26 + $0x40] sm:$0xff]  ;;  %v210_v12 = vld [vmem:[%s1193_s26 + $0x48] sm:$0xff] }
  0x17   : > { %252 = vmatpush.msra.mxu0 %v201_v5  ;;  %272 = vmatpush.msra.mxu1 %v202_v6  ;;  %v215_v13 = vld [vmem:[%s1193_s26 + $0x70] sm:$0xff]  ;;  %v216_v14 = vld [vmem:[%s1193_s26 + $0x78] sm:$0xff]  ;;  %v213_v15 = vld [vmem:[%s1193_s26 + $0x60] sm:$0xff] }
  0x18   : > { %1023 = vmatmul.msk.f32.vlgmr.msra.gmra.mxu0 %vm233_vm0, %v1195_v0  ;;  %1024 = vmatmul.msk.f32.vlgmr.msra.gmra.mxu1 %vm233_vm0, %v1195_v0  ;;  %v214_v16 = vld [vmem:[%s1193_s26 + $0x68] sm:$0xff]  ;;  %v219_v17 = vld [vmem:[%s1193_s26 + $0x90] sm:$0xff]  ;;  %v220_v18 = vld [vmem:[%s1193_s26 + $0x98] sm:$0xff] }
  0x19   : > { %332 = vmatpush.msrb.mxu0 %v205_v7  ;;  %352 = vmatpush.msrb.mxu1 %v206_v8  ;;  %v217_v19 = vld [vmem:[%s1193_s26 + $0x80] sm:$0xff]  ;;  %v218_v20 = vld [vmem:[%s1193_s26 + $0x88] sm:$0xff]  ;;  %v223_v21 = vld [vmem:[%s1193_s26 + $0xb0] sm:$0xff] }
  0x1a   : > { %452 = vmatpush.msra.mxu2 %v211_v9  ;;  %472 = vmatpush.msra.mxu3 %v212_v10  ;;  %v224_v22 = vld [vmem:[%s1193_s26 + $0xb8] sm:$0xff]  ;;  %v221_v23 = vld [vmem:[%s1193_s26 + $0xa0] sm:$0xff]  ;;  %v222_v24 = vld [vmem:[%s1193_s26 + $0xa8] sm:$0xff] }
  0x1b   : > { %412 = vmatpush.msra.mxu0 %v209_v11  ;;  %432 = vmatpush.msra.mxu1 %v210_v12  ;;  %v227_v25 = vld [vmem:[%s1193_s26 + $0xd0] sm:$0xff]  ;;  %v228_v26 = vld [vmem:[%s1193_s26 + $0xd8] sm:$0xff]  ;;  %v225_v27 = vld [vmem:[%s1193_s26 + $0xc0] sm:$0xff] }
  0x1c   : > { %v226_v28 = vld [vmem:[%s1193_s26 + $0xc8] sm:$0xff]  ;;  %v231_v29 = vld [vmem:[%s1193_s26 + $0xf0] sm:$0xff]  ;;  %v232_v30 = vld [vmem:[%s1193_s26 + $0xf8] sm:$0xff] }
  0x1d   : > { %1029 = vmatmul.msk.f32.vlgmr.msrb.gmra.mxu2 %vm233_vm0, %v1195_v0  ;;  %1030 = vmatmul.msk.f32.vlgmr.msrb.gmra.mxu3 %vm233_vm0, %v1195_v0  ;;  %v229_v31 = vld [vmem:[%s1193_s26 + $0xe0] sm:$0xff]  ;;  %v230_v32 = vld [vmem:[%s1193_s26 + $0xe8] sm:$0xff] }
  0x1e   : > { %532 = vmatpush.msrb.mxu2 %v215_v13  ;;  %552 = vmatpush.msrb.mxu3 %v216_v14 }
  0x20   : > { %1027 = vmatmul.msk.f32.vlgmr.msrb.gmra.mxu0 %vm233_vm0, %v1195_v0  ;;  %1028 = vmatmul.msk.f32.vlgmr.msrb.gmra.mxu1 %vm233_vm0, %v1195_v0 }
  0x21   : > { %492 = vmatpush.msrb.mxu0 %v213_v15  ;;  %512 = vmatpush.msrb.mxu1 %v214_v16 }
  0x25   : > { %1033 = vmatmul.msk.f32.vlgmr.msra.gmra.mxu2 %vm233_vm0, %v1195_v0  ;;  %1034 = vmatmul.msk.f32.vlgmr.msra.gmra.mxu3 %vm233_vm0, %v1195_v0 }
  0x26   : > { %612 = vmatpush.msra.mxu2 %v219_v17  ;;  %632 = vmatpush.msra.mxu3 %v220_v18 }
  0x28   : > { %1031 = vmatmul.msk.f32.vlgmr.msra.gmra.mxu0 %vm233_vm0, %v1195_v0  ;;  %1032 = vmatmul.msk.f32.vlgmr.msra.gmra.mxu1 %vm233_vm0, %v1195_v0 }
  0x29   : > { %572 = vmatpush.msra.mxu0 %v217_v19  ;;  %592 = vmatpush.msra.mxu1 %v218_v20 }
  0x2d   : > { %1037 = vmatmul.msk.f32.vlgmr.msrb.gmra.mxu2 %vm233_vm0, %v1195_v0  ;;  %1038 = vmatmul.msk.f32.vlgmr.msrb.gmra.mxu3 %vm233_vm0, %v1195_v0 }
  0x2e   : > { %692 = vmatpush.msrb.mxu2 %v223_v21  ;;  %712 = vmatpush.msrb.mxu3 %v224_v22 }
  0x30   : > { %1035 = vmatmul.msk.f32.vlgmr.msrb.gmra.mxu0 %vm233_vm0, %v1195_v0  ;;  %1036 = vmatmul.msk.f32.vlgmr.msrb.gmra.mxu1 %vm233_vm0, %v1195_v0 }
  0x31   : > { %652 = vmatpush.msrb.mxu0 %v221_v23  ;;  %672 = vmatpush.msrb.mxu1 %v222_v24 }
  0x35   : > { %1041 = vmatmul.msk.f32.vlgmr.msra.gmra.mxu2 %vm233_vm0, %v1195_v0  ;;  %1042 = vmatmul.msk.f32.vlgmr.msra.gmra.mxu3 %vm233_vm0, %v1195_v0 }
  0x36   : > { %772 = vmatpush.msra.mxu2 %v227_v25  ;;  %792 = vmatpush.msra.mxu3 %v228_v26 }
  0x38   : > { %1039 = vmatmul.msk.f32.vlgmr.msra.gmra.mxu0 %vm233_vm0, %v1195_v0  ;;  %1040 = vmatmul.msk.f32.vlgmr.msra.gmra.mxu1 %vm233_vm0, %v1195_v0 }
  0x39   : > { %732 = vmatpush.msra.mxu0 %v225_v27  ;;  %752 = vmatpush.msra.mxu1 %v226_v28 }
  0x3d   : > { %1045 = vmatmul.msk.f32.vlgmr.msrb.gmra.mxu2 %vm233_vm0, %v1195_v0  ;;  %1046 = vmatmul.msk.f32.vlgmr.msrb.gmra.mxu3 %vm233_vm0, %v1195_v0 }
  0x3e   : > { %852 = vmatpush.msrb.mxu2 %v231_v29  ;;  %872 = vmatpush.msrb.mxu3 %v232_v30 }
  0x40   : > { %1043 = vmatmul.msk.f32.vlgmr.msrb.gmra.mxu0 %vm233_vm0, %v1195_v0  ;;  %1044 = vmatmul.msk.f32.vlgmr.msrb.gmra.mxu1 %vm233_vm0, %v1195_v0 }
  0x41   : > { %812 = vmatpush.msrb.mxu0 %v229_v31  ;;  %832 = vmatpush.msrb.mxu1 %v230_v32 }
  0x45   : > { %1049 = vmatmul.msk.f32.vlgmr.msra.gmra.mxu2 %vm233_vm0, %v1195_v0  ;;  %1050 = vmatmul.msk.f32.vlgmr.msra.gmra.mxu3 %vm233_vm0, %v1195_v0 }
  0x48   : > { %1047 = vmatmul.msk.f32.vlgmr.msra.gmra.mxu0 %vm233_vm0, %v1195_v0  ;;  %1048 = vmatmul.msk.f32.vlgmr.msra.gmra.mxu1 %vm233_vm0, %v1195_v0 }
  0x4d   : > { %1053 = vmatmul.msk.f32.vlgmr.msrb.gmra.mxu2 %vm233_vm0, %v1195_v0  ;;  %1054 = vmatmul.msk.f32.vlgmr.msrb.gmra.mxu3 %vm233_vm0, %v1195_v0 }
  0x50   : > { %1051 = vmatmul.msk.f32.vlgmr.msrb.gmra.mxu0 %vm233_vm0, %v1195_v0  ;;  %1052 = vmatmul.msk.f32.vlgmr.msrb.gmra.mxu1 %vm233_vm0, %v1195_v0 }
  0x95   : > { %v254_v33 = vpop.f32.mrf.mxu0  ;;  %v274_v34 = vpop.f32.mrf.mxu1 }
  0x96   : > { %877 = vst [vmem:[%s1298_s29] sm:$0xff] %v254_v33 }
  0x97   : > { %878 = vst [vmem:[%s1298_s29 + $0x8] sm:$0xff] %v274_v34 }
  0x98   : > { %v294_v35 = vpop.f32.mrf.mxu2  ;;  %v314_v36 = vpop.f32.mrf.mxu3 }
  0x99   : > { %879 = vst [vmem:[%s1298_s29 + $0x10] sm:$0xff] %v294_v35 }
  0x9a   : > { %880 = vst [vmem:[%s1298_s29 + $0x18] sm:$0xff] %v314_v36 }
  0x9d   : > { %v334_v37 = vpop.f32.mrf.mxu0  ;;  %v354_v38 = vpop.f32.mrf.mxu1 }
  0x9e   : > { %881 = vst [vmem:[%s1298_s29 + $0x20] sm:$0xff] %v334_v37 }
  0x9f   : > { %882 = vst [vmem:[%s1298_s29 + $0x28] sm:$0xff] %v354_v38 }
  0xa0   : > { %v374_v39 = vpop.f32.mrf.mxu2  ;;  %v394_v40 = vpop.f32.mrf.mxu3 }
  0xa1   : > { %883 = vst [vmem:[%s1298_s29 + $0x30] sm:$0xff] %v374_v39 }
  0xa2   : > { %884 = vst [vmem:[%s1298_s29 + $0x38] sm:$0xff] %v394_v40 }
  0xa5   : > { %v414_v41 = vpop.f32.mrf.mxu0  ;;  %v434_v42 = vpop.f32.mrf.mxu1 }
  0xa6   : > { %885 = vst [vmem:[%s1298_s29 + $0x40] sm:$0xff] %v414_v41 }
  0xa7   : > { %886 = vst [vmem:[%s1298_s29 + $0x48] sm:$0xff] %v434_v42 }
  0xa8   : > { %v454_v43 = vpop.f32.mrf.mxu2  ;;  %v474_v44 = vpop.f32.mrf.mxu3 }
  0xa9   : > { %887 = vst [vmem:[%s1298_s29 + $0x50] sm:$0xff] %v454_v43 }
  0xaa   : > { %888 = vst [vmem:[%s1298_s29 + $0x58] sm:$0xff] %v474_v44 }
  0xad   : > { %v494_v45 = vpop.f32.mrf.mxu0  ;;  %v514_v46 = vpop.f32.mrf.mxu1 }
  0xae   : > { %889 = vst [vmem:[%s1298_s29 + $0x60] sm:$0xff] %v494_v45 }
  0xaf   : > { %890 = vst [vmem:[%s1298_s29 + $0x68] sm:$0xff] %v514_v46 }
  0xb0   : > { %v534_v47 = vpop.f32.mrf.mxu2  ;;  %v554_v48 = vpop.f32.mrf.mxu3 }
  0xb1   : > { %891 = vst [vmem:[%s1298_s29 + $0x70] sm:$0xff] %v534_v47 }
  0xb2   : > { %892 = vst [vmem:[%s1298_s29 + $0x78] sm:$0xff] %v554_v48 }
  0xb5   : > { %v574_v49 = vpop.f32.mrf.mxu0  ;;  %v594_v50 = vpop.f32.mrf.mxu1 }
  0xb6   : > { %893 = vst [vmem:[%s1298_s29 + $0x80] sm:$0xff] %v574_v49 }
  0xb7   : > { %894 = vst [vmem:[%s1298_s29 + $0x88] sm:$0xff] %v594_v50 }
  0xb8   : > { %v614_v51 = vpop.f32.mrf.mxu2  ;;  %v634_v52 = vpop.f32.mrf.mxu3 }
  0xb9   : > { %895 = vst [vmem:[%s1298_s29 + $0x90] sm:$0xff] %v614_v51 }
  0xba   : > { %896 = vst [vmem:[%s1298_s29 + $0x98] sm:$0xff] %v634_v52 }
  0xbd   : > { %v654_v53 = vpop.f32.mrf.mxu0  ;;  %v674_v54 = vpop.f32.mrf.mxu1 }
  0xbe   : > { %897 = vst [vmem:[%s1298_s29 + $0xa0] sm:$0xff] %v654_v53 }
  0xbf   : > { %898 = vst [vmem:[%s1298_s29 + $0xa8] sm:$0xff] %v674_v54 }
  0xc0   : > { %v694_v55 = vpop.f32.mrf.mxu2  ;;  %v714_v56 = vpop.f32.mrf.mxu3 }
  0xc1   : > { %899 = vst [vmem:[%s1298_s29 + $0xb0] sm:$0xff] %v694_v55 }
  0xc2   : > { %900 = vst [vmem:[%s1298_s29 + $0xb8] sm:$0xff] %v714_v56 }
  0xc5   : > { %v734_v57 = vpop.f32.mrf.mxu0  ;;  %v754_v58 = vpop.f32.mrf.mxu1 }
  0xc6   : > { %901 = vst [vmem:[%s1298_s29 + $0xc0] sm:$0xff] %v734_v57 }
  0xc7   : > { %902 = vst [vmem:[%s1298_s29 + $0xc8] sm:$0xff] %v754_v58 }
  0xc8   : > { %v774_v59 = vpop.f32.mrf.mxu2  ;;  %v794_v60 = vpop.f32.mrf.mxu3 }
  0xc9   : > { %903 = vst [vmem:[%s1298_s29 + $0xd0] sm:$0xff] %v774_v59 }
  0xca   : > { %904 = vst [vmem:[%s1298_s29 + $0xd8] sm:$0xff] %v794_v60 }
  0xcd   : > { %v814_v61 = vpop.f32.mrf.mxu0  ;;  %v834_v62 = vpop.f32.mrf.mxu1 }
  0xce   : > { %905 = vst [vmem:[%s1298_s29 + $0xe0] sm:$0xff] %v814_v61 }
  0xcf   : > { %906 = vst [vmem:[%s1298_s29 + $0xe8] sm:$0xff] %v834_v62 }
  0xd0   : > { %v854_v63 = vpop.f32.mrf.mxu2  ;;  %v874_v0 = vpop.f32.mrf.mxu3 }
  0xd1   : > { %907 = vst [vmem:[%s1298_s29 + $0xf0] sm:$0xff] %v854_v63 }
  0xd2   : > { %908 = vst [vmem:[%s1298_s29 + $0xf8] sm:$0xff] %v874_v0 }
  0xd3 PF: > { %s12_s13 = sadd.s32 1, %s1135_s13   ;;  %s1350_s9 = smov %s1127_s11 }
  0xd4   : > { %p9_p7 = scmp.ge.s32.totalorder %s12_s13, 6   ;;  %s1351_s10 = smov %s1131_s12 }
  0xd5   : > { %s1352_s11 = smov %s1355_s14  ;;  %s1353_s12 = smov %s1359_s15 }
  0xd6   :  { %11 = sbr.rel (!%p9_p7) target bundleno = 3 (0x3), region = 61 }

// kernel: ta_block_forward.7
= control target key start
LH: loop header
LB: loop body
LE: loop exit
PB: predicated region body
PF: predicated region fallthrough
CT: control target
= control target key end

     0   :  { %s1671_s15 = smov 0   ;;  %s1673_s16 = smov 0   ;;  %s2513_s0 = inlined_call_operand.vmem [shape: f32[32,16], index: 0, kind: input, shape index: {}]   ;;  %s2514_s1 = inlined_call_operand.vmem [shape: f32[32,1], index: 1, kind: input, shape index: {}]   ;;  %s2515_s2 = inlined_call_operand.vmem [shape: f32[2,16,4096], index: 2, kind: input, shape index: {}]   ;;  %s2516_s3 = inlined_call_operand.vmem [shape: f32[2,32,4096], index: 3, kind: input, shape index: {}]   ;;  %s2517_s4 = inlined_call_operand.vmem [shape: f32[2,32,4096], index: 4, kind: output, shape index: {}]  }
   0x1   :  { %s1675_s17 = smov 0   ;;  %s1677_s18 = smov 0  }
   0x2   :  { %s1679_s19 = smov 0   ;;  %s1681_s20 = smov 0  }
   0x3   :  { %s1683_s21 = smov 0  }
   0x4 LB: > { %s23_s22 = sadd.s32 1, %s1635_s19  ;;  %s26_s23 = sadd.s32 1, %s1639_s20  ;;  %s1643_s21 = sphi %s1683_s21, %s14_s21   ;;  %s1639_s20 = sphi %s1681_s20, %s2525_s20   ;;  %s1635_s19 = sphi %s1679_s19, %s2524_s19   ;;  %s1631_s18 = sphi %s1677_s18, %s2523_s18   ;;  %s1627_s17 = sphi %s1675_s17, %s2522_s17   ;;  %s1623_s16 = sphi %s1673_s16, %s2521_s16   ;;  %s1619_s15 = sphi %s1671_s15, %s2520_s15  }
   0x5   : > { %p24_p0 = scmp.ge.s32.totalorder %s23_s22, 2  ;;  %s1444_s24 = sadd.s32 4294967295, %s1643_s21  }
   0x6   : > { %p84_p1 = scmp.ne.s32.totalorder %s1623_s16, %s1619_s15  ;;  %p85_p2 = scmp.eq.s32.totalorder %s1643_s21, 0 }
   0x7   : > { %s2527_s22 = smov (%p24_p0, %s23_s22), 0  ;;  %s2529_s23 = smov (!%p24_p0, %s26_s23), %s1639_s20 }
   0x8   : > { %p28_p3 = scmp.ge.s32.totalorder %s2529_s23, 2  ;;  %p144_p4 = scmp.eq.s32.totalorder %s1444_s24, 3 }
   0x9   : > { %s73_s25 = ssub.s32 %s1635_s19, %s2527_s22  ;;  %p1717_p5 = por %p85_p2, %p84_p1 }
   0xa   : > { %s2531_s23 = smov (%p28_p3, %s2529_s23), 0  ;;  %p1723_p6 = por %p144_p4, %p84_p1 }
   0xb   : > { %s72_s28 = ssub.s32 %s1639_s20, %s2531_s23  ;;  %s77_s30 = sadd.s32 1, %s1623_s16 }
   0xc   : > { %s74_s29 = sor.u32 %s73_s25, %s72_s28  ;;  %p1447_p8 = scmp.ge.s32.totalorder %s1643_s21, 4 }
   0xd   : > { %p75_p7 = scmp.eq.s32.totalorder %s74_s29, 0 }
   0xe   : > { %172 = sbr.rel (%p1447_p8) target bundleno = 129 (0x81), region = 24 }
   0xf   : > { %s1731_s5 = scalar_select %p75_p7, %s1623_s16, %s77_s30  }
  0x13   : > { %175 = sbr.rel (!%p1717_p5) target bundleno = 58 (0x3a), region = 28  ;;  %s177_s6 = sand.u32 (%p1717_p5), 1, %s1623_s16  }
  0x14   : > { %s1449_s7 = sshll.u32 (%p1717_p5), %s1635_s19, 4  ;;  %s1448_s8 = sshll.u32 (%p1717_p5), %s177_s6, 8 }
  0x15   : > { %s1450_s9 = sshll.u32 (%p1717_p5), %s1639_s20, 6  ;;  %s1747_s24 = scalar_lea.vmem (%p1717_p5), [#allocation2], %s1448_s8 }
  0x16   : > { %s182_s10 = sadd.s32 (%p1717_p5), %s1450_s9, %s1449_s7 }
  0x17   : > { %s1451_s11 = sshll.u32 (%p1717_p5), %s182_s10, 3 }
  0x18   : > { %s1742_s14 = scalar_lea.vmem %s2515_s2, %s1451_s11 }
  0x19   : > { %v197_v0 = vld [vmem:[%s1742_s14] sm:$0xff]  ;;  %v199_v1 = vld [vmem:[%s1742_s14 + $0x8] sm:$0xff]  ;;  %v201_v2 = vld [vmem:[%s1742_s14 + $0x10] sm:$0xff] }
  0x1a   : > { %198 = vst [vmem:[%s1747_s24] sm:$0xff] %v197_v0  ;;  %v203_v3 = vld [vmem:[%s1742_s14 + $0x18] sm:$0xff]  ;;  %v205_v4 = vld [vmem:[%s1742_s14 + $0x20] sm:$0xff]  ;;  %v207_v5 = vld [vmem:[%s1742_s14 + $0x28] sm:$0xff] }
  0x1b   : > { %200 = vst [vmem:[%s1747_s24 + $0x8] sm:$0xff] %v199_v1  ;;  %v209_v6 = vld [vmem:[%s1742_s14 + $0x30] sm:$0xff]  ;;  %v211_v7 = vld [vmem:[%s1742_s14 + $0x38] sm:$0xff]  ;;  %v213_v8 = vld [vmem:[%s1742_s14 + $0x40] sm:$0xff] }
  0x1c   : > { %202 = vst [vmem:[%s1747_s24 + $0x10] sm:$0xff] %v201_v2  ;;  %v215_v9 = vld [vmem:[%s1742_s14 + $0x48] sm:$0xff]  ;;  %v217_v10 = vld [vmem:[%s1742_s14 + $0x50] sm:$0xff]  ;;  %v219_v11 = vld [vmem:[%s1742_s14 + $0x58] sm:$0xff] }
  0x1d   : > { %204 = vst [vmem:[%s1747_s24 + $0x18] sm:$0xff] %v203_v3  ;;  %v221_v12 = vld [vmem:[%s1742_s14 + $0x60] sm:$0xff]  ;;  %v223_v13 = vld [vmem:[%s1742_s14 + $0x68] sm:$0xff]  ;;  %v225_v14 = vld [vmem:[%s1742_s14 + $0x70] sm:$0xff] }
  0x1e   : > { %206 = vst [vmem:[%s1747_s24 + $0x20] sm:$0xff] %v205_v4  ;;  %v227_v15 = vld [vmem:[%s1742_s14 + $0x78] sm:$0xff]  ;;  %v229_v16 = vld [vmem:[%s1742_s14 + $0x100] sm:$0xff]  ;;  %v231_v17 = vld [vmem:[%s1742_s14 + $0x108] sm:$0xff] }
  0x1f   : > { %208 = vst [vmem:[%s1747_s24 + $0x28] sm:$0xff] %v207_v5  ;;  %v233_v18 = vld [vmem:[%s1742_s14 + $0x110] sm:$0xff]  ;;  %v235_v19 = vld [vmem:[%s1742_s14 + $0x118] sm:$0xff]  ;;  %v237_v20 = vld [vmem:[%s1742_s14 + $0x120] sm:$0xff] }
  0x20   : > { %210 = vst [vmem:[%s1747_s24 + $0x30] sm:$0xff] %v209_v6  ;;  %v239_v21 = vld [vmem:[%s1742_s14 + $0x128] sm:$0xff]  ;;  %v241_v22 = vld [vmem:[%s1742_s14 + $0x130] sm:$0xff]  ;;  %v243_v23 = vld [vmem:[%s1742_s14 + $0x138] sm:$0xff] }
  0x21   : > { %212 = vst [vmem:[%s1747_s24 + $0x38] sm:$0xff] %v211_v7  ;;  %v245_v24 = vld [vmem:[%s1742_s14 + $0x140] sm:$0xff]  ;;  %v247_v25 = vld [vmem:[%s1742_s14 + $0x148] sm:$0xff]  ;;  %v249_v26 = vld [vmem:[%s1742_s14 + $0x150] sm:$0xff] }
  0x22   : > { %214 = vst [vmem:[%s1747_s24 + $0x40] sm:$0xff] %v213_v8  ;;  %v251_v27 = vld [vmem:[%s1742_s14 + $0x158] sm:$0xff]  ;;  %v253_v28 = vld [vmem:[%s1742_s14 + $0x160] sm:$0xff]  ;;  %v255_v29 = vld [vmem:[%s1742_s14 + $0x168] sm:$0xff] }
  0x23   : > { %216 = vst [vmem:[%s1747_s24 + $0x48] sm:$0xff] %v215_v9  ;;  %v257_v30 = vld [vmem:[%s1742_s14 + $0x170] sm:$0xff]  ;;  %v259_v31 = vld [vmem:[%s1742_s14 + $0x178] sm:$0xff] }
  0x24   : > { %218 = vst [vmem:[%s1747_s24 + $0x50] sm:$0xff] %v217_v10 }
  0x25   : > { %220 = vst [vmem:[%s1747_s24 + $0x58] sm:$0xff] %v219_v11 }
  0x26   : > { %222 = vst [vmem:[%s1747_s24 + $0x60] sm:$0xff] %v221_v12 }
  0x27   : > { %224 = vst [vmem:[%s1747_s24 + $0x68] sm:$0xff] %v223_v13 }
  0x28   : > { %226 = vst [vmem:[%s1747_s24 + $0x70] sm:$0xff] %v225_v14 }
  0x29   : > { %228 = vst [vmem:[%s1747_s24 + $0x78] sm:$0xff] %v227_v15 }
  0x2a   : > { %230 = vst [vmem:[%s1747_s24 + $0x80] sm:$0xff] %v229_v16 }
  0x2b   : > { %232 = vst [vmem:[%s1747_s24 + $0x88] sm:$0xff] %v231_v17 }
  0x2c   : > { %234 = vst [vmem:[%s1747_s24 + $0x90] sm:$0xff] %v233_v18 }
  0x2d   : > { %236 = vst [vmem:[%s1747_s24 + $0x98] sm:$0xff] %v235_v19 }
  0x2e   : > { %238 = vst [vmem:[%s1747_s24 + $0xa0] sm:$0xff] %v237_v20 }
  0x2f   : > { %240 = vst [vmem:[%s1747_s24 + $0xa8] sm:$0xff] %v239_v21 }
  0x30   : > { %242 = vst [vmem:[%s1747_s24 + $0xb0] sm:$0xff] %v241_v22 }
  0x31   : > { %244 = vst [vmem:[%s1747_s24 + $0xb8] sm:$0xff] %v243_v23 }
  0x32   : > { %246 = vst [vmem:[%s1747_s24 + $0xc0] sm:$0xff] %v245_v24 }
  0x33   : > { %248 = vst [vmem:[%s1747_s24 + $0xc8] sm:$0xff] %v247_v25 }
  0x34   : > { %250 = vst [vmem:[%s1747_s24 + $0xd0] sm:$0xff] %v249_v26 }
  0x35   : > { %252 = vst [vmem:[%s1747_s24 + $0xd8] sm:$0xff] %v251_v27 }
  0x36   : > { %254 = vst [vmem:[%s1747_s24 + $0xe0] sm:$0xff] %v253_v28 }
  0x37   : > { %256 = vst [vmem:[%s1747_s24 + $0xe8] sm:$0xff] %v255_v29 }
  0x38   : > { %258 = vst [vmem:[%s1747_s24 + $0xf0] sm:$0xff] %v257_v30 }
  0x39   : > { %260 = vst [vmem:[%s1747_s24 + $0xf8] sm:$0xff] %v259_v31 }
  0x3a PF: > { %266 = sbr.rel (!%p1717_p5) target bundleno = 129 (0x81), region = 51  ;;  %s268_s25 = sand.u32 (%p1717_p5), 1, %s1623_s16  }
  0x3b   : > { %s1453_s28 = sshll.u32 (%p1717_p5), %s1635_s19, 4  ;;  %s1452_s29 = sshll.u32 (%p1717_p5), %s268_s25, 9 }
  0x3c   : > { %s1454_s30 = sshll.u32 (%p1717_p5), %s1639_s20, 7  ;;  %s1823_s26 = scalar_lea.vmem (%p1717_p5), [#allocation3], %s1452_s29 }
  0x3d   : > { %s273_s6 = sadd.s32 (%p1717_p5), %s1454_s30, %s1453_s28 }
  0x3e   : > { %s1455_s7 = sshll.u32 (%p1717_p5), %s273_s6, 3 }
  0x3f   : > { %s1818_s10 = scalar_lea.vmem %s2516_s3, %s1455_s7 }
  0x40   : > { %v288_v32 = vld [vmem:[%s1818_s10] sm:$0xff]  ;;  %v290_v33 = vld [vmem:[%s1818_s10 + $0x8] sm:$0xff]  ;;  %v292_v34 = vld [vmem:[%s1818_s10 + $0x10] sm:$0xff] }
  0x41   : > { %289 = vst [vmem:[%s1823_s26] sm:$0xff] %v288_v32  ;;  %v294_v35 = vld [vmem:[%s1818_s10 + $0x18] sm:$0xff]  ;;  %v296_v36 = vld [vmem:[%s1818_s10 + $0x20] sm:$0xff]  ;;  %v298_v37 = vld [vmem:[%s1818_s10 + $0x28] sm:$0xff] }
  0x42   : > { %291 = vst [vmem:[%s1823_s26 + $0x8] sm:$0xff] %v290_v33  ;;  %v300_v38 = vld [vmem:[%s1818_s10 + $0x30] sm:$0xff]  ;;  %v302_v39 = vld [vmem:[%s1818_s10 + $0x38] sm:$0xff]  ;;  %v304_v40 = vld [vmem:[%s1818_s10 + $0x40] sm:$0xff] }
  0x43   : > { %293 = vst [vmem:[%s1823_s26 + $0x10] sm:$0xff] %v292_v34  ;;  %v306_v41 = vld [vmem:[%s1818_s10 + $0x48] sm:$0xff]  ;;  %v308_v42 = vld [vmem:[%s1818_s10 + $0x50] sm:$0xff]  ;;  %v310_v43 = vld [vmem:[%s1818_s10 + $0x58] sm:$0xff] }
  0x44   : > { %295 = vst [vmem:[%s1823_s26 + $0x18] sm:$0xff] %v294_v35  ;;  %v312_v44 = vld [vmem:[%s1818_s10 + $0x60] sm:$0xff]  ;;  %v314_v45 = vld [vmem:[%s1818_s10 + $0x68] sm:$0xff]  ;;  %v316_v46 = vld [vmem:[%s1818_s10 + $0x70] sm:$0xff] }
  0x45   : > { %297 = vst [vmem:[%s1823_s26 + $0x20] sm:$0xff] %v296_v36  ;;  %v318_v47 = vld [vmem:[%s1818_s10 + $0x78] sm:$0xff]  ;;  %v320_v48 = vld [vmem:[%s1818_s10 + $0x100] sm:$0xff]  ;;  %v322_v49 = vld [vmem:[%s1818_s10 + $0x108] sm:$0xff] }
  0x46   : > { %299 = vst [vmem:[%s1823_s26 + $0x28] sm:$0xff] %v298_v37  ;;  %v324_v50 = vld [vmem:[%s1818_s10 + $0x110] sm:$0xff]  ;;  %v326_v51 = vld [vmem:[%s1818_s10 + $0x118] sm:$0xff]  ;;  %v328_v52 = vld [vmem:[%s1818_s10 + $0x120] sm:$0xff] }
  0x47   : > { %301 = vst [vmem:[%s1823_s26 + $0x30] sm:$0xff] %v300_v38  ;;  %v330_v53 = vld [vmem:[%s1818_s10 + $0x128] sm:$0xff]  ;;  %v332_v54 = vld [vmem:[%s1818_s10 + $0x130] sm:$0xff]  ;;  %v334_v55 = vld [vmem:[%s1818_s10 + $0x138] sm:$0xff] }
  0x48   : > { %303 = vst [vmem:[%s1823_s26 + $0x38] sm:$0xff] %v302_v39  ;;  %v336_v56 = vld [vmem:[%s1818_s10 + $0x140] sm:$0xff]  ;;  %v338_v57 = vld [vmem:[%s1818_s10 + $0x148] sm:$0xff]  ;;  %v340_v58 = vld [vmem:[%s1818_s10 + $0x150] sm:$0xff] }
  0x49   : > { %305 = vst [vmem:[%s1823_s26 + $0x40] sm:$0xff] %v304_v40  ;;  %v342_v59 = vld [vmem:[%s1818_s10 + $0x158] sm:$0xff]  ;;  %v344_v60 = vld [vmem:[%s1818_s10 + $0x160] sm:$0xff]  ;;  %v346_v61 = vld [vmem:[%s1818_s10 + $0x168] sm:$0xff] }
  0x4a   : > { %307 = vst [vmem:[%s1823_s26 + $0x48] sm:$0xff] %v306_v41  ;;  %v348_v62 = vld [vmem:[%s1818_s10 + $0x170] sm:$0xff]  ;;  %v350_v63 = vld [vmem:[%s1818_s10 + $0x178] sm:$0xff]  ;;  %v352_v0 = vld [vmem:[%s1818_s10 + $0x200] sm:$0xff] }
  0x4b   : > { %309 = vst [vmem:[%s1823_s26 + $0x50] sm:$0xff] %v308_v42  ;;  %v354_v1 = vld [vmem:[%s1818_s10 + $0x208] sm:$0xff]  ;;  %v356_v2 = vld [vmem:[%s1818_s10 + $0x210] sm:$0xff]  ;;  %v358_v3 = vld [vmem:[%s1818_s10 + $0x218] sm:$0xff] }
  0x4c   : > { %311 = vst [vmem:[%s1823_s26 + $0x58] sm:$0xff] %v310_v43  ;;  %v360_v4 = vld [vmem:[%s1818_s10 + $0x220] sm:$0xff]  ;;  %v362_v5 = vld [vmem:[%s1818_s10 + $0x228] sm:$0xff]  ;;  %v364_v6 = vld [vmem:[%s1818_s10 + $0x230] sm:$0xff] }
  0x4d   : > { %313 = vst [vmem:[%s1823_s26 + $0x60] sm:$0xff] %v312_v44  ;;  %v366_v7 = vld [vmem:[%s1818_s10 + $0x238] sm:$0xff]  ;;  %v368_v8 = vld [vmem:[%s1818_s10 + $0x240] sm:$0xff]  ;;  %v370_v9 = vld [vmem:[%s1818_s10 + $0x248] sm:$0xff] }
  0x4e   : > { %315 = vst [vmem:[%s1823_s26 + $0x68] sm:$0xff] %v314_v45  ;;  %v372_v10 = vld [vmem:[%s1818_s10 + $0x250] sm:$0xff]  ;;  %v374_v11 = vld [vmem:[%s1818_s10 + $0x258] sm:$0xff]  ;;  %v376_v12 = vld [vmem:[%s1818_s10 + $0x260] sm:$0xff] }
  0x4f   : > { %317 = vst [vmem:[%s1823_s26 + $0x70] sm:$0xff] %v316_v46  ;;  %v378_v13 = vld [vmem:[%s1818_s10 + $0x268] sm:$0xff]  ;;  %v380_v14 = vld [vmem:[%s1818_s10 + $0x270] sm:$0xff]  ;;  %v382_v15 = vld [vmem:[%s1818_s10 + $0x278] sm:$0xff] }
  0x50   : > { %319 = vst [vmem:[%s1823_s26 + $0x78] sm:$0xff] %v318_v47  ;;  %v384_v16 = vld [vmem:[%s1818_s10 + $0x300] sm:$0xff]  ;;  %v386_v17 = vld [vmem:[%s1818_s10 + $0x308] sm:$0xff]  ;;  %v388_v18 = vld [vmem:[%s1818_s10 + $0x310] sm:$0xff] }
  0x51   : > { %321 = vst [vmem:[%s1823_s26 + $0x80] sm:$0xff] %v320_v48  ;;  %v390_v19 = vld [vmem:[%s1818_s10 + $0x318] sm:$0xff]  ;;  %v392_v20 = vld [vmem:[%s1818_s10 + $0x320] sm:$0xff]  ;;  %v394_v21 = vld [vmem:[%s1818_s10 + $0x328] sm:$0xff] }
  0x52   : > { %323 = vst [vmem:[%s1823_s26 + $0x88] sm:$0xff] %v322_v49  ;;  %v396_v22 = vld [vmem:[%s1818_s10 + $0x330] sm:$0xff]  ;;  %v398_v23 = vld [vmem:[%s1818_s10 + $0x338] sm:$0xff]  ;;  %v400_v24 = vld [vmem:[%s1818_s10 + $0x340] sm:$0xff] }
  0x53   : > { %325 = vst [vmem:[%s1823_s26 + $0x90] sm:$0xff] %v324_v50  ;;  %v402_v25 = vld [vmem:[%s1818_s10 + $0x348] sm:$0xff]  ;;  %v404_v26 = vld [vmem:[%s1818_s10 + $0x350] sm:$0xff]  ;;  %v406_v27 = vld [vmem:[%s1818_s10 + $0x358] sm:$0xff] }
  0x54   : > { %327 = vst [vmem:[%s1823_s26 + $0x98] sm:$0xff] %v326_v51  ;;  %v408_v28 = vld [vmem:[%s1818_s10 + $0x360] sm:$0xff]  ;;  %v410_v29 = vld [vmem:[%s1818_s10 + $0x368] sm:$0xff]  ;;  %v412_v30 = vld [vmem:[%s1818_s10 + $0x370] sm:$0xff] }
  0x55   : > { %329 = vst [vmem:[%s1823_s26 + $0xa0] sm:$0xff] %v328_v52  ;;  %v414_v31 = vld [vmem:[%s1818_s10 + $0x378] sm:$0xff] }
  0x56   : > { %331 = vst [vmem:[%s1823_s26 + $0xa8] sm:$0xff] %v330_v53 }
  0x57   : > { %333 = vst [vmem:[%s1823_s26 + $0xb0] sm:$0xff] %v332_v54 }
  0x58   : > { %335 = vst [vmem:[%s1823_s26 + $0xb8] sm:$0xff] %v334_v55 }
  0x59   : > { %337 = vst [vmem:[%s1823_s26 + $0xc0] sm:$0xff] %v336_v56 }
  0x5a   : > { %339 = vst [vmem:[%s1823_s26 + $0xc8] sm:$0xff] %v338_v57 }
  0x5b   : > { %341 = vst [vmem:[%s1823_s26 + $0xd0] sm:$0xff] %v340_v58 }
  0x5c   : > { %343 = vst [vmem:[%s1823_s26 + $0xd8] sm:$0xff] %v342_v59 }
  0x5d   : > { %345 = vst [vmem:[%s1823_s26 + $0xe0] sm:$0xff] %v344_v60 }
  0x5e   : > { %347 = vst [vmem:[%s1823_s26 + $0xe8] sm:$0xff] %v346_v61 }
  0x5f   : > { %349 = vst [vmem:[%s1823_s26 + $0xf0] sm:$0xff] %v348_v62 }
  0x60   : > { %351 = vst [vmem:[%s1823_s26 + $0xf8] sm:$0xff] %v350_v63 }
  0x61   : > { %353 = vst [vmem:[%s1823_s26 + $0x100] sm:$0xff] %v352_v0 }
  0x62   : > { %355 = vst [vmem:[%s1823_s26 + $0x108] sm:$0xff] %v354_v1 }
  0x63   : > { %357 = vst [vmem:[%s1823_s26 + $0x110] sm:$0xff] %v356_v2 }
  0x64   : > { %359 = vst [vmem:[%s1823_s26 + $0x118] sm:$0xff] %v358_v3 }
  0x65   : > { %361 = vst [vmem:[%s1823_s26 + $0x120] sm:$0xff] %v360_v4 }
  0x66   : > { %363 = vst [vmem:[%s1823_s26 + $0x128] sm:$0xff] %v362_v5 }
  0x67   : > { %365 = vst [vmem:[%s1823_s26 + $0x130] sm:$0xff] %v364_v6 }
  0x68   : > { %367 = vst [vmem:[%s1823_s26 + $0x138] sm:$0xff] %v366_v7 }
  0x69   : > { %369 = vst [vmem:[%s1823_s26 + $0x140] sm:$0xff] %v368_v8 }
  0x6a   : > { %371 = vst [vmem:[%s1823_s26 + $0x148] sm:$0xff] %v370_v9 }
  0x6b   : > { %373 = vst [vmem:[%s1823_s26 + $0x150] sm:$0xff] %v372_v10 }
  0x6c   : > { %375 = vst [vmem:[%s1823_s26 + $0x158] sm:$0xff] %v374_v11 }
  0x6d   : > { %377 = vst [vmem:[%s1823_s26 + $0x160] sm:$0xff] %v376_v12 }
  0x6e   : > { %379 = vst [vmem:[%s1823_s26 + $0x168] sm:$0xff] %v378_v13 }
  0x6f   : > { %381 = vst [vmem:[%s1823_s26 + $0x170] sm:$0xff] %v380_v14 }
  0x70   : > { %383 = vst [vmem:[%s1823_s26 + $0x178] sm:$0xff] %v382_v15 }
  0x71   : > { %385 = vst [vmem:[%s1823_s26 + $0x180] sm:$0xff] %v384_v16 }
  0x72   : > { %387 = vst [vmem:[%s1823_s26 + $0x188] sm:$0xff] %v386_v17 }
  0x73   : > { %389 = vst [vmem:[%s1823_s26 + $0x190] sm:$0xff] %v388_v18 }
  0x74   : > { %391 = vst [vmem:[%s1823_s26 + $0x198] sm:$0xff] %v390_v19 }
  0x75   : > { %393 = vst [vmem:[%s1823_s26 + $0x1a0] sm:$0xff] %v392_v20 }
  0x76   : > { %395 = vst [vmem:[%s1823_s26 + $0x1a8] sm:$0xff] %v394_v21 }
  0x77   : > { %397 = vst [vmem:[%s1823_s26 + $0x1b0] sm:$0xff] %v396_v22 }
  0x78   : > { %399 = vst [vmem:[%s1823_s26 + $0x1b8] sm:$0xff] %v398_v23 }
  0x79   : > { %401 = vst [vmem:[%s1823_s26 + $0x1c0] sm:$0xff] %v400_v24 }
  0x7a   : > { %403 = vst [vmem:[%s1823_s26 + $0x1c8] sm:$0xff] %v402_v25 }
  0x7b   : > { %405 = vst [vmem:[%s1823_s26 + $0x1d0] sm:$0xff] %v404_v26 }
  0x7c   : > { %407 = vst [vmem:[%s1823_s26 + $0x1d8] sm:$0xff] %v406_v27 }
  0x7d   : > { %409 = vst [vmem:[%s1823_s26 + $0x1e0] sm:$0xff] %v408_v28 }
  0x7e   : > { %411 = vst [vmem:[%s1823_s26 + $0x1e8] sm:$0xff] %v410_v29 }
  0x7f   : > { %413 = vst [vmem:[%s1823_s26 + $0x1f0] sm:$0xff] %v412_v30 }
  0x80   : > { %415 = vst [vmem:[%s1823_s26 + $0x1f8] sm:$0xff] %v414_v31 }
  0x81 PF: > { %p1456_p9 = scmp.ge.s32.totalorder %s1643_s21, 1  ;;  %p420_p10 = scmp.lt.s32.totalorder %s1643_s21, 5 }
  0x83   : > { %p421_p11 = pnand %p1456_p9, %p420_p10 }
  0x84   : > { %s427_s11 = sand.u32 (!%p421_p11), 1, %s1619_s15  }
  0x85   : > { %424 = sbr.rel (%p421_p11) target bundleno = 451 (0x1c3), region = 74  ;;  %s1457_s12 = sshll.u32 (!%p421_p11), %s427_s11, 8 }
  0x86   : > { %s1958_s24 = scalar_lea.vmem (!%p421_p11), [#allocation2], %s1457_s12 }
  0x8a   : > { %v1645_v32 = vmov 0   ;;  %v501_v33 = vld [vmem:[%s2514_s1] sm:$0xff]  ;;  %v482_v35 = vld [vmem:[%s1958_s24 + $0x88] sm:$0xff]  ;;  %v483_v36 = vld [vmem:[%s1958_s24 + $0x90] sm:$0xff]  ;;  %vm525_vm0 = vcmask 130048   ;;  %s1526_s29 = sshll.u32 (%p1723_p6), %s1631_s18, 7 }
  0x8b   : > { %1587 = vset.pattern.permute.xlu0 %v1645_v32  ;;  %1588 = vset.pattern.permute.xlu1 %v1645_v32  ;;  %v481_v34 = vld [vmem:[%s1958_s24 + $0x80] sm:$0xff]  ;;  %v484_v37 = vld [vmem:[%s1958_s24 + $0x98] sm:$0xff]  ;;  %v466_v39 = vld [vmem:[%s1958_s24 + $0x8] sm:$0xff] }
  0x8c   : > { %507 = vperm.xlu0 %1587, %v501_v33   ;;  %552 = vmatpush.msra.mxu0 %v481_v34  ;;  %v465_v38 = vld [vmem:[%s1958_s24] sm:$0xff]  ;;  %v467_v40 = vld [vmem:[%s1958_s24 + $0x10] sm:$0xff]  ;;  %v468_v41 = vld [vmem:[%s1958_s24 + $0x18] sm:$0xff] }
  0x8d   : > { %581 = vmatpush.msra.mxu1 %v482_v35  ;;  %610 = vmatpush.msra.mxu2 %v483_v36  ;;  %v1971_v42 = vld [vmem:[%s2513_s0] sm:$0xff]  ;;  %v487_v43 = vld [vmem:[%s1958_s24 + $0xb0] sm:$0xff]  ;;  %v488_v44 = vld [vmem:[%s1958_s24 + $0xb8] sm:$0xff] }
  0x8e   : > { %639 = vmatpush.msra.mxu3 %v484_v37  ;;  %553 = vmatpush.msra.mxu0 %v465_v38  ;;  %v485_v45 = vld [vmem:[%s1958_s24 + $0xa0] sm:$0xff]  ;;  %v486_v46 = vld [vmem:[%s1958_s24 + $0xa8] sm:$0xff]  ;;  %v471_v47 = vld [vmem:[%s1958_s24 + $0x30] sm:$0xff] }
  0x8f   : > { %582 = vmatpush.msra.mxu1 %v466_v39  ;;  %611 = vmatpush.msra.mxu2 %v467_v40  ;;  %v472_v48 = vld [vmem:[%s1958_s24 + $0x38] sm:$0xff]  ;;  %v469_v49 = vld [vmem:[%s1958_s24 + $0x20] sm:$0xff]  ;;  %v470_v50 = vld [vmem:[%s1958_s24 + $0x28] sm:$0xff] }
  0x90   : > { %640 = vmatpush.msra.mxu3 %v468_v41  ;;  %1460 = vmatmul.msk.f32.vlgmr.msra.gmra.mxu0 %vm525_vm0, %v1971_v42  ;;  %v502_v51 = vld [vmem:[%s2514_s1 + $0x8] sm:$0xff]  ;;  %v491_v52 = vld [vmem:[%s1958_s24 + $0xd0] sm:$0xff]  ;;  %v492_v53 = vld [vmem:[%s1958_s24 + $0xd8] sm:$0xff] }
  0x91   : > { %1464 = vmatmul.msk.f32.vlgmr.msra.gmra.mxu1 %vm525_vm0, %v1971_v42  ;;  %1468 = vmatmul.msk.f32.vlgmr.msra.gmra.mxu2 %vm525_vm0, %v1971_v42  ;;  %v503_v54 = vld [vmem:[%s2514_s1 + $0x10] sm:$0xff]  ;;  %v2000_v55 = vld [vmem:[%s2513_s0 + $0x8] sm:$0xff]  ;;  %v489_v56 = vld [vmem:[%s1958_s24 + $0xc0] sm:$0xff] }
  0x92   : > { %1472 = vmatmul.msk.f32.vlgmr.msra.gmra.mxu3 %vm525_vm0, %v1971_v42  ;;  %726 = vmatpush.msrb.mxu2 %v487_v43  ;;  %v490_v57 = vld [vmem:[%s1958_s24 + $0xc8] sm:$0xff]  ;;  %v504_v58 = vld [vmem:[%s2514_s1 + $0x18] sm:$0xff]  ;;  %v2018_v59 = vld [vmem:[%s2513_s0 + $0x10] sm:$0xff] }
  0x93   : > { %755 = vmatpush.msrb.mxu3 %v488_v44  ;;  %668 = vmatpush.msrb.mxu0 %v485_v45  ;;  %v475_v60 = vld [vmem:[%s1958_s24 + $0x50] sm:$0xff]  ;;  %v476_v61 = vld [vmem:[%s1958_s24 + $0x58] sm:$0xff]  ;;  %v473_v62 = vld [vmem:[%s1958_s24 + $0x40] sm:$0xff] }
  0x94   : > { %697 = vmatpush.msrb.mxu1 %v486_v46  ;;  %727 = vmatpush.msrb.mxu2 %v471_v47  ;;  %v474_v63 = vld [vmem:[%s1958_s24 + $0x48] sm:$0xff]  ;;  %v2035_v0 = vld [vmem:[%s2513_s0 + $0x18] sm:$0xff]  ;;  %v495_v1 = vld [vmem:[%s1958_s24 + $0xf0] sm:$0xff] }
  0x95   : > { %756 = vmatpush.msrb.mxu3 %v472_v48  ;;  %669 = vmatpush.msrb.mxu0 %v469_v49  ;;  %v496_v2 = vld [vmem:[%s1958_s24 + $0xf8] sm:$0xff]  ;;  %v493_v3 = vld [vmem:[%s1958_s24 + $0xe0] sm:$0xff]  ;;  %v494_v4 = vld [vmem:[%s1958_s24 + $0xe8] sm:$0xff] }
  0x96   : > { %698 = vmatpush.msrb.mxu1 %v470_v50  ;;  %512 = vperm.xlu0 %1587, %v502_v51   ;;  %v479_v5 = vld [vmem:[%s1958_s24 + $0x70] sm:$0xff]  ;;  %v480_v6 = vld [vmem:[%s1958_s24 + $0x78] sm:$0xff]  ;;  %v477_v7 = vld [vmem:[%s1958_s24 + $0x60] sm:$0xff] }
  0x97   : > { %842 = vmatpush.msra.mxu2 %v491_v52  ;;  %871 = vmatpush.msra.mxu3 %v492_v53  ;;  %v478_v8 = vld [vmem:[%s1958_s24 + $0x68] sm:$0xff]  ;;  %s1458_s24 = sshll.u32 %s427_s11, 9  ;;  %s1525_s11 = sshll.u32 (%p1723_p6), %s1627_s17, 4 }
  0x98   : > { %517 = vperm.xlu1 %1588, %v503_v54   ;;  %1461 = vmatmul.msk.f32.gmra.mxu0 %vm525_vm0, %v2000_v55  ;;  %s2153_s28 = scalar_lea.vmem [#allocation3], %s1458_s24  ;;  %s2159_s15 = scalar_lea.vmem [#allocation4], %s1458_s24 }
  0x99   : > { %1465 = vmatmul.msk.f32.gmra.mxu1 %vm525_vm0, %v2000_v55  ;;  %1469 = vmatmul.msk.f32.gmra.mxu2 %vm525_vm0, %v2000_v55  ;;  %v1002_v12 = vld [vmem:[%s2153_s28] sm:$0xff]  ;;  %v1003_v13 = vld [vmem:[%s2153_s28 + $0x8] sm:$0xff]  ;;  %v1004_v20 = vld [vmem:[%s2153_s28 + $0x10] sm:$0xff]  ;;  %s1203_s30 = sadd.s32 (%p1723_p6), %s1526_s29, %s1525_s11 }
  0x9a   : > { %1473 = vmatmul.msk.f32.gmra.mxu3 %vm525_vm0, %v2000_v55  ;;  %784 = vmatpush.msra.mxu0 %v489_v56  ;;  %v1005_v22 = vld [vmem:[%s2153_s28 + $0x18] sm:$0xff]  ;;  %v1018_v27 = vld [vmem:[%s2153_s28 + $0x80] sm:$0xff]  ;;  %v1019_v28 = vld [vmem:[%s2153_s28 + $0x88] sm:$0xff]  ;;  %s1527_s6 = sshll.u32 (%p1723_p6), %s1203_s30, 3 }
  0x9b   : > { %813 = vmatpush.msra.mxu1 %v490_v57  ;;  %843 = vmatpush.msra.mxu2 %v475_v60  ;;  %v1020_v37 = vld [vmem:[%s2153_s28 + $0x90] sm:$0xff]  ;;  %v1021_v39 = vld [vmem:[%s2153_s28 + $0x98] sm:$0xff]  ;;  %v1034_v44 = vld [vmem:[%s2153_s28 + $0x100] sm:$0xff]  ;;  %s2364_s8 = scalar_lea.vmem (%p1723_p6), %s2517_s4, %s1527_s6 }
  0x9c   : > { %872 = vmatpush.msra.mxu3 %v476_v61  ;;  %785 = vmatpush.msra.mxu0 %v473_v62  ;;  %v1035_v45 = vld [vmem:[%s2153_s28 + $0x108] sm:$0xff]  ;;  %v1036_v54 = vld [vmem:[%s2153_s28 + $0x110] sm:$0xff]  ;;  %v1037_v56 = vld [vmem:[%s2153_s28 + $0x118] sm:$0xff] }
  0x9d   : > { %814 = vmatpush.msra.mxu1 %v474_v63  ;;  %v1050_v61 = vld [vmem:[%s2153_s28 + $0x180] sm:$0xff]  ;;  %v1051_v62 = vld [vmem:[%s2153_s28 + $0x188] sm:$0xff] }
  0xa0   : > { %522 = vperm.xlu1 %1588, %v504_v58   ;;  %1462 = vmatmul.msk.f32.gmra.mxu0 %vm525_vm0, %v2018_v59 }
  0xa1   : > { %1466 = vmatmul.msk.f32.gmra.mxu1 %vm525_vm0, %v2018_v59  ;;  %1470 = vmatmul.msk.f32.gmra.mxu2 %vm525_vm0, %v2018_v59 }
  0xa2   : > { %1474 = vmatmul.msk.f32.gmra.mxu3 %vm525_vm0, %v2018_v59 }
  0xa8   : > { %1463 = vmatmul.msk.f32.gmra.mxu0 %vm525_vm0, %v2035_v0 }
  0xa9   : > { %1467 = vmatmul.msk.f32.gmra.mxu1 %vm525_vm0, %v2035_v0  ;;  %1471 = vmatmul.msk.f32.gmra.mxu2 %vm525_vm0, %v2035_v0 }
  0xaa   : > { %1475 = vmatmul.msk.f32.gmra.mxu3 %vm525_vm0, %v2035_v0 }
  0xb0   : > { %1476 = vmatmul.msk.f32.vlgmr.msrb.gmra.mxu0 %vm525_vm0, %v1971_v42 }
  0xb1   : > { %1480 = vmatmul.msk.f32.vlgmr.msrb.gmra.mxu1 %vm525_vm0, %v1971_v42  ;;  %1484 = vmatmul.msk.f32.vlgmr.msrb.gmra.mxu2 %vm525_vm0, %v1971_v42 }
  0xb2   : > { %1488 = vmatmul.msk.f32.vlgmr.msrb.gmra.mxu3 %vm525_vm0, %v1971_v42  ;;  %958 = vmatpush.msrb.mxu2 %v495_v1 }
  0xb3   : > { %987 = vmatpush.msrb.mxu3 %v496_v2  ;;  %900 = vmatpush.msrb.mxu0 %v493_v3 }
  0xb4   : > { %929 = vmatpush.msrb.mxu1 %v494_v4  ;;  %959 = vmatpush.msrb.mxu2 %v479_v5 }
  0xb5   : > { %988 = vmatpush.msrb.mxu3 %v480_v6  ;;  %901 = vmatpush.msrb.mxu0 %v477_v7  ;;  %v1052_v6 = vld [vmem:[%s2153_s28 + $0x190] sm:$0xff] }
  0xb6   : > { %930 = vmatpush.msrb.mxu1 %v478_v8  ;;  %v1053_v8 = vld [vmem:[%s2153_s28 + $0x198] sm:$0xff] }
  0xb8   : > { %1477 = vmatmul.msk.f32.gmra.mxu0 %vm525_vm0, %v2000_v55 }
  0xb9   : > { %1481 = vmatmul.msk.f32.gmra.mxu1 %vm525_vm0, %v2000_v55  ;;  %1485 = vmatmul.msk.f32.gmra.mxu2 %vm525_vm0, %v2000_v55 }
  0xba   : > { %1489 = vmatmul.msk.f32.gmra.mxu3 %vm525_vm0, %v2000_v55 }
  0xc0   : > { %1478 = vmatmul.msk.f32.gmra.mxu0 %vm525_vm0, %v2018_v59 }
  0xc1   : > { %1482 = vmatmul.msk.f32.gmra.mxu1 %vm525_vm0, %v2018_v59  ;;  %1486 = vmatmul.msk.f32.gmra.mxu2 %vm525_vm0, %v2018_v59 }
  0xc2   : > { %1490 = vmatmul.msk.f32.gmra.mxu3 %vm525_vm0, %v2018_v59 }
  0xc8   : > { %1479 = vmatmul.msk.f32.gmra.mxu0 %vm525_vm0, %v2035_v0 }
  0xc9   : > { %1483 = vmatmul.msk.f32.gmra.mxu1 %vm525_vm0, %v2035_v0  ;;  %1487 = vmatmul.msk.f32.gmra.mxu2 %vm525_vm0, %v2035_v0 }
  0xca   : > { %1491 = vmatmul.msk.f32.gmra.mxu3 %vm525_vm0, %v2035_v0 }
  0xd0   : > { %1492 = vmatmul.msk.f32.vlgmr.msra.gmra.mxu0 %vm525_vm0, %v1971_v42 }
  0xd1   : > { %1496 = vmatmul.msk.f32.vlgmr.msra.gmra.mxu1 %vm525_vm0, %v1971_v42  ;;  %1500 = vmatmul.msk.f32.vlgmr.msra.gmra.mxu2 %vm525_vm0, %v1971_v42 }
  0xd2   : > { %1504 = vmatmul.msk.f32.vlgmr.msra.gmra.mxu3 %vm525_vm0, %v1971_v42 }
  0xd8   : > { %1493 = vmatmul.msk.f32.gmra.mxu0 %vm525_vm0, %v2000_v55 }
  0xd9   : > { %1497 = vmatmul.msk.f32.gmra.mxu1 %vm525_vm0, %v2000_v55  ;;  %1501 = vmatmul.msk.f32.gmra.mxu2 %vm525_vm0, %v2000_v55 }
  0xda   : > { %1505 = vmatmul.msk.f32.gmra.mxu3 %vm525_vm0, %v2000_v55 }
  0xe0   : > { %1494 = vmatmul.msk.f32.gmra.mxu0 %vm525_vm0, %v2018_v59 }
  0xe1   : > { %1498 = vmatmul.msk.f32.gmra.mxu1 %vm525_vm0, %v2018_v59  ;;  %1502 = vmatmul.msk.f32.gmra.mxu2 %vm525_vm0, %v2018_v59 }
  0xe2   : > { %1506 = vmatmul.msk.f32.gmra.mxu3 %vm525_vm0, %v2018_v59 }
  0xe8   : > { %1495 = vmatmul.msk.f32.gmra.mxu0 %vm525_vm0, %v2035_v0 }
  0xe9   : > { %1499 = vmatmul.msk.f32.gmra.mxu1 %vm525_vm0, %v2035_v0  ;;  %1503 = vmatmul.msk.f32.gmra.mxu2 %vm525_vm0, %v2035_v0 }
  0xea   : > { %1507 = vmatmul.msk.f32.gmra.mxu3 %vm525_vm0, %v2035_v0 }
  0xf0   : > { %1508 = vmatmul.msk.f32.vlgmr.msrb.gmra.mxu0 %vm525_vm0, %v1971_v42 }
  0xf1   : > { %1512 = vmatmul.msk.f32.vlgmr.msrb.gmra.mxu1 %vm525_vm0, %v1971_v42  ;;  %1516 = vmatmul.msk.f32.vlgmr.msrb.gmra.mxu2 %vm525_vm0, %v1971_v42 }
  0xf2   : > { %1520 = vmatmul.msk.f32.vlgmr.msrb.gmra.mxu3 %vm525_vm0, %v1971_v42 }
  0xf8   : > { %1509 = vmatmul.msk.f32.gmra.mxu0 %vm525_vm0, %v2000_v55 }
  0xf9   : > { %1513 = vmatmul.msk.f32.gmra.mxu1 %vm525_vm0, %v2000_v55  ;;  %1517 = vmatmul.msk.f32.gmra.mxu2 %vm525_vm0, %v2000_v55 }
  0xfa   : > { %1521 = vmatmul.msk.f32.gmra.mxu3 %vm525_vm0, %v2000_v55 }
  0xfe   : > { %v2151_v9 = vpop.permute.xlu0 %507 }
 0x100   : > { %1510 = vmatmul.msk.f32.gmra.mxu0 %vm525_vm0, %v2018_v59 }
 0x101   : > { %1514 = vmatmul.msk.f32.gmra.mxu1 %vm525_vm0, %v2018_v59  ;;  %1518 = vmatmul.msk.f32.gmra.mxu2 %vm525_vm0, %v2018_v59 }
 0x102   : > { %1522 = vmatmul.msk.f32.gmra.mxu3 %vm525_vm0, %v2018_v59 }
 0x108   : > { %1511 = vmatmul.msk.f32.gmra.mxu0 %vm525_vm0, %v2035_v0  ;;  %v2163_v18 = vpop.permute.xlu0 %512 }
 0x109   : > { %1515 = vmatmul.msk.f32.gmra.mxu1 %vm525_vm0, %v2035_v0  ;;  %1519 = vmatmul.msk.f32.gmra.mxu2 %vm525_vm0, %v2035_v0 }
 0x10a   : > { %1523 = vmatmul.msk.f32.gmra.mxu3 %vm525_vm0, %v2035_v0  ;;  %v2174_v35 = vpop.permute.xlu1 %517 }
 0x10d   : > { %v555_v10 = vpop.f32.mrf.mxu0 }
 0x10e   : > { %v584_v11 = vpop.f32.mrf.mxu1  ;;  %v556_v14 = vadd.f32 %v555_v10, %v2151_v9 }
 0x10f   : > { %v585_v15 = vadd.f32 %v584_v11, %v2151_v9 }
 0x110   : > { %v1066_v16 = vadd.f32 %v1002_v12, %v556_v14 }
 0x111   : > { %v1067_v17 = vadd.f32 %v1003_v13, %v585_v15  ;;  %v1006_v13 = vld [vmem:[%s2153_s28 + $0x20] sm:$0xff]  ;;  %v1007_v15 = vld [vmem:[%s2153_s28 + $0x28] sm:$0xff] }
 0x112   : > { %1130 = vst [vmem:[%s2159_s15] sm:$0xff] %v1066_v16  ;;  %v2190_v52 = vpop.permute.xlu1 %522 }
 0x113   : > { %1131 = vst [vmem:[%s2159_s15 + $0x8] sm:$0xff] %v1067_v17 }
 0x114   : > { %v613_v19 = vpop.f32.mrf.mxu2 }
 0x115   : > { %v642_v21 = vpop.f32.mrf.mxu3  ;;  %v614_v23 = vadd.f32 %v613_v19, %v2151_v9  ;;  %v558_v25 = vpop.f32.mrf.mxu0 }
 0x116   : > { %v643_v24 = vadd.f32 %v642_v21, %v2151_v9  ;;  %v587_v26 = vpop.f32.mrf.mxu1  ;;  %v559_v29 = vadd.f32 %v558_v25, %v2163_v18 }
 0x117   : > { %v588_v30 = vadd.f32 %v587_v26, %v2163_v18  ;;  %v1068_v31 = vadd.f32 %v1004_v20, %v614_v23  ;;  %v1009_v26 = vld [vmem:[%s2153_s28 + $0x38] sm:$0xff] }
 0x118   : > { %v1069_v32 = vadd.f32 %v1005_v22, %v643_v24  ;;  %v1082_v33 = vadd.f32 %v1018_v27, %v559_v29  ;;  %v1008_v24 = vld [vmem:[%s2153_s28 + $0x30] sm:$0xff] }
 0x119   : > { %v1083_v34 = vadd.f32 %v1019_v28, %v588_v30  ;;  %1132 = vst [vmem:[%s2159_s15 + $0x10] sm:$0xff] %v1068_v31  ;;  %v1022_v30 = vld [vmem:[%s2153_s28 + $0xa0] sm:$0xff] }
 0x11a   : > { %1133 = vst [vmem:[%s2159_s15 + $0x18] sm:$0xff] %v1069_v32  ;;  %v1023_v32 = vld [vmem:[%s2153_s28 + $0xa8] sm:$0xff] }
 0x11b   : > { %1146 = vst [vmem:[%s2159_s15 + $0x80] sm:$0xff] %v1082_v33 }
 0x11c   : > { %1147 = vst [vmem:[%s2159_s15 + $0x88] sm:$0xff] %v1083_v34  ;;  %v616_v36 = vpop.f32.mrf.mxu2 }
 0x11d   : > { %v645_v38 = vpop.f32.mrf.mxu3  ;;  %v617_v40 = vadd.f32 %v616_v36, %v2163_v18  ;;  %v561_v42 = vpop.f32.mrf.mxu0 }
 0x11e   : > { %v646_v41 = vadd.f32 %v645_v38, %v2163_v18  ;;  %v590_v43 = vpop.f32.mrf.mxu1  ;;  %v562_v46 = vadd.f32 %v561_v42, %v2174_v35 }
 0x11f   : > { %v591_v47 = vadd.f32 %v590_v43, %v2174_v35  ;;  %v1084_v48 = vadd.f32 %v1020_v37, %v617_v40  ;;  %v1025_v43 = vld [vmem:[%s2153_s28 + $0xb8] sm:$0xff] }
 0x120   : > { %v1085_v49 = vadd.f32 %v1021_v39, %v646_v41  ;;  %v1098_v50 = vadd.f32 %v1034_v44, %v562_v46  ;;  %v1024_v41 = vld [vmem:[%s2153_s28 + $0xb0] sm:$0xff] }
 0x121   : > { %v1099_v51 = vadd.f32 %v1035_v45, %v591_v47  ;;  %1148 = vst [vmem:[%s2159_s15 + $0x90] sm:$0xff] %v1084_v48  ;;  %v1038_v47 = vld [vmem:[%s2153_s28 + $0x120] sm:$0xff] }
 0x122   : > { %1149 = vst [vmem:[%s2159_s15 + $0x98] sm:$0xff] %v1085_v49  ;;  %v1039_v49 = vld [vmem:[%s2153_s28 + $0x128] sm:$0xff] }
 0x123   : > { %1162 = vst [vmem:[%s2159_s15 + $0x100] sm:$0xff] %v1098_v50 }
 0x124   : > { %1163 = vst [vmem:[%s2159_s15 + $0x108] sm:$0xff] %v1099_v51  ;;  %v619_v53 = vpop.f32.mrf.mxu2 }
 0x125   : > { %v648_v55 = vpop.f32.mrf.mxu3  ;;  %v620_v57 = vadd.f32 %v619_v53, %v2174_v35  ;;  %v564_v59 = vpop.f32.mrf.mxu0 }
 0x126   : > { %v649_v58 = vadd.f32 %v648_v55, %v2174_v35  ;;  %v593_v60 = vpop.f32.mrf.mxu1  ;;  %v565_v63 = vadd.f32 %v564_v59, %v2190_v52 }
 0x127   : > { %v594_v0 = vadd.f32 %v593_v60, %v2190_v52  ;;  %v1100_v1 = vadd.f32 %v1036_v54, %v620_v57  ;;  %v1041_v60 = vld [vmem:[%s2153_s28 + $0x138] sm:$0xff] }
 0x128   : > { %v1101_v2 = vadd.f32 %v1037_v56, %v649_v58  ;;  %v1114_v3 = vadd.f32 %v1050_v61, %v565_v63  ;;  %v1040_v58 = vld [vmem:[%s2153_s28 + $0x130] sm:$0xff] }
 0x129   : > { %v1115_v4 = vadd.f32 %v1051_v62, %v594_v0  ;;  %1164 = vst [vmem:[%s2159_s15 + $0x110] sm:$0xff] %v1100_v1  ;;  %v1054_v0 = vld [vmem:[%s2153_s28 + $0x1a0] sm:$0xff] }
 0x12a   : > { %1165 = vst [vmem:[%s2159_s15 + $0x118] sm:$0xff] %v1101_v2  ;;  %v1055_v2 = vld [vmem:[%s2153_s28 + $0x1a8] sm:$0xff] }
 0x12b   : > { %1178 = vst [vmem:[%s2159_s15 + $0x180] sm:$0xff] %v1114_v3 }
 0x12c   : > { %1179 = vst [vmem:[%s2159_s15 + $0x188] sm:$0xff] %v1115_v4  ;;  %v622_v5 = vpop.f32.mrf.mxu2 }
 0x12d   : > { %v651_v7 = vpop.f32.mrf.mxu3  ;;  %v623_v10 = vadd.f32 %v622_v5, %v2190_v52  ;;  %v671_v12 = vpop.f32.mrf.mxu0 }
 0x12e   : > { %v652_v11 = vadd.f32 %v651_v7, %v2190_v52  ;;  %v700_v14 = vpop.f32.mrf.mxu1  ;;  %v672_v16 = vadd.f32 %v671_v12, %v2151_v9 }
 0x12f   : > { %v701_v17 = vadd.f32 %v700_v14, %v2151_v9  ;;  %v1116_v19 = vadd.f32 %v1052_v6, %v623_v10 }
 0x130   : > { %v1117_v20 = vadd.f32 %v1053_v8, %v652_v11  ;;  %v1070_v21 = vadd.f32 %v1006_v13, %v672_v16  ;;  %v1056_v11 = vld [vmem:[%s2153_s28 + $0x1b0] sm:$0xff]  ;;  %v1057_v13 = vld [vmem:[%s2153_s28 + $0x1b8] sm:$0xff] }
 0x131   : > { %v1071_v22 = vadd.f32 %v1007_v15, %v701_v17  ;;  %1180 = vst [vmem:[%s2159_s15 + $0x190] sm:$0xff] %v1116_v19  ;;  %v1010_v17 = vld [vmem:[%s2153_s28 + $0x40] sm:$0xff] }
 0x132   : > { %1181 = vst [vmem:[%s2159_s15 + $0x198] sm:$0xff] %v1117_v20  ;;  %v1011_v20 = vld [vmem:[%s2153_s28 + $0x48] sm:$0xff] }
 0x133   : > { %1134 = vst [vmem:[%s2159_s15 + $0x20] sm:$0xff] %v1070_v21 }
 0x134   : > { %1135 = vst [vmem:[%s2159_s15 + $0x28] sm:$0xff] %v1071_v22  ;;  %v729_v23 = vpop.f32.mrf.mxu2 }
 0x135   : > { %v758_v25 = vpop.f32.mrf.mxu3  ;;  %v730_v27 = vadd.f32 %v729_v23, %v2151_v9  ;;  %v674_v29 = vpop.f32.mrf.mxu0 }
 0x136   : > { %v759_v28 = vadd.f32 %v758_v25, %v2151_v9  ;;  %v703_v31 = vpop.f32.mrf.mxu1  ;;  %v675_v33 = vadd.f32 %v674_v29, %v2163_v18 }
 0x137   : > { %v704_v34 = vadd.f32 %v703_v31, %v2163_v18  ;;  %v1072_v36 = vadd.f32 %v1008_v24, %v730_v27 }
 0x138   : > { %v1073_v37 = vadd.f32 %v1009_v26, %v759_v28  ;;  %v1086_v38 = vadd.f32 %v1022_v30, %v675_v33  ;;  %v1012_v28 = vld [vmem:[%s2153_s28 + $0x50] sm:$0xff]  ;;  %v1013_v30 = vld [vmem:[%s2153_s28 + $0x58] sm:$0xff] }
 0x139   : > { %v1087_v39 = vadd.f32 %v1023_v32, %v704_v34  ;;  %1136 = vst [vmem:[%s2159_s15 + $0x30] sm:$0xff] %v1072_v36  ;;  %v1026_v34 = vld [vmem:[%s2153_s28 + $0xc0] sm:$0xff] }
 0x13a   : > { %1137 = vst [vmem:[%s2159_s15 + $0x38] sm:$0xff] %v1073_v37  ;;  %v1027_v37 = vld [vmem:[%s2153_s28 + $0xc8] sm:$0xff] }
 0x13b   : > { %1150 = vst [vmem:[%s2159_s15 + $0xa0] sm:$0xff] %v1086_v38 }
 0x13c   : > { %1151 = vst [vmem:[%s2159_s15 + $0xa8] sm:$0xff] %v1087_v39  ;;  %v732_v40 = vpop.f32.mrf.mxu2 }
 0x13d   : > { %v761_v42 = vpop.f32.mrf.mxu3  ;;  %v733_v44 = vadd.f32 %v732_v40, %v2163_v18  ;;  %v677_v46 = vpop.f32.mrf.mxu0 }
 0x13e   : > { %v762_v45 = vadd.f32 %v761_v42, %v2163_v18  ;;  %v706_v48 = vpop.f32.mrf.mxu1  ;;  %v678_v50 = vadd.f32 %v677_v46, %v2174_v35 }
 0x13f   : > { %v707_v51 = vadd.f32 %v706_v48, %v2174_v35  ;;  %v1088_v53 = vadd.f32 %v1024_v41, %v733_v44 }
 0x140   : > { %v1089_v54 = vadd.f32 %v1025_v43, %v762_v45  ;;  %v1102_v55 = vadd.f32 %v1038_v47, %v678_v50  ;;  %v1028_v45 = vld [vmem:[%s2153_s28 + $0xd0] sm:$0xff]  ;;  %v1029_v47 = vld [vmem:[%s2153_s28 + $0xd8] sm:$0xff] }
 0x141   : > { %v1103_v56 = vadd.f32 %v1039_v49, %v707_v51  ;;  %1152 = vst [vmem:[%s2159_s15 + $0xb0] sm:$0xff] %v1088_v53  ;;  %v1042_v51 = vld [vmem:[%s2153_s28 + $0x140] sm:$0xff] }
 0x142   : > { %1153 = vst [vmem:[%s2159_s15 + $0xb8] sm:$0xff] %v1089_v54  ;;  %v1043_v54 = vld [vmem:[%s2153_s28 + $0x148] sm:$0xff] }
 0x143   : > { %1166 = vst [vmem:[%s2159_s15 + $0x120] sm:$0xff] %v1102_v55 }
 0x144   : > { %1167 = vst [vmem:[%s2159_s15 + $0x128] sm:$0xff] %v1103_v56  ;;  %v735_v57 = vpop.f32.mrf.mxu2 }
 0x145   : > { %v764_v59 = vpop.f32.mrf.mxu3  ;;  %v736_v61 = vadd.f32 %v735_v57, %v2174_v35  ;;  %v680_v63 = vpop.f32.mrf.mxu0 }
 0x146   : > { %v765_v62 = vadd.f32 %v764_v59, %v2174_v35  ;;  %v709_v1 = vpop.f32.mrf.mxu1  ;;  %v681_v3 = vadd.f32 %v680_v63, %v2190_v52 }
 0x147   : > { %v710_v4 = vadd.f32 %v709_v1, %v2190_v52  ;;  %v1104_v5 = vadd.f32 %v1040_v58, %v736_v61 }
 0x148   : > { %v1105_v6 = vadd.f32 %v1041_v60, %v765_v62  ;;  %v1118_v7 = vadd.f32 %v1054_v0, %v681_v3  ;;  %v1044_v62 = vld [vmem:[%s2153_s28 + $0x150] sm:$0xff]  ;;  %v1045_v0 = vld [vmem:[%s2153_s28 + $0x158] sm:$0xff] }
 0x149   : > { %v1119_v8 = vadd.f32 %v1055_v2, %v710_v4  ;;  %1168 = vst [vmem:[%s2159_s15 + $0x130] sm:$0xff] %v1104_v5  ;;  %v1058_v4 = vld [vmem:[%s2153_s28 + $0x1c0] sm:$0xff] }
 0x14a   : > { %1169 = vst [vmem:[%s2159_s15 + $0x138] sm:$0xff] %v1105_v6  ;;  %v1059_v6 = vld [vmem:[%s2153_s28 + $0x1c8] sm:$0xff] }
 0x14b   : > { %1182 = vst [vmem:[%s2159_s15 + $0x1a0] sm:$0xff] %v1118_v7 }
 0x14c   : > { %1183 = vst [vmem:[%s2159_s15 + $0x1a8] sm:$0xff] %v1119_v8  ;;  %v738_v10 = vpop.f32.mrf.mxu2 }
 0x14d   : > { %v767_v12 = vpop.f32.mrf.mxu3  ;;  %v739_v14 = vadd.f32 %v738_v10, %v2190_v52  ;;  %v787_v16 = vpop.f32.mrf.mxu0 }
 0x14e   : > { %v768_v15 = vadd.f32 %v767_v12, %v2190_v52  ;;  %v816_v19 = vpop.f32.mrf.mxu1  ;;  %v788_v21 = vadd.f32 %v787_v16, %v2151_v9 }
 0x14f   : > { %v817_v22 = vadd.f32 %v816_v19, %v2151_v9  ;;  %v1120_v23 = vadd.f32 %v1056_v11, %v739_v14 }
 0x150   : > { %v1121_v24 = vadd.f32 %v1057_v13, %v768_v15  ;;  %v1074_v25 = vadd.f32 %v1010_v17, %v788_v21  ;;  %v1060_v15 = vld [vmem:[%s2153_s28 + $0x1d0] sm:$0xff]  ;;  %v1061_v17 = vld [vmem:[%s2153_s28 + $0x1d8] sm:$0xff] }
 0x151   : > { %v1075_v26 = vadd.f32 %v1011_v20, %v817_v22  ;;  %1184 = vst [vmem:[%s2159_s15 + $0x1b0] sm:$0xff] %v1120_v23  ;;  %v1014_v22 = vld [vmem:[%s2153_s28 + $0x60] sm:$0xff] }
 0x152   : > { %1185 = vst [vmem:[%s2159_s15 + $0x1b8] sm:$0xff] %v1121_v24  ;;  %v1015_v24 = vld [vmem:[%s2153_s28 + $0x68] sm:$0xff] }
 0x153   : > { %1138 = vst [vmem:[%s2159_s15 + $0x40] sm:$0xff] %v1074_v25 }
 0x154   : > { %1139 = vst [vmem:[%s2159_s15 + $0x48] sm:$0xff] %v1075_v26  ;;  %v845_v27 = vpop.f32.mrf.mxu2 }
 0x155   : > { %v874_v29 = vpop.f32.mrf.mxu3  ;;  %v846_v31 = vadd.f32 %v845_v27, %v2151_v9  ;;  %v790_v33 = vpop.f32.mrf.mxu0 }
 0x156   : > { %v875_v32 = vadd.f32 %v874_v29, %v2151_v9  ;;  %v819_v36 = vpop.f32.mrf.mxu1  ;;  %v791_v38 = vadd.f32 %v790_v33, %v2163_v18 }
 0x157   : > { %v820_v39 = vadd.f32 %v819_v36, %v2163_v18  ;;  %v1076_v40 = vadd.f32 %v1012_v28, %v846_v31 }
 0x158   : > { %v1077_v41 = vadd.f32 %v1013_v30, %v875_v32  ;;  %v1090_v42 = vadd.f32 %v1026_v34, %v791_v38  ;;  %v1016_v32 = vld [vmem:[%s2153_s28 + $0x70] sm:$0xff]  ;;  %v1017_v34 = vld [vmem:[%s2153_s28 + $0x78] sm:$0xff] }
 0x159   : > { %v1091_v43 = vadd.f32 %v1027_v37, %v820_v39  ;;  %1140 = vst [vmem:[%s2159_s15 + $0x50] sm:$0xff] %v1076_v40  ;;  %v1030_v39 = vld [vmem:[%s2153_s28 + $0xe0] sm:$0xff] }
 0x15a   : > { %1141 = vst [vmem:[%s2159_s15 + $0x58] sm:$0xff] %v1077_v41  ;;  %v1031_v41 = vld [vmem:[%s2153_s28 + $0xe8] sm:$0xff] }
 0x15b   : > { %1154 = vst [vmem:[%s2159_s15 + $0xc0] sm:$0xff] %v1090_v42 }
 0x15c   : > { %1155 = vst [vmem:[%s2159_s15 + $0xc8] sm:$0xff] %v1091_v43  ;;  %v848_v44 = vpop.f32.mrf.mxu2 }
 0x15d   : > { %v877_v46 = vpop.f32.mrf.mxu3  ;;  %v849_v48 = vadd.f32 %v848_v44, %v2163_v18  ;;  %v793_v50 = vpop.f32.mrf.mxu0 }
 0x15e   : > { %v878_v49 = vadd.f32 %v877_v46, %v2163_v18  ;;  %v822_v53 = vpop.f32.mrf.mxu1  ;;  %v794_v55 = vadd.f32 %v793_v50, %v2174_v35  ;;  %v1033_v50 = vld [vmem:[%s2153_s28 + $0xf8] sm:$0xff] }
 0x15f   : > { %v823_v56 = vadd.f32 %v822_v53, %v2174_v35  ;;  %v1092_v57 = vadd.f32 %v1028_v45, %v849_v48  ;;  %v1032_v48 = vld [vmem:[%s2153_s28 + $0xf0] sm:$0xff] }
 0x160   : > { %v1093_v58 = vadd.f32 %v1029_v47, %v878_v49  ;;  %v1106_v59 = vadd.f32 %v1042_v51, %v794_v55  ;;  %v1046_v55 = vld [vmem:[%s2153_s28 + $0x160] sm:$0xff] }
 0x161   : > { %v1107_v60 = vadd.f32 %v1043_v54, %v823_v56  ;;  %1156 = vst [vmem:[%s2159_s15 + $0xd0] sm:$0xff] %v1092_v57  ;;  %v1047_v57 = vld [vmem:[%s2153_s28 + $0x168] sm:$0xff] }
 0x162   : > { %1157 = vst [vmem:[%s2159_s15 + $0xd8] sm:$0xff] %v1093_v58 }
 0x163   : > { %1170 = vst [vmem:[%s2159_s15 + $0x140] sm:$0xff] %v1106_v59 }
 0x164   : > { %1171 = vst [vmem:[%s2159_s15 + $0x148] sm:$0xff] %v1107_v60  ;;  %v851_v61 = vpop.f32.mrf.mxu2 }
 0x165   : > { %v880_v63 = vpop.f32.mrf.mxu3  ;;  %v852_v1 = vadd.f32 %v851_v61, %v2174_v35  ;;  %v796_v3 = vpop.f32.mrf.mxu0 }
 0x166   : > { %v881_v2 = vadd.f32 %v880_v63, %v2174_v35  ;;  %v825_v5 = vpop.f32.mrf.mxu1  ;;  %v797_v7 = vadd.f32 %v796_v3, %v2190_v52 }
 0x167   : > { %v826_v8 = vadd.f32 %v825_v5, %v2190_v52  ;;  %v1108_v10 = vadd.f32 %v1044_v62, %v852_v1 }
 0x168   : > { %v1109_v11 = vadd.f32 %v1045_v0, %v881_v2  ;;  %v1122_v12 = vadd.f32 %v1058_v4, %v797_v7  ;;  %v1048_v0 = vld [vmem:[%s2153_s28 + $0x170] sm:$0xff]  ;;  %v1049_v2 = vld [vmem:[%s2153_s28 + $0x178] sm:$0xff] }
 0x169   : > { %v1123_v13 = vadd.f32 %v1059_v6, %v826_v8  ;;  %1172 = vst [vmem:[%s2159_s15 + $0x150] sm:$0xff] %v1108_v10  ;;  %v1062_v6 = vld [vmem:[%s2153_s28 + $0x1e0] sm:$0xff]  ;;  %v1063_v8 = vld [vmem:[%s2153_s28 + $0x1e8] sm:$0xff] }
 0x16a   : > { %1173 = vst [vmem:[%s2159_s15 + $0x158] sm:$0xff] %v1109_v11 }
 0x16b   : > { %1186 = vst [vmem:[%s2159_s15 + $0x1c0] sm:$0xff] %v1122_v12 }
 0x16c   : > { %1187 = vst [vmem:[%s2159_s15 + $0x1c8] sm:$0xff] %v1123_v13  ;;  %v854_v14 = vpop.f32.mrf.mxu2 }
 0x16d   : > { %v883_v16 = vpop.f32.mrf.mxu3  ;;  %v855_v19 = vadd.f32 %v854_v14, %v2190_v52  ;;  %v903_v21 = vpop.f32.mrf.mxu0 }
 0x16e   : > { %v884_v20 = vadd.f32 %v883_v16, %v2190_v52  ;;  %v932_v23 = vpop.f32.mrf.mxu1  ;;  %v904_v25 = vadd.f32 %v903_v21, %v2151_v9  ;;  %v1064_v16 = vld [vmem:[%s2153_s28 + $0x1f0] sm:$0xff] }
 0x16f   : > { %v933_v26 = vadd.f32 %v932_v23, %v2151_v9  ;;  %v1124_v27 = vadd.f32 %v1060_v15, %v855_v19  ;;  %v1065_v19 = vld [vmem:[%s2153_s28 + $0x1f8] sm:$0xff] }
 0x170   : > { %v1125_v28 = vadd.f32 %v1061_v17, %v884_v20  ;;  %v1078_v29 = vadd.f32 %v1014_v22, %v904_v25  ;;  %v1222_v25 = vld [vmem:[%s2159_s15 + $0x10] sm:$0xff] (%p1723_p6) }
 0x171   : > { %v1079_v30 = vadd.f32 %v1015_v24, %v933_v26  ;;  %1188 = vst [vmem:[%s2159_s15 + $0x1d0] sm:$0xff] %v1124_v27  ;;  %v1220_v24 = vld [vmem:[%s2159_s15 + $0x8] sm:$0xff] (%p1723_p6)  ;;  %v1224_v26 = vld [vmem:[%s2159_s15 + $0x18] sm:$0xff] (%p1723_p6)  ;;  %v1226_v27 = vld [vmem:[%s2159_s15 + $0x20] sm:$0xff] (%p1723_p6) }
 0x172   : > { %1189 = vst [vmem:[%s2159_s15 + $0x1d8] sm:$0xff] %v1125_v28  ;;  %v1228_v28 = vld [vmem:[%s2159_s15 + $0x28] sm:$0xff] (%p1723_p6) }
 0x173   : > { %1142 = vst [vmem:[%s2159_s15 + $0x60] sm:$0xff] %v1078_v29  ;;  %v1230_v29 = vld [vmem:[%s2159_s15 + $0x30] sm:$0xff] (%p1723_p6) }
 0x174   : > { %1143 = vst [vmem:[%s2159_s15 + $0x68] sm:$0xff] %v1079_v30  ;;  %v961_v31 = vpop.f32.mrf.mxu2  ;;  %v1232_v30 = vld [vmem:[%s2159_s15 + $0x38] sm:$0xff] (%p1723_p6) }
 0x175   : > { %v990_v33 = vpop.f32.mrf.mxu3  ;;  %v962_v36 = vadd.f32 %v961_v31, %v2151_v9  ;;  %v906_v38 = vpop.f32.mrf.mxu0  ;;  %1221 = vst [vmem:[%s2364_s8 + $0x8] sm:$0xff] (%p1723_p6), %v1220_v24  ;;  %v1234_v31 = vld [vmem:[%s2159_s15 + $0x40] sm:$0xff] (%p1723_p6) }
 0x176   : > { %v991_v37 = vadd.f32 %v990_v33, %v2151_v9  ;;  %v935_v40 = vpop.f32.mrf.mxu1  ;;  %v907_v42 = vadd.f32 %v906_v38, %v2163_v18  ;;  %1223 = vst [vmem:[%s2364_s8 + $0x10] sm:$0xff] (%p1723_p6), %v1222_v25  ;;  %v1238_v33 = vld [vmem:[%s2159_s15 + $0x50] sm:$0xff] (%p1723_p6) }
 0x177   : > { %v936_v43 = vadd.f32 %v935_v40, %v2163_v18  ;;  %v1080_v44 = vadd.f32 %v1016_v32, %v962_v36  ;;  %1225 = vst [vmem:[%s2364_s8 + $0x18] sm:$0xff] (%p1723_p6), %v1224_v26  ;;  %v1236_v32 = vld [vmem:[%s2159_s15 + $0x48] sm:$0xff] (%p1723_p6)  ;;  %v1250_v40 = vld [vmem:[%s2159_s15 + $0x80] sm:$0xff] (%p1723_p6) }
 0x178   : > { %v1081_v45 = vadd.f32 %v1017_v34, %v991_v37  ;;  %v1094_v46 = vadd.f32 %v1030_v39, %v907_v42  ;;  %1227 = vst [vmem:[%s2364_s8 + $0x20] sm:$0xff] (%p1723_p6), %v1226_v27  ;;  %v1240_v34 = vld [vmem:[%s2159_s15 + $0x58] sm:$0xff] (%p1723_p6)  ;;  %v1254_v42 = vld [vmem:[%s2159_s15 + $0x90] sm:$0xff] (%p1723_p6) }
 0x179   : > { %v1095_v47 = vadd.f32 %v1031_v41, %v936_v43  ;;  %1144 = vst [vmem:[%s2159_s15 + $0x70] sm:$0xff] %v1080_v44  ;;  %v1252_v41 = vld [vmem:[%s2159_s15 + $0x88] sm:$0xff] (%p1723_p6)  ;;  %v1256_v43 = vld [vmem:[%s2159_s15 + $0x98] sm:$0xff] (%p1723_p6)  ;;  %v1258_v44 = vld [vmem:[%s2159_s15 + $0xa0] sm:$0xff] (%p1723_p6) }
 0x17a   : > { %1145 = vst [vmem:[%s2159_s15 + $0x78] sm:$0xff] %v1081_v45  ;;  %v1242_v36 = vld [vmem:[%s2159_s15 + $0x60] sm:$0xff] (%p1723_p6)  ;;  %v1260_v45 = vld [vmem:[%s2159_s15 + $0xa8] sm:$0xff] (%p1723_p6) }
 0x17b   : > { %1158 = vst [vmem:[%s2159_s15 + $0xe0] sm:$0xff] %v1094_v46  ;;  %v1244_v37 = vld [vmem:[%s2159_s15 + $0x68] sm:$0xff] (%p1723_p6)  ;;  %v1262_v46 = vld [vmem:[%s2159_s15 + $0xb0] sm:$0xff] (%p1723_p6) }
 0x17c   : > { %1159 = vst [vmem:[%s2159_s15 + $0xe8] sm:$0xff] %v1095_v47  ;;  %v964_v9 = vpop.f32.mrf.mxu2  ;;  %v1264_v47 = vld [vmem:[%s2159_s15 + $0xb8] sm:$0xff] (%p1723_p6) }
 0x17d   : > { %v993_v49 = vpop.f32.mrf.mxu3  ;;  %v965_v51 = vadd.f32 %v964_v9, %v2163_v18  ;;  %v909_v54 = vpop.f32.mrf.mxu0  ;;  %1229 = vst [vmem:[%s2364_s8 + $0x28] sm:$0xff] (%p1723_p6), %v1228_v28  ;;  %v1266_v9 = vld [vmem:[%s2159_s15 + $0xc0] sm:$0xff] (%p1723_p6) }
 0x17e   : > { %v994_v53 = vadd.f32 %v993_v49, %v2163_v18  ;;  %v938_v56 = vpop.f32.mrf.mxu1  ;;  %v910_v58 = vadd.f32 %v909_v54, %v2174_v35  ;;  %1231 = vst [vmem:[%s2364_s8 + $0x30] sm:$0xff] (%p1723_p6), %v1230_v29  ;;  %v1270_v49 = vld [vmem:[%s2159_s15 + $0xd0] sm:$0xff] (%p1723_p6) }
 0x17f   : > { %v939_v59 = vadd.f32 %v938_v56, %v2174_v35  ;;  %v1096_v60 = vadd.f32 %v1032_v48, %v965_v51  ;;  %1233 = vst [vmem:[%s2364_s8 + $0x38] sm:$0xff] (%p1723_p6), %v1232_v30  ;;  %v1268_v48 = vld [vmem:[%s2159_s15 + $0xc8] sm:$0xff] (%p1723_p6)  ;;  %v1282_v56 = vld [vmem:[%s2159_s15 + $0x100] sm:$0xff] (%p1723_p6) }
 0x180   : > { %v1097_v61 = vadd.f32 %v1033_v50, %v994_v53  ;;  %v1110_v62 = vadd.f32 %v1046_v55, %v910_v58  ;;  %1235 = vst [vmem:[%s2364_s8 + $0x40] sm:$0xff] (%p1723_p6), %v1234_v31  ;;  %v1246_v38 = vld [vmem:[%s2159_s15 + $0x70] sm:$0xff] (%p1723_p6)  ;;  %v1272_v50 = vld [vmem:[%s2159_s15 + $0xd8] sm:$0xff] (%p1723_p6) }
 0x181   : > { %v1111_v63 = vadd.f32 %v1047_v57, %v939_v59  ;;  %1160 = vst [vmem:[%s2159_s15 + $0xf0] sm:$0xff] %v1096_v60  ;;  %v1248_v39 = vld [vmem:[%s2159_s15 + $0x78] sm:$0xff] (%p1723_p6)  ;;  %v1284_v57 = vld [vmem:[%s2159_s15 + $0x108] sm:$0xff] (%p1723_p6)  ;;  %v1286_v58 = vld [vmem:[%s2159_s15 + $0x110] sm:$0xff] (%p1723_p6) }
 0x182   : > { %1161 = vst [vmem:[%s2159_s15 + $0xf8] sm:$0xff] %v1097_v61  ;;  %v1274_v51 = vld [vmem:[%s2159_s15 + $0xe0] sm:$0xff] (%p1723_p6)  ;;  %v1288_v59 = vld [vmem:[%s2159_s15 + $0x118] sm:$0xff] (%p1723_p6)  ;;  %v1292_v61 = vld [vmem:[%s2159_s15 + $0x128] sm:$0xff] (%p1723_p6) }
 0x183   : > { %1174 = vst [vmem:[%s2159_s15 + $0x160] sm:$0xff] %v1110_v62  ;;  %v1276_v53 = vld [vmem:[%s2159_s15 + $0xe8] sm:$0xff] (%p1723_p6)  ;;  %v1290_v60 = vld [vmem:[%s2159_s15 + $0x120] sm:$0xff] (%p1723_p6)  ;;  %v1294_v62 = vld [vmem:[%s2159_s15 + $0x130] sm:$0xff] (%p1723_p6) }
 0x184   : > { %1175 = vst [vmem:[%s2159_s15 + $0x168] sm:$0xff] %v1111_v63  ;;  %v967_v18 = vpop.f32.mrf.mxu2  ;;  %v1296_v63 = vld [vmem:[%s2159_s15 + $0x138] sm:$0xff] (%p1723_p6) }
 0x185   : > { %v996_v1 = vpop.f32.mrf.mxu3  ;;  %v968_v3 = vadd.f32 %v967_v18, %v2174_v35  ;;  %v912_v5 = vpop.f32.mrf.mxu0  ;;  %1237 = vst [vmem:[%s2364_s8 + $0x48] sm:$0xff] (%p1723_p6), %v1236_v32  ;;  %v1298_v18 = vld [vmem:[%s2159_s15 + $0x140] sm:$0xff] (%p1723_p6) }
 0x186   : > { %v997_v4 = vadd.f32 %v996_v1, %v2174_v35  ;;  %v941_v7 = vpop.f32.mrf.mxu1  ;;  %v913_v10 = vadd.f32 %v912_v5, %v2190_v52  ;;  %1239 = vst [vmem:[%s2364_s8 + $0x50] sm:$0xff] (%p1723_p6), %v1238_v33  ;;  %v1302_v1 = vld [vmem:[%s2159_s15 + $0x150] sm:$0xff] (%p1723_p6) }
 0x187   : > { %v942_v11 = vadd.f32 %v941_v7, %v2190_v52  ;;  %v1112_v12 = vadd.f32 %v1048_v0, %v968_v3  ;;  %1241 = vst [vmem:[%s2364_s8 + $0x58] sm:$0xff] (%p1723_p6), %v1240_v34  ;;  %v1300_v0 = vld [vmem:[%s2159_s15 + $0x148] sm:$0xff] (%p1723_p6)  ;;  %v1314_v7 = vld [vmem:[%s2159_s15 + $0x180] sm:$0xff] (%p1723_p6) }
 0x188   : > { %v1113_v13 = vadd.f32 %v1049_v2, %v997_v4  ;;  %v1126_v14 = vadd.f32 %v1062_v6, %v913_v10  ;;  %1243 = vst [vmem:[%s2364_s8 + $0x60] sm:$0xff] (%p1723_p6), %v1242_v36  ;;  %v1278_v54 = vld [vmem:[%s2159_s15 + $0xf0] sm:$0xff] (%p1723_p6)  ;;  %v1304_v2 = vld [vmem:[%s2159_s15 + $0x158] sm:$0xff] (%p1723_p6) }
 0x189   : > { %v1127_v15 = vadd.f32 %v1063_v8, %v942_v11  ;;  %1176 = vst [vmem:[%s2159_s15 + $0x170] sm:$0xff] %v1112_v12  ;;  %v1280_v55 = vld [vmem:[%s2159_s15 + $0xf8] sm:$0xff] (%p1723_p6)  ;;  %v1316_v8 = vld [vmem:[%s2159_s15 + $0x188] sm:$0xff] (%p1723_p6)  ;;  %v1318_v10 = vld [vmem:[%s2159_s15 + $0x190] sm:$0xff] (%p1723_p6) }
 0x18a   : > { %1177 = vst [vmem:[%s2159_s15 + $0x178] sm:$0xff] %v1113_v13  ;;  %v1306_v3 = vld [vmem:[%s2159_s15 + $0x160] sm:$0xff] (%p1723_p6)  ;;  %v1320_v11 = vld [vmem:[%s2159_s15 + $0x198] sm:$0xff] (%p1723_p6)  ;;  %v1324_v13 = vld [vmem:[%s2159_s15 + $0x1a8] sm:$0xff] (%p1723_p6) }
 0x18b   : > { %1190 = vst [vmem:[%s2159_s15 + $0x1e0] sm:$0xff] %v1126_v14  ;;  %v1308_v4 = vld [vmem:[%s2159_s15 + $0x168] sm:$0xff] (%p1723_p6)  ;;  %v1322_v12 = vld [vmem:[%s2159_s15 + $0x1a0] sm:$0xff] (%p1723_p6)  ;;  %v1326_v14 = vld [vmem:[%s2159_s15 + $0x1b0] sm:$0xff] (%p1723_p6) }
 0x18c   : > { %1191 = vst [vmem:[%s2159_s15 + $0x1e8] sm:$0xff] %v1127_v15  ;;  %v970_v35 = vpop.f32.mrf.mxu2  ;;  %v1328_v15 = vld [vmem:[%s2159_s15 + $0x1b8] sm:$0xff] (%p1723_p6) }
 0x18d   : > { %v999_v17 = vpop.f32.mrf.mxu3  ;;  %v971_v20 = vadd.f32 %v970_v35, %v2190_v52  ;;  %1245 = vst [vmem:[%s2364_s8 + $0x68] sm:$0xff] (%p1723_p6), %v1244_v37  ;;  %v1330_v35 = vld [vmem:[%s2159_s15 + $0x1c0] sm:$0xff] (%p1723_p6) }
 0x18e   : > { %v1000_v21 = vadd.f32 %v999_v17, %v2190_v52  ;;  %1200 = sbr.rel (!%p1723_p6) target bundleno = 451 (0x1c3), region = 86  ;;  %v1218_v52 = vld [vmem:[%s2159_s15] sm:$0xff] (%p1723_p6)  ;;  %1247 = vst [vmem:[%s2364_s8 + $0x70] sm:$0xff] (%p1723_p6), %v1246_v38  ;;  %v1334_v17 = vld [vmem:[%s2159_s15 + $0x1d0] sm:$0xff] (%p1723_p6) }
 0x18f   : > { %v1128_v22 = vadd.f32 %v1064_v16, %v971_v20  ;;  %1219 = vst [vmem:[%s2364_s8] sm:$0xff] (%p1723_p6), %v1218_v52  ;;  %v1332_v16 = vld [vmem:[%s2159_s15 + $0x1c8] sm:$0xff] (%p1723_p6) }
 0x190   : > { %v1129_v23 = vadd.f32 %v1065_v19, %v1000_v21  ;;  %1249 = vst [vmem:[%s2364_s8 + $0x78] sm:$0xff] (%p1723_p6), %v1248_v39  ;;  %v1310_v5 = vld [vmem:[%s2159_s15 + $0x170] sm:$0xff] (%p1723_p6)  ;;  %v1336_v19 = vld [vmem:[%s2159_s15 + $0x1d8] sm:$0xff] (%p1723_p6) }
 0x191   : > { %1192 = vst [vmem:[%s2159_s15 + $0x1f0] sm:$0xff] %v1128_v22  ;;  %v1312_v6 = vld [vmem:[%s2159_s15 + $0x178] sm:$0xff] (%p1723_p6) }
 0x192   : > { %1193 = vst [vmem:[%s2159_s15 + $0x1f8] sm:$0xff] %v1129_v23  ;;  %v1338_v20 = vld [vmem:[%s2159_s15 + $0x1e0] sm:$0xff] (%p1723_p6) }
 0x193   : > { %1251 = vst [vmem:[%s2364_s8 + $0x100] sm:$0xff] %v1250_v40  ;;  %v1340_v21 = vld [vmem:[%s2159_s15 + $0x1e8] sm:$0xff] }
 0x194   : > { %1253 = vst [vmem:[%s2364_s8 + $0x108] sm:$0xff] %v1252_v41 }
 0x195   : > { %1255 = vst [vmem:[%s2364_s8 + $0x110] sm:$0xff] %v1254_v42 }
 0x196   : > { %1257 = vst [vmem:[%s2364_s8 + $0x118] sm:$0xff] %v1256_v43 }
 0x197   : > { %1259 = vst [vmem:[%s2364_s8 + $0x120] sm:$0xff] %v1258_v44 }
 0x198   : > { %1261 = vst [vmem:[%s2364_s8 + $0x128] sm:$0xff] %v1260_v45  ;;  %v1342_v22 = vld [vmem:[%s2159_s15 + $0x1f0] sm:$0xff] }
 0x199   : > { %1263 = vst [vmem:[%s2364_s8 + $0x130] sm:$0xff] %v1262_v46  ;;  %v1344_v23 = vld [vmem:[%s2159_s15 + $0x1f8] sm:$0xff] }
 0x19a   : > { %1265 = vst [vmem:[%s2364_s8 + $0x138] sm:$0xff] %v1264_v47 }
 0x19b   : > { %1267 = vst [vmem:[%s2364_s8 + $0x140] sm:$0xff] %v1266_v9 }
 0x19c   : > { %1269 = vst [vmem:[%s2364_s8 + $0x148] sm:$0xff] %v1268_v48 }
 0x19d   : > { %1271 = vst [vmem:[%s2364_s8 + $0x150] sm:$0xff] %v1270_v49 }
 0x19e   : > { %1273 = vst [vmem:[%s2364_s8 + $0x158] sm:$0xff] %v1272_v50 }
 0x19f   : > { %1275 = vst [vmem:[%s2364_s8 + $0x160] sm:$0xff] %v1274_v51 }
 0x1a0   : > { %1277 = vst [vmem:[%s2364_s8 + $0x168] sm:$0xff] %v1276_v53 }
 0x1a1   : > { %1279 = vst [vmem:[%s2364_s8 + $0x170] sm:$0xff] %v1278_v54 }
 0x1a2   : > { %1281 = vst [vmem:[%s2364_s8 + $0x178] sm:$0xff] %v1280_v55 }
 0x1a3   : > { %1283 = vst [vmem:[%s2364_s8 + $0x200] sm:$0xff] %v1282_v56 }
 0x1a4   : > { %1285 = vst [vmem:[%s2364_s8 + $0x208] sm:$0xff] %v1284_v57 }
 0x1a5   : > { %1287 = vst [vmem:[%s2364_s8 + $0x210] sm:$0xff] %v1286_v58 }
 0x1a6   : > { %1289 = vst [vmem:[%s2364_s8 + $0x218] sm:$0xff] %v1288_v59 }
 0x1a7   : > { %1291 = vst [vmem:[%s2364_s8 + $0x220] sm:$0xff] %v1290_v60 }
 0x1a8   : > { %1293 = vst [vmem:[%s2364_s8 + $0x228] sm:$0xff] %v1292_v61 }
 0x1a9   : > { %1295 = vst [vmem:[%s2364_s8 + $0x230] sm:$0xff] %v1294_v62 }
 0x1aa   : > { %1297 = vst [vmem:[%s2364_s8 + $0x238] sm:$0xff] %v1296_v63 }
 0x1ab   : > { %1299 = vst [vmem:[%s2364_s8 + $0x240] sm:$0xff] %v1298_v18 }
 0x1ac   : > { %1301 = vst [vmem:[%s2364_s8 + $0x248] sm:$0xff] %v1300_v0 }
 0x1ad   : > { %1303 = vst [vmem:[%s2364_s8 + $0x250] sm:$0xff] %v1302_v1 }
 0x1ae   : > { %1305 = vst [vmem:[%s2364_s8 + $0x258] sm:$0xff] %v1304_v2 }
 0x1af   : > { %1307 = vst [vmem:[%s2364_s8 + $0x260] sm:$0xff] %v1306_v3 }
 0x1b0   : > { %1309 = vst [vmem:[%s2364_s8 + $0x268] sm:$0xff] %v1308_v4 }
 0x1b1   : > { %1311 = vst [vmem:[%s2364_s8 + $0x270] sm:$0xff] %v1310_v5 }
 0x1b2   : > { %1313 = vst [vmem:[%s2364_s8 + $0x278] sm:$0xff] %v1312_v6 }
 0x1b3   : > { %1315 = vst [vmem:[%s2364_s8 + $0x300] sm:$0xff] %v1314_v7 }
 0x1b4   : > { %1317 = vst [vmem:[%s2364_s8 + $0x308] sm:$0xff] %v1316_v8 }
 0x1b5   : > { %1319 = vst [vmem:[%s2364_s8 + $0x310] sm:$0xff] %v1318_v10 }
 0x1b6   : > { %1321 = vst [vmem:[%s2364_s8 + $0x318] sm:$0xff] %v1320_v11 }
 0x1b7   : > { %1323 = vst [vmem:[%s2364_s8 + $0x320] sm:$0xff] %v1322_v12 }
 0x1b8   : > { %1325 = vst [vmem:[%s2364_s8 + $0x328] sm:$0xff] %v1324_v13 }
 0x1b9   : > { %1327 = vst [vmem:[%s2364_s8 + $0x330] sm:$0xff] %v1326_v14 }
 0x1ba   : > { %1329 = vst [vmem:[%s2364_s8 + $0x338] sm:$0xff] %v1328_v15 }
 0x1bb   : > { %1331 = vst [vmem:[%s2364_s8 + $0x340] sm:$0xff] %v1330_v35 }
 0x1bc   : > { %1333 = vst [vmem:[%s2364_s8 + $0x348] sm:$0xff] %v1332_v16 }
 0x1bd   : > { %1335 = vst [vmem:[%s2364_s8 + $0x350] sm:$0xff] %v1334_v17 }
 0x1be   : > { %1337 = vst [vmem:[%s2364_s8 + $0x358] sm:$0xff] %v1336_v19 }
 0x1bf   : > { %1339 = vst [vmem:[%s2364_s8 + $0x360] sm:$0xff] %v1338_v20 }
 0x1c0   : > { %1341 = vst [vmem:[%s2364_s8 + $0x368] sm:$0xff] %v1340_v21 }
 0x1c1   : > { %1343 = vst [vmem:[%s2364_s8 + $0x370] sm:$0xff] %v1342_v22 }
 0x1c2   : > { %1345 = vst [vmem:[%s2364_s8 + $0x378] sm:$0xff] %v1344_v23 }
 0x1c3 PF: > { %s14_s21 = sadd.s32 1, %s1643_s21   ;;  %s2520_s15 = smov %s1623_s16 }
 0x1c4   : > { %p11_p12 = scmp.ge.s32.totalorder %s14_s21, 6   ;;  %s2521_s16 = smov %s1731_s5 }
 0x1c5   : > { %s2522_s17 = smov %s1635_s19  ;;  %s2523_s18 = smov %s1639_s20 }
 0x1c6   : > { %s2524_s19 = smov %s2527_s22  ;;  %s2525_s20 = smov %s2531_s23 }
 0x1c7   :  { %13 = sbr.rel (!%p11_p12) target bundleno = 4 (0x4), region = 148 }

</bundles_post_ra>
